<compile_context>
chip_gen: v5e
topology: v5e:2x2
jax: 0.10.0
libtpu: 0.0.40
codegen_flags: <defaults>
</compile_context>

<pallas_src>
import functools

import jax
import jax.numpy as jnp
from jax.experimental import pallas as pl
from jax.experimental.pallas import tpu as pltpu


def _cnn_kernel(x_ref, w_ref, b_ref, o_ref, *, c_in, c_out, k, l_out):
    # x_ref: (C_in, L, TB) bf16 VMEM   (batch tile on the 128-lane axis)
    # w_ref: (C_out*C_in*k,) f32 SMEM  (row-major flatten of (C_out, C_in, k))
    # b_ref: (C_out,) f32 SMEM
    # o_ref: (C_out, TB) f32 VMEM      (lane-dense output block)
    tb = x_ref.shape[-1]
    x = x_ref[...].astype(jnp.float32)                 # (C_in, L, TB)
    for o in range(c_out):
        acc = jnp.zeros((l_out, tb), jnp.float32)
        for c in range(c_in):
            xc = x[c]                                   # (L, TB), lane-dense
            base = (o * c_in + c) * k
            for j in range(k):
                # static sublane slice + scalar-broadcast multiply-add (VPU)
                acc = acc + w_ref[base + j] * xc[j:j + l_out, :]
        acc = jnp.maximum(acc + b_ref[o], 0.0)          # bias + ReLU
        o_ref[o, :] = jnp.max(acc, axis=0)              # max over time axis


def _pick_batch_tile(n):
    if n >= 512:
        return 512
    if n >= 128:
        return 128
    return n


def cnn_forward(x, weight, bias, *, k):
    """x: (N, C_in, L); weight: (C_out, C_in, k); bias: (C_out,) -> (N, C_out)."""
    n, c_in, l = x.shape
    c_out = weight.shape[0]
    l_out = l - k + 1

    tb = _pick_batch_tile(n)
    num_tiles = pl.cdiv(n, tb)
    n_pad = num_tiles * tb

    # One transpose + bf16 cast in the wrapper: batch goes to the lane axis,
    # halving the HBM->VMEM bytes of the dominant input stream.
    x_t = jnp.transpose(x, (1, 2, 0)).astype(jnp.bfloat16)    # (C_in, L, N)
    if n_pad != n:
        x_t = jnp.pad(x_t, ((0, 0), (0, 0), (0, n_pad - n)))

    w_flat = weight.astype(jnp.float32).reshape(-1)           # (C_out*C_in*k,)
    b_vec = bias.astype(jnp.float32).reshape(-1)              # (C_out,)

    kernel = functools.partial(_cnn_kernel, c_in=c_in, c_out=c_out,
                               k=k, l_out=l_out)

    out_t = pl.pallas_call(
        kernel,
        out_shape=jax.ShapeDtypeStruct((c_out, n_pad), jnp.float32),
        grid_spec=pltpu.PrefetchScalarGridSpec(
            num_scalar_prefetch=0,
            grid=(num_tiles,),
            in_specs=[
                pl.BlockSpec((c_in, l, tb), lambda i: (0, 0, i)),
                pl.BlockSpec(memory_space=pltpu.MemorySpace.SMEM),
                pl.BlockSpec(memory_space=pltpu.MemorySpace.SMEM),
            ],
            out_specs=pl.BlockSpec((c_out, tb), lambda i: (0, i)),
        ),
        compiler_params=pltpu.CompilerParams(
            dimension_semantics=("parallel",)),
    )(x_t, w_flat, b_vec)

    return out_t[:, :n].T                                     # (N, C_out)


def cnn_reference(x, weight, bias, *, k):
    """Plain-JAX reference matching nn.Conv1d -> relu -> max(dim=2)."""
    n, c_in, l = x.shape
    c_out = weight.shape[0]
    l_out = l - k + 1
    out = jnp.zeros((n, c_out, l_out), jnp.float32)
    for j in range(k):
        # out[n,o,t] += sum_c w[o,c,j] * x[n,c,t+j]
        out = out + jnp.einsum('oc,nct->not', weight[:, :, j],
                               x[:, :, j:j + l_out])
    out = out + bias[None, :, None]
    return jnp.max(jnp.maximum(out, 0.0), axis=2)


if __name__ == "__main__":
    # Small shapes consistent with the module's forward.
    N, C_IN, L = 2, 4, 16
    C_OUT, K = 8, 5

    key = jax.random.PRNGKey(0)
    kx, kw, kb = jax.random.split(key, 3)
    x = jax.random.normal(kx, (N, C_IN, L), dtype=jnp.float32)
    # Deterministic parameter init (PyTorch Conv1d shapes: (C_out, C_in, k)).
    bound = 1.0 / (C_IN * K) ** 0.5
    weight = jax.random.uniform(kw, (C_OUT, C_IN, K), jnp.float32,
                                minval=-bound, maxval=bound)
    bias = jax.random.uniform(kb, (C_OUT,), jnp.float32,
                              minval=-bound, maxval=bound)

    y = cnn_forward(x, weight, bias, k=K)
    y = jax.block_until_ready(y)

    # Reference on bf16-rounded inputs (kernel streams x as bf16, math in f32).
    x_q = x.astype(jnp.bfloat16).astype(jnp.float32)
    y_ref = cnn_reference(x_q, weight, bias, k=K)

    assert y.shape == (N, C_OUT)
    assert jnp.allclose(y, y_ref, atol=1e-3, rtol=1e-3), "mismatch vs reference"

    print("KERNEL_OK")
</pallas_src>

<mosaic_0001>
module attributes {stable_mosaic.version = 11 : i64} {
  func.func @_cnn_kernel(%arg0: i32, %arg1: memref<4x16x2xbf16, #tpu.memory_space<vmem>>, %arg2: memref<160xf32, #tpu.memory_space<smem>>, %arg3: memref<8xf32, #tpu.memory_space<smem>>, %arg4: memref<8x2xf32, #tpu.memory_space<vmem>>) attributes {dimension_semantics = [#tpu.dimension_semantics<parallel>], iteration_bounds = array<i64: 1>, scalar_prefetch = 0 : i64, scratch_operands = 0 : i64, tpu.core_type = #tpu.core_type<tc>, window_params = [{transform_indices = @transform_0, window_bounds = array<i64: 4, 16, 2>}, {transform_indices = @transform_1, window_bounds = array<i64: 160>}, {transform_indices = @transform_2, window_bounds = array<i64: 8>}, {transform_indices = @transform_3, window_bounds = array<i64: 8, 2>}]} {
    %c0 = arith.constant 0 : index
    %c0_0 = arith.constant 0 : index
    %c0_1 = arith.constant 0 : index
    %0 = vector.load %arg1[%c0, %c0_0, %c0_1] : memref<4x16x2xbf16, #tpu.memory_space<vmem>>, vector<4x16x2xbf16>
    %1 = arith.extf %0 : vector<4x16x2xbf16> to vector<4x16x2xf32>
    %cst = arith.constant 0.000000e+00 : f32
    %2 = vector.broadcast %cst : f32 to vector<12x2xf32>
    %3 = vector.extract_strided_slice %1 {offsets = [0, 0, 0], sizes = [1, 16, 2], strides = [1, 1, 1]} : vector<4x16x2xf32> to vector<1x16x2xf32>
    %4 = vector.shape_cast %3 : vector<1x16x2xf32> to vector<16x2xf32>
    %c0_2 = arith.constant 0 : index
    %5 = memref.load %arg2[%c0_2] : memref<160xf32, #tpu.memory_space<smem>>
    %6 = vector.extract_strided_slice %4 {offsets = [0, 0], sizes = [12, 2], strides = [1, 1]} : vector<16x2xf32> to vector<12x2xf32>
    %7 = vector.broadcast %5 : f32 to vector<12x2xf32>
    %8 = arith.mulf %7, %6 : vector<12x2xf32>
    %9 = arith.addf %2, %8 : vector<12x2xf32>
    %c1 = arith.constant 1 : index
    %10 = memref.load %arg2[%c1] : memref<160xf32, #tpu.memory_space<smem>>
    %11 = vector.extract_strided_slice %4 {offsets = [1, 0], sizes = [12, 2], strides = [1, 1]} : vector<16x2xf32> to vector<12x2xf32>
    %12 = vector.broadcast %10 : f32 to vector<12x2xf32>
    %13 = arith.mulf %12, %11 : vector<12x2xf32>
    %14 = arith.addf %9, %13 : vector<12x2xf32>
    %c2 = arith.constant 2 : index
    %15 = memref.load %arg2[%c2] : memref<160xf32, #tpu.memory_space<smem>>
    %16 = vector.extract_strided_slice %4 {offsets = [2, 0], sizes = [12, 2], strides = [1, 1]} : vector<16x2xf32> to vector<12x2xf32>
    %17 = vector.broadcast %15 : f32 to vector<12x2xf32>
    %18 = arith.mulf %17, %16 : vector<12x2xf32>
    %19 = arith.addf %14, %18 : vector<12x2xf32>
    %c3 = arith.constant 3 : index
    %20 = memref.load %arg2[%c3] : memref<160xf32, #tpu.memory_space<smem>>
    %21 = vector.extract_strided_slice %4 {offsets = [3, 0], sizes = [12, 2], strides = [1, 1]} : vector<16x2xf32> to vector<12x2xf32>
    %22 = vector.broadcast %20 : f32 to vector<12x2xf32>
    %23 = arith.mulf %22, %21 : vector<12x2xf32>
    %24 = arith.addf %19, %23 : vector<12x2xf32>
    %c4 = arith.constant 4 : index
    %25 = memref.load %arg2[%c4] : memref<160xf32, #tpu.memory_space<smem>>
    %26 = vector.extract_strided_slice %4 {offsets = [4, 0], sizes = [12, 2], strides = [1, 1]} : vector<16x2xf32> to vector<12x2xf32>
    %27 = vector.broadcast %25 : f32 to vector<12x2xf32>
    %28 = arith.mulf %27, %26 : vector<12x2xf32>
    %29 = arith.addf %24, %28 : vector<12x2xf32>
    %30 = vector.extract_strided_slice %1 {offsets = [1, 0, 0], sizes = [1, 16, 2], strides = [1, 1, 1]} : vector<4x16x2xf32> to vector<1x16x2xf32>
    %31 = vector.shape_cast %30 : vector<1x16x2xf32> to vector<16x2xf32>
    %c5 = arith.constant 5 : index
    %32 = memref.load %arg2[%c5] : memref<160xf32, #tpu.memory_space<smem>>
    %33 = vector.extract_strided_slice %31 {offsets = [0, 0], sizes = [12, 2], strides = [1, 1]} : vector<16x2xf32> to vector<12x2xf32>
    %34 = vector.broadcast %32 : f32 to vector<12x2xf32>
    %35 = arith.mulf %34, %33 : vector<12x2xf32>
    %36 = arith.addf %29, %35 : vector<12x2xf32>
    %c6 = arith.constant 6 : index
    %37 = memref.load %arg2[%c6] : memref<160xf32, #tpu.memory_space<smem>>
    %38 = vector.extract_strided_slice %31 {offsets = [1, 0], sizes = [12, 2], strides = [1, 1]} : vector<16x2xf32> to vector<12x2xf32>
    %39 = vector.broadcast %37 : f32 to vector<12x2xf32>
    %40 = arith.mulf %39, %38 : vector<12x2xf32>
    %41 = arith.addf %36, %40 : vector<12x2xf32>
    %c7 = arith.constant 7 : index
    %42 = memref.load %arg2[%c7] : memref<160xf32, #tpu.memory_space<smem>>
    %43 = vector.extract_strided_slice %31 {offsets = [2, 0], sizes = [12, 2], strides = [1, 1]} : vector<16x2xf32> to vector<12x2xf32>
    %44 = vector.broadcast %42 : f32 to vector<12x2xf32>
    %45 = arith.mulf %44, %43 : vector<12x2xf32>
    %46 = arith.addf %41, %45 : vector<12x2xf32>
    %c8 = arith.constant 8 : index
    %47 = memref.load %arg2[%c8] : memref<160xf32, #tpu.memory_space<smem>>
    %48 = vector.extract_strided_slice %31 {offsets = [3, 0], sizes = [12, 2], strides = [1, 1]} : vector<16x2xf32> to vector<12x2xf32>
    %49 = vector.broadcast %47 : f32 to vector<12x2xf32>
    %50 = arith.mulf %49, %48 : vector<12x2xf32>
    %51 = arith.addf %46, %50 : vector<12x2xf32>
    %c9 = arith.constant 9 : index
    %52 = memref.load %arg2[%c9] : memref<160xf32, #tpu.memory_space<smem>>
    %53 = vector.extract_strided_slice %31 {offsets = [4, 0], sizes = [12, 2], strides = [1, 1]} : vector<16x2xf32> to vector<12x2xf32>
    %54 = vector.broadcast %52 : f32 to vector<12x2xf32>
    %55 = arith.mulf %54, %53 : vector<12x2xf32>
    %56 = arith.addf %51, %55 : vector<12x2xf32>
    %57 = vector.extract_strided_slice %1 {offsets = [2, 0, 0], sizes = [1, 16, 2], strides = [1, 1, 1]} : vector<4x16x2xf32> to vector<1x16x2xf32>
    %58 = vector.shape_cast %57 : vector<1x16x2xf32> to vector<16x2xf32>
    %c10 = arith.constant 10 : index
    %59 = memref.load %arg2[%c10] : memref<160xf32, #tpu.memory_space<smem>>
    %60 = vector.extract_strided_slice %58 {offsets = [0, 0], sizes = [12, 2], strides = [1, 1]} : vector<16x2xf32> to vector<12x2xf32>
    %61 = vector.broadcast %59 : f32 to vector<12x2xf32>
    %62 = arith.mulf %61, %60 : vector<12x2xf32>
    %63 = arith.addf %56, %62 : vector<12x2xf32>
    %c11 = arith.constant 11 : index
    %64 = memref.load %arg2[%c11] : memref<160xf32, #tpu.memory_space<smem>>
    %65 = vector.extract_strided_slice %58 {offsets = [1, 0], sizes = [12, 2], strides = [1, 1]} : vector<16x2xf32> to vector<12x2xf32>
    %66 = vector.broadcast %64 : f32 to vector<12x2xf32>
    %67 = arith.mulf %66, %65 : vector<12x2xf32>
    %68 = arith.addf %63, %67 : vector<12x2xf32>
    %c12 = arith.constant 12 : index
    %69 = memref.load %arg2[%c12] : memref<160xf32, #tpu.memory_space<smem>>
    %70 = vector.extract_strided_slice %58 {offsets = [2, 0], sizes = [12, 2], strides = [1, 1]} : vector<16x2xf32> to vector<12x2xf32>
    %71 = vector.broadcast %69 : f32 to vector<12x2xf32>
    %72 = arith.mulf %71, %70 : vector<12x2xf32>
    %73 = arith.addf %68, %72 : vector<12x2xf32>
    %c13 = arith.constant 13 : index
    %74 = memref.load %arg2[%c13] : memref<160xf32, #tpu.memory_space<smem>>
    %75 = vector.extract_strided_slice %58 {offsets = [3, 0], sizes = [12, 2], strides = [1, 1]} : vector<16x2xf32> to vector<12x2xf32>
    %76 = vector.broadcast %74 : f32 to vector<12x2xf32>
    %77 = arith.mulf %76, %75 : vector<12x2xf32>
    %78 = arith.addf %73, %77 : vector<12x2xf32>
    %c14 = arith.constant 14 : index
    %79 = memref.load %arg2[%c14] : memref<160xf32, #tpu.memory_space<smem>>
    %80 = vector.extract_strided_slice %58 {offsets = [4, 0], sizes = [12, 2], strides = [1, 1]} : vector<16x2xf32> to vector<12x2xf32>
    %81 = vector.broadcast %79 : f32 to vector<12x2xf32>
    %82 = arith.mulf %81, %80 : vector<12x2xf32>
    %83 = arith.addf %78, %82 : vector<12x2xf32>
    %84 = vector.extract_strided_slice %1 {offsets = [3, 0, 0], sizes = [1, 16, 2], strides = [1, 1, 1]} : vector<4x16x2xf32> to vector<1x16x2xf32>
    %85 = vector.shape_cast %84 : vector<1x16x2xf32> to vector<16x2xf32>
    %c15 = arith.constant 15 : index
    %86 = memref.load %arg2[%c15] : memref<160xf32, #tpu.memory_space<smem>>
    %87 = vector.extract_strided_slice %85 {offsets = [0, 0], sizes = [12, 2], strides = [1, 1]} : vector<16x2xf32> to vector<12x2xf32>
    %88 = vector.broadcast %86 : f32 to vector<12x2xf32>
    %89 = arith.mulf %88, %87 : vector<12x2xf32>
    %90 = arith.addf %83, %89 : vector<12x2xf32>
    %c16 = arith.constant 16 : index
    %91 = memref.load %arg2[%c16] : memref<160xf32, #tpu.memory_space<smem>>
    %92 = vector.extract_strided_slice %85 {offsets = [1, 0], sizes = [12, 2], strides = [1, 1]} : vector<16x2xf32> to vector<12x2xf32>
    %93 = vector.broadcast %91 : f32 to vector<12x2xf32>
    %94 = arith.mulf %93, %92 : vector<12x2xf32>
    %95 = arith.addf %90, %94 : vector<12x2xf32>
    %c17 = arith.constant 17 : index
    %96 = memref.load %arg2[%c17] : memref<160xf32, #tpu.memory_space<smem>>
    %97 = vector.extract_strided_slice %85 {offsets = [2, 0], sizes = [12, 2], strides = [1, 1]} : vector<16x2xf32> to vector<12x2xf32>
    %98 = vector.broadcast %96 : f32 to vector<12x2xf32>
    %99 = arith.mulf %98, %97 : vector<12x2xf32>
    %100 = arith.addf %95, %99 : vector<12x2xf32>
    %c18 = arith.constant 18 : index
    %101 = memref.load %arg2[%c18] : memref<160xf32, #tpu.memory_space<smem>>
    %102 = vector.extract_strided_slice %85 {offsets = [3, 0], sizes = [12, 2], strides = [1, 1]} : vector<16x2xf32> to vector<12x2xf32>
    %103 = vector.broadcast %101 : f32 to vector<12x2xf32>
    %104 = arith.mulf %103, %102 : vector<12x2xf32>
    %105 = arith.addf %100, %104 : vector<12x2xf32>
    %c19 = arith.constant 19 : index
    %106 = memref.load %arg2[%c19] : memref<160xf32, #tpu.memory_space<smem>>
    %107 = vector.extract_strided_slice %85 {offsets = [4, 0], sizes = [12, 2], strides = [1, 1]} : vector<16x2xf32> to vector<12x2xf32>
    %108 = vector.broadcast %106 : f32 to vector<12x2xf32>
    %109 = arith.mulf %108, %107 : vector<12x2xf32>
    %110 = arith.addf %105, %109 : vector<12x2xf32>
    %c0_3 = arith.constant 0 : index
    %111 = memref.load %arg3[%c0_3] : memref<8xf32, #tpu.memory_space<smem>>
    %112 = vector.broadcast %111 : f32 to vector<12x2xf32>
    %113 = arith.addf %110, %112 : vector<12x2xf32>
    %cst_4 = arith.constant 0.000000e+00 : f32
    %114 = vector.broadcast %cst_4 : f32 to vector<12x2xf32>
    %115 = arith.maximumf %113, %114 : vector<12x2xf32>
    %cst_5 = arith.constant dense<0xFF800000> : vector<2xf32>
    %116 = vector.multi_reduction <maximumf>, %115, %cst_5 [0] : vector<12x2xf32> to vector<2xf32>
    %c0_6 = arith.constant 0 : index
    %c0_7 = arith.constant 0 : index
    %117 = vector.load %arg4[%c0_6, %c0_7] : memref<8x2xf32, #tpu.memory_space<vmem>>, vector<1x2xf32>
    %118 = vector.shape_cast %117 : vector<1x2xf32> to vector<2xf32>
    %119 = vector.shape_cast %116 : vector<2xf32> to vector<1x2xf32>
    tpu.vector_store %arg4[%c0_6, %c0_7], %119 {strides = array<i32>} : memref<8x2xf32, #tpu.memory_space<vmem>>, vector<1x2xf32>,
    %cst_8 = arith.constant 0.000000e+00 : f32
    %120 = vector.broadcast %cst_8 : f32 to vector<12x2xf32>
    %121 = vector.extract_strided_slice %1 {offsets = [0, 0, 0], sizes = [1, 16, 2], strides = [1, 1, 1]} : vector<4x16x2xf32> to vector<1x16x2xf32>
    %122 = vector.shape_cast %121 : vector<1x16x2xf32> to vector<16x2xf32>
    %c20 = arith.constant 20 : index
    %123 = memref.load %arg2[%c20] : memref<160xf32, #tpu.memory_space<smem>>
    %124 = vector.extract_strided_slice %122 {offsets = [0, 0], sizes = [12, 2], strides = [1, 1]} : vector<16x2xf32> to vector<12x2xf32>
    %125 = vector.broadcast %123 : f32 to vector<12x2xf32>
    %126 = arith.mulf %125, %124 : vector<12x2xf32>
    %127 = arith.addf %120, %126 : vector<12x2xf32>
    %c21 = arith.constant 21 : index
    %128 = memref.load %arg2[%c21] : memref<160xf32, #tpu.memory_space<smem>>
    %129 = vector.extract_strided_slice %122 {offsets = [1, 0], sizes = [12, 2], strides = [1, 1]} : vector<16x2xf32> to vector<12x2xf32>
    %130 = vector.broadcast %128 : f32 to vector<12x2xf32>
    %131 = arith.mulf %130, %129 : vector<12x2xf32>
    %132 = arith.addf %127, %131 : vector<12x2xf32>
    %c22 = arith.constant 22 : index
    %133 = memref.load %arg2[%c22] : memref<160xf32, #tpu.memory_space<smem>>
    %134 = vector.extract_strided_slice %122 {offsets = [2, 0], sizes = [12, 2], strides = [1, 1]} : vector<16x2xf32> to vector<12x2xf32>
    %135 = vector.broadcast %133 : f32 to vector<12x2xf32>
    %136 = arith.mulf %135, %134 : vector<12x2xf32>
    %137 = arith.addf %132, %136 : vector<12x2xf32>
    %c23 = arith.constant 23 : index
    %138 = memref.load %arg2[%c23] : memref<160xf32, #tpu.memory_space<smem>>
    %139 = vector.extract_strided_slice %122 {offsets = [3, 0], sizes = [12, 2], strides = [1, 1]} : vector<16x2xf32> to vector<12x2xf32>
    %140 = vector.broadcast %138 : f32 to vector<12x2xf32>
    %141 = arith.mulf %140, %139 : vector<12x2xf32>
    %142 = arith.addf %137, %141 : vector<12x2xf32>
    %c24 = arith.constant 24 : index
    %143 = memref.load %arg2[%c24] : memref<160xf32, #tpu.memory_space<smem>>
    %144 = vector.extract_strided_slice %122 {offsets = [4, 0], sizes = [12, 2], strides = [1, 1]} : vector<16x2xf32> to vector<12x2xf32>
    %145 = vector.broadcast %143 : f32 to vector<12x2xf32>
    %146 = arith.mulf %145, %144 : vector<12x2xf32>
    %147 = arith.addf %142, %146 : vector<12x2xf32>
    %148 = vector.extract_strided_slice %1 {offsets = [1, 0, 0], sizes = [1, 16, 2], strides = [1, 1, 1]} : vector<4x16x2xf32> to vector<1x16x2xf32>
    %149 = vector.shape_cast %148 : vector<1x16x2xf32> to vector<16x2xf32>
    %c25 = arith.constant 25 : index
    %150 = memref.load %arg2[%c25] : memref<160xf32, #tpu.memory_space<smem>>
    %151 = vector.extract_strided_slice %149 {offsets = [0, 0], sizes = [12, 2], strides = [1, 1]} : vector<16x2xf32> to vector<12x2xf32>
    %152 = vector.broadcast %150 : f32 to vector<12x2xf32>
    %153 = arith.mulf %152, %151 : vector<12x2xf32>
    %154 = arith.addf %147, %153 : vector<12x2xf32>
    %c26 = arith.constant 26 : index
    %155 = memref.load %arg2[%c26] : memref<160xf32, #tpu.memory_space<smem>>
    %156 = vector.extract_strided_slice %149 {offsets = [1, 0], sizes = [12, 2], strides = [1, 1]} : vector<16x2xf32> to vector<12x2xf32>
    %157 = vector.broadcast %155 : f32 to vector<12x2xf32>
    %158 = arith.mulf %157, %156 : vector<12x2xf32>
    %159 = arith.addf %154, %158 : vector<12x2xf32>
    %c27 = arith.constant 27 : index
    %160 = memref.load %arg2[%c27] : memref<160xf32, #tpu.memory_space<smem>>
    %161 = vector.extract_strided_slice %149 {offsets = [2, 0], sizes = [12, 2], strides = [1, 1]} : vector<16x2xf32> to vector<12x2xf32>
    %162 = vector.broadcast %160 : f32 to vector<12x2xf32>
    %163 = arith.mulf %162, %161 : vector<12x2xf32>
    %164 = arith.addf %159, %163 : vector<12x2xf32>
    %c28 = arith.constant 28 : index
    %165 = memref.load %arg2[%c28] : memref<160xf32, #tpu.memory_space<smem>>
    %166 = vector.extract_strided_slice %149 {offsets = [3, 0], sizes = [12, 2], strides = [1, 1]} : vector<16x2xf32> to vector<12x2xf32>
    %167 = vector.broadcast %165 : f32 to vector<12x2xf32>
    %168 = arith.mulf %167, %166 : vector<12x2xf32>
    %169 = arith.addf %164, %168 : vector<12x2xf32>
    %c29 = arith.constant 29 : index
    %170 = memref.load %arg2[%c29] : memref<160xf32, #tpu.memory_space<smem>>
    %171 = vector.extract_strided_slice %149 {offsets = [4, 0], sizes = [12, 2], strides = [1, 1]} : vector<16x2xf32> to vector<12x2xf32>
    %172 = vector.broadcast %170 : f32 to vector<12x2xf32>
    %173 = arith.mulf %172, %171 : vector<12x2xf32>
    %174 = arith.addf %169, %173 : vector<12x2xf32>
    %175 = vector.extract_strided_slice %1 {offsets = [2, 0, 0], sizes = [1, 16, 2], strides = [1, 1, 1]} : vector<4x16x2xf32> to vector<1x16x2xf32>
    %176 = vector.shape_cast %175 : vector<1x16x2xf32> to vector<16x2xf32>
    %c30 = arith.constant 30 : index
    %177 = memref.load %arg2[%c30] : memref<160xf32, #tpu.memory_space<smem>>
    %178 = vector.extract_strided_slice %176 {offsets = [0, 0], sizes = [12, 2], strides = [1, 1]} : vector<16x2xf32> to vector<12x2xf32>
    %179 = vector.broadcast %177 : f32 to vector<12x2xf32>
    %180 = arith.mulf %179, %178 : vector<12x2xf32>
    %181 = arith.addf %174, %180 : vector<12x2xf32>
    %c31 = arith.constant 31 : index
    %182 = memref.load %arg2[%c31] : memref<160xf32, #tpu.memory_space<smem>>
    %183 = vector.extract_strided_slice %176 {offsets = [1, 0], sizes = [12, 2], strides = [1, 1]} : vector<16x2xf32> to vector<12x2xf32>
    %184 = vector.broadcast %182 : f32 to vector<12x2xf32>
    %185 = arith.mulf %184, %183 : vector<12x2xf32>
    %186 = arith.addf %181, %185 : vector<12x2xf32>
    %c32 = arith.constant 32 : index
    %187 = memref.load %arg2[%c32] : memref<160xf32, #tpu.memory_space<smem>>
    %188 = vector.extract_strided_slice %176 {offsets = [2, 0], sizes = [12, 2], strides = [1, 1]} : vector<16x2xf32> to vector<12x2xf32>
    %189 = vector.broadcast %187 : f32 to vector<12x2xf32>
    %190 = arith.mulf %189, %188 : vector<12x2xf32>
    %191 = arith.addf %186, %190 : vector<12x2xf32>
    %c33 = arith.constant 33 : index
    %192 = memref.load %arg2[%c33] : memref<160xf32, #tpu.memory_space<smem>>
    %193 = vector.extract_strided_slice %176 {offsets = [3, 0], sizes = [12, 2], strides = [1, 1]} : vector<16x2xf32> to vector<12x2xf32>
    %194 = vector.broadcast %192 : f32 to vector<12x2xf32>
    %195 = arith.mulf %194, %193 : vector<12x2xf32>
    %196 = arith.addf %191, %195 : vector<12x2xf32>
    %c34 = arith.constant 34 : index
    %197 = memref.load %arg2[%c34] : memref<160xf32, #tpu.memory_space<smem>>
    %198 = vector.extract_strided_slice %176 {offsets = [4, 0], sizes = [12, 2], strides = [1, 1]} : vector<16x2xf32> to vector<12x2xf32>
    %199 = vector.broadcast %197 : f32 to vector<12x2xf32>
    %200 = arith.mulf %199, %198 : vector<12x2xf32>
    %201 = arith.addf %196, %200 : vector<12x2xf32>
    %202 = vector.extract_strided_slice %1 {offsets = [3, 0, 0], sizes = [1, 16, 2], strides = [1, 1, 1]} : vector<4x16x2xf32> to vector<1x16x2xf32>
    %203 = vector.shape_cast %202 : vector<1x16x2xf32> to vector<16x2xf32>
    %c35 = arith.constant 35 : index
    %204 = memref.load %arg2[%c35] : memref<160xf32, #tpu.memory_space<smem>>
    %205 = vector.extract_strided_slice %203 {offsets = [0, 0], sizes = [12, 2], strides = [1, 1]} : vector<16x2xf32> to vector<12x2xf32>
    %206 = vector.broadcast %204 : f32 to vector<12x2xf32>
    %207 = arith.mulf %206, %205 : vector<12x2xf32>
    %208 = arith.addf %201, %207 : vector<12x2xf32>
    %c36 = arith.constant 36 : index
    %209 = memref.load %arg2[%c36] : memref<160xf32, #tpu.memory_space<smem>>
    %210 = vector.extract_strided_slice %203 {offsets = [1, 0], sizes = [12, 2], strides = [1, 1]} : vector<16x2xf32> to vector<12x2xf32>
    %211 = vector.broadcast %209 : f32 to vector<12x2xf32>
    %212 = arith.mulf %211, %210 : vector<12x2xf32>
    %213 = arith.addf %208, %212 : vector<12x2xf32>
    %c37 = arith.constant 37 : index
    %214 = memref.load %arg2[%c37] : memref<160xf32, #tpu.memory_space<smem>>
    %215 = vector.extract_strided_slice %203 {offsets = [2, 0], sizes = [12, 2], strides = [1, 1]} : vector<16x2xf32> to vector<12x2xf32>
    %216 = vector.broadcast %214 : f32 to vector<12x2xf32>
    %217 = arith.mulf %216, %215 : vector<12x2xf32>
    %218 = arith.addf %213, %217 : vector<12x2xf32>
    %c38 = arith.constant 38 : index
    %219 = memref.load %arg2[%c38] : memref<160xf32, #tpu.memory_space<smem>>
    %220 = vector.extract_strided_slice %203 {offsets = [3, 0], sizes = [12, 2], strides = [1, 1]} : vector<16x2xf32> to vector<12x2xf32>
    %221 = vector.broadcast %219 : f32 to vector<12x2xf32>
    %222 = arith.mulf %221, %220 : vector<12x2xf32>
    %223 = arith.addf %218, %222 : vector<12x2xf32>
    %c39 = arith.constant 39 : index
    %224 = memref.load %arg2[%c39] : memref<160xf32, #tpu.memory_space<smem>>
    %225 = vector.extract_strided_slice %203 {offsets = [4, 0], sizes = [12, 2], strides = [1, 1]} : vector<16x2xf32> to vector<12x2xf32>
    %226 = vector.broadcast %224 : f32 to vector<12x2xf32>
    %227 = arith.mulf %226, %225 : vector<12x2xf32>
    %228 = arith.addf %223, %227 : vector<12x2xf32>
    %c1_9 = arith.constant 1 : index
    %229 = memref.load %arg3[%c1_9] : memref<8xf32, #tpu.memory_space<smem>>
    %230 = vector.broadcast %229 : f32 to vector<12x2xf32>
    %231 = arith.addf %228, %230 : vector<12x2xf32>
    %cst_10 = arith.constant 0.000000e+00 : f32
    %232 = vector.broadcast %cst_10 : f32 to vector<12x2xf32>
    %233 = arith.maximumf %231, %232 : vector<12x2xf32>
    %cst_11 = arith.constant dense<0xFF800000> : vector<2xf32>
    %234 = vector.multi_reduction <maximumf>, %233, %cst_11 [0] : vector<12x2xf32> to vector<2xf32>
    %c1_12 = arith.constant 1 : index
    %c0_13 = arith.constant 0 : index
    %235 = vector.load %arg4[%c1_12, %c0_13] : memref<8x2xf32, #tpu.memory_space<vmem>>, vector<1x2xf32>
    %236 = vector.shape_cast %235 : vector<1x2xf32> to vector<2xf32>
    %237 = vector.shape_cast %234 : vector<2xf32> to vector<1x2xf32>
    tpu.vector_store %arg4[%c1_12, %c0_13], %237 {strides = array<i32>} : memref<8x2xf32, #tpu.memory_space<vmem>>, vector<1x2xf32>,
    %cst_14 = arith.constant 0.000000e+00 : f32
    %238 = vector.broadcast %cst_14 : f32 to vector<12x2xf32>
    %239 = vector.extract_strided_slice %1 {offsets = [0, 0, 0], sizes = [1, 16, 2], strides = [1, 1, 1]} : vector<4x16x2xf32> to vector<1x16x2xf32>
    %240 = vector.shape_cast %239 : vector<1x16x2xf32> to vector<16x2xf32>
    %c40 = arith.constant 40 : index
    %241 = memref.load %arg2[%c40] : memref<160xf32, #tpu.memory_space<smem>>
    %242 = vector.extract_strided_slice %240 {offsets = [0, 0], sizes = [12, 2], strides = [1, 1]} : vector<16x2xf32> to vector<12x2xf32>
    %243 = vector.broadcast %241 : f32 to vector<12x2xf32>
    %244 = arith.mulf %243, %242 : vector<12x2xf32>
    %245 = arith.addf %238, %244 : vector<12x2xf32>
    %c41 = arith.constant 41 : index
    %246 = memref.load %arg2[%c41] : memref<160xf32, #tpu.memory_space<smem>>
    %247 = vector.extract_strided_slice %240 {offsets = [1, 0], sizes = [12, 2], strides = [1, 1]} : vector<16x2xf32> to vector<12x2xf32>
    %248 = vector.broadcast %246 : f32 to vector<12x2xf32>
    %249 = arith.mulf %248, %247 : vector<12x2xf32>
    %250 = arith.addf %245, %249 : vector<12x2xf32>
    %c42 = arith.constant 42 : index
    %251 = memref.load %arg2[%c42] : memref<160xf32, #tpu.memory_space<smem>>
    %252 = vector.extract_strided_slice %240 {offsets = [2, 0], sizes = [12, 2], strides = [1, 1]} : vector<16x2xf32> to vector<12x2xf32>
    %253 = vector.broadcast %251 : f32 to vector<12x2xf32>
    %254 = arith.mulf %253, %252 : vector<12x2xf32>
    %255 = arith.addf %250, %254 : vector<12x2xf32>
    %c43 = arith.constant 43 : index
    %256 = memref.load %arg2[%c43] : memref<160xf32, #tpu.memory_space<smem>>
    %257 = vector.extract_strided_slice %240 {offsets = [3, 0], sizes = [12, 2], strides = [1, 1]} : vector<16x2xf32> to vector<12x2xf32>
    %258 = vector.broadcast %256 : f32 to vector<12x2xf32>
    %259 = arith.mulf %258, %257 : vector<12x2xf32>
    %260 = arith.addf %255, %259 : vector<12x2xf32>
    %c44 = arith.constant 44 : index
    %261 = memref.load %arg2[%c44] : memref<160xf32, #tpu.memory_space<smem>>
    %262 = vector.extract_strided_slice %240 {offsets = [4, 0], sizes = [12, 2], strides = [1, 1]} : vector<16x2xf32> to vector<12x2xf32>
    %263 = vector.broadcast %261 : f32 to vector<12x2xf32>
    %264 = arith.mulf %263, %262 : vector<12x2xf32>
    %265 = arith.addf %260, %264 : vector<12x2xf32>
    %266 = vector.extract_strided_slice %1 {offsets = [1, 0, 0], sizes = [1, 16, 2], strides = [1, 1, 1]} : vector<4x16x2xf32> to vector<1x16x2xf32>
    %267 = vector.shape_cast %266 : vector<1x16x2xf32> to vector<16x2xf32>
    %c45 = arith.constant 45 : index
    %268 = memref.load %arg2[%c45] : memref<160xf32, #tpu.memory_space<smem>>
    %269 = vector.extract_strided_slice %267 {offsets = [0, 0], sizes = [12, 2], strides = [1, 1]} : vector<16x2xf32> to vector<12x2xf32>
    %270 = vector.broadcast %268 : f32 to vector<12x2xf32>
    %271 = arith.mulf %270, %269 : vector<12x2xf32>
    %272 = arith.addf %265, %271 : vector<12x2xf32>
    %c46 = arith.constant 46 : index
    %273 = memref.load %arg2[%c46] : memref<160xf32, #tpu.memory_space<smem>>
    %274 = vector.extract_strided_slice %267 {offsets = [1, 0], sizes = [12, 2], strides = [1, 1]} : vector<16x2xf32> to vector<12x2xf32>
    %275 = vector.broadcast %273 : f32 to vector<12x2xf32>
    %276 = arith.mulf %275, %274 : vector<12x2xf32>
    %277 = arith.addf %272, %276 : vector<12x2xf32>
    %c47 = arith.constant 47 : index
    %278 = memref.load %arg2[%c47] : memref<160xf32, #tpu.memory_space<smem>>
    %279 = vector.extract_strided_slice %267 {offsets = [2, 0], sizes = [12, 2], strides = [1, 1]} : vector<16x2xf32> to vector<12x2xf32>
    %280 = vector.broadcast %278 : f32 to vector<12x2xf32>
    %281 = arith.mulf %280, %279 : vector<12x2xf32>
    %282 = arith.addf %277, %281 : vector<12x2xf32>
    %c48 = arith.constant 48 : index
    %283 = memref.load %arg2[%c48] : memref<160xf32, #tpu.memory_space<smem>>
    %284 = vector.extract_strided_slice %267 {offsets = [3, 0], sizes = [12, 2], strides = [1, 1]} : vector<16x2xf32> to vector<12x2xf32>
    %285 = vector.broadcast %283 : f32 to vector<12x2xf32>
    %286 = arith.mulf %285, %284 : vector<12x2xf32>
    %287 = arith.addf %282, %286 : vector<12x2xf32>
    %c49 = arith.constant 49 : index
    %288 = memref.load %arg2[%c49] : memref<160xf32, #tpu.memory_space<smem>>
    %289 = vector.extract_strided_slice %267 {offsets = [4, 0], sizes = [12, 2], strides = [1, 1]} : vector<16x2xf32> to vector<12x2xf32>
    %290 = vector.broadcast %288 : f32 to vector<12x2xf32>
    %291 = arith.mulf %290, %289 : vector<12x2xf32>
    %292 = arith.addf %287, %291 : vector<12x2xf32>
    %293 = vector.extract_strided_slice %1 {offsets = [2, 0, 0], sizes = [1, 16, 2], strides = [1, 1, 1]} : vector<4x16x2xf32> to vector<1x16x2xf32>
    %294 = vector.shape_cast %293 : vector<1x16x2xf32> to vector<16x2xf32>
    %c50 = arith.constant 50 : index
    %295 = memref.load %arg2[%c50] : memref<160xf32, #tpu.memory_space<smem>>
    %296 = vector.extract_strided_slice %294 {offsets = [0, 0], sizes = [12, 2], strides = [1, 1]} : vector<16x2xf32> to vector<12x2xf32>
    %297 = vector.broadcast %295 : f32 to vector<12x2xf32>
    %298 = arith.mulf %297, %296 : vector<12x2xf32>
    %299 = arith.addf %292, %298 : vector<12x2xf32>
    %c51 = arith.constant 51 : index
    %300 = memref.load %arg2[%c51] : memref<160xf32, #tpu.memory_space<smem>>
    %301 = vector.extract_strided_slice %294 {offsets = [1, 0], sizes = [12, 2], strides = [1, 1]} : vector<16x2xf32> to vector<12x2xf32>
    %302 = vector.broadcast %300 : f32 to vector<12x2xf32>
    %303 = arith.mulf %302, %301 : vector<12x2xf32>
    %304 = arith.addf %299, %303 : vector<12x2xf32>
    %c52 = arith.constant 52 : index
    %305 = memref.load %arg2[%c52] : memref<160xf32, #tpu.memory_space<smem>>
    %306 = vector.extract_strided_slice %294 {offsets = [2, 0], sizes = [12, 2], strides = [1, 1]} : vector<16x2xf32> to vector<12x2xf32>
    %307 = vector.broadcast %305 : f32 to vector<12x2xf32>
    %308 = arith.mulf %307, %306 : vector<12x2xf32>
    %309 = arith.addf %304, %308 : vector<12x2xf32>
    %c53 = arith.constant 53 : index
    %310 = memref.load %arg2[%c53] : memref<160xf32, #tpu.memory_space<smem>>
    %311 = vector.extract_strided_slice %294 {offsets = [3, 0], sizes = [12, 2], strides = [1, 1]} : vector<16x2xf32> to vector<12x2xf32>
    %312 = vector.broadcast %310 : f32 to vector<12x2xf32>
    %313 = arith.mulf %312, %311 : vector<12x2xf32>
    %314 = arith.addf %309, %313 : vector<12x2xf32>
    %c54 = arith.constant 54 : index
    %315 = memref.load %arg2[%c54] : memref<160xf32, #tpu.memory_space<smem>>
    %316 = vector.extract_strided_slice %294 {offsets = [4, 0], sizes = [12, 2], strides = [1, 1]} : vector<16x2xf32> to vector<12x2xf32>
    %317 = vector.broadcast %315 : f32 to vector<12x2xf32>
    %318 = arith.mulf %317, %316 : vector<12x2xf32>
    %319 = arith.addf %314, %318 : vector<12x2xf32>
    %320 = vector.extract_strided_slice %1 {offsets = [3, 0, 0], sizes = [1, 16, 2], strides = [1, 1, 1]} : vector<4x16x2xf32> to vector<1x16x2xf32>
    %321 = vector.shape_cast %320 : vector<1x16x2xf32> to vector<16x2xf32>
    %c55 = arith.constant 55 : index
    %322 = memref.load %arg2[%c55] : memref<160xf32, #tpu.memory_space<smem>>
    %323 = vector.extract_strided_slice %321 {offsets = [0, 0], sizes = [12, 2], strides = [1, 1]} : vector<16x2xf32> to vector<12x2xf32>
    %324 = vector.broadcast %322 : f32 to vector<12x2xf32>
    %325 = arith.mulf %324, %323 : vector<12x2xf32>
    %326 = arith.addf %319, %325 : vector<12x2xf32>
    %c56 = arith.constant 56 : index
    %327 = memref.load %arg2[%c56] : memref<160xf32, #tpu.memory_space<smem>>
    %328 = vector.extract_strided_slice %321 {offsets = [1, 0], sizes = [12, 2], strides = [1, 1]} : vector<16x2xf32> to vector<12x2xf32>
    %329 = vector.broadcast %327 : f32 to vector<12x2xf32>
    %330 = arith.mulf %329, %328 : vector<12x2xf32>
    %331 = arith.addf %326, %330 : vector<12x2xf32>
    %c57 = arith.constant 57 : index
    %332 = memref.load %arg2[%c57] : memref<160xf32, #tpu.memory_space<smem>>
    %333 = vector.extract_strided_slice %321 {offsets = [2, 0], sizes = [12, 2], strides = [1, 1]} : vector<16x2xf32> to vector<12x2xf32>
    %334 = vector.broadcast %332 : f32 to vector<12x2xf32>
    %335 = arith.mulf %334, %333 : vector<12x2xf32>
    %336 = arith.addf %331, %335 : vector<12x2xf32>
    %c58 = arith.constant 58 : index
    %337 = memref.load %arg2[%c58] : memref<160xf32, #tpu.memory_space<smem>>
    %338 = vector.extract_strided_slice %321 {offsets = [3, 0], sizes = [12, 2], strides = [1, 1]} : vector<16x2xf32> to vector<12x2xf32>
    %339 = vector.broadcast %337 : f32 to vector<12x2xf32>
    %340 = arith.mulf %339, %338 : vector<12x2xf32>
    %341 = arith.addf %336, %340 : vector<12x2xf32>
    %c59 = arith.constant 59 : index
    %342 = memref.load %arg2[%c59] : memref<160xf32, #tpu.memory_space<smem>>
    %343 = vector.extract_strided_slice %321 {offsets = [4, 0], sizes = [12, 2], strides = [1, 1]} : vector<16x2xf32> to vector<12x2xf32>
    %344 = vector.broadcast %342 : f32 to vector<12x2xf32>
    %345 = arith.mulf %344, %343 : vector<12x2xf32>
    %346 = arith.addf %341, %345 : vector<12x2xf32>
    %c2_15 = arith.constant 2 : index
    %347 = memref.load %arg3[%c2_15] : memref<8xf32, #tpu.memory_space<smem>>
    %348 = vector.broadcast %347 : f32 to vector<12x2xf32>
    %349 = arith.addf %346, %348 : vector<12x2xf32>
    %cst_16 = arith.constant 0.000000e+00 : f32
    %350 = vector.broadcast %cst_16 : f32 to vector<12x2xf32>
    %351 = arith.maximumf %349, %350 : vector<12x2xf32>
    %cst_17 = arith.constant dense<0xFF800000> : vector<2xf32>
    %352 = vector.multi_reduction <maximumf>, %351, %cst_17 [0] : vector<12x2xf32> to vector<2xf32>
    %c2_18 = arith.constant 2 : index
    %c0_19 = arith.constant 0 : index
    %353 = vector.load %arg4[%c2_18, %c0_19] : memref<8x2xf32, #tpu.memory_space<vmem>>, vector<1x2xf32>
    %354 = vector.shape_cast %353 : vector<1x2xf32> to vector<2xf32>
    %355 = vector.shape_cast %352 : vector<2xf32> to vector<1x2xf32>
    tpu.vector_store %arg4[%c2_18, %c0_19], %355 {strides = array<i32>} : memref<8x2xf32, #tpu.memory_space<vmem>>, vector<1x2xf32>,
    %cst_20 = arith.constant 0.000000e+00 : f32
    %356 = vector.broadcast %cst_20 : f32 to vector<12x2xf32>
    %357 = vector.extract_strided_slice %1 {offsets = [0, 0, 0], sizes = [1, 16, 2], strides = [1, 1, 1]} : vector<4x16x2xf32> to vector<1x16x2xf32>
    %358 = vector.shape_cast %357 : vector<1x16x2xf32> to vector<16x2xf32>
    %c60 = arith.constant 60 : index
    %359 = memref.load %arg2[%c60] : memref<160xf32, #tpu.memory_space<smem>>
    %360 = vector.extract_strided_slice %358 {offsets = [0, 0], sizes = [12, 2], strides = [1, 1]} : vector<16x2xf32> to vector<12x2xf32>
    %361 = vector.broadcast %359 : f32 to vector<12x2xf32>
    %362 = arith.mulf %361, %360 : vector<12x2xf32>
    %363 = arith.addf %356, %362 : vector<12x2xf32>
    %c61 = arith.constant 61 : index
    %364 = memref.load %arg2[%c61] : memref<160xf32, #tpu.memory_space<smem>>
    %365 = vector.extract_strided_slice %358 {offsets = [1, 0], sizes = [12, 2], strides = [1, 1]} : vector<16x2xf32> to vector<12x2xf32>
    %366 = vector.broadcast %364 : f32 to vector<12x2xf32>
    %367 = arith.mulf %366, %365 : vector<12x2xf32>
    %368 = arith.addf %363, %367 : vector<12x2xf32>
    %c62 = arith.constant 62 : index
    %369 = memref.load %arg2[%c62] : memref<160xf32, #tpu.memory_space<smem>>
    %370 = vector.extract_strided_slice %358 {offsets = [2, 0], sizes = [12, 2], strides = [1, 1]} : vector<16x2xf32> to vector<12x2xf32>
    %371 = vector.broadcast %369 : f32 to vector<12x2xf32>
    %372 = arith.mulf %371, %370 : vector<12x2xf32>
    %373 = arith.addf %368, %372 : vector<12x2xf32>
    %c63 = arith.constant 63 : index
    %374 = memref.load %arg2[%c63] : memref<160xf32, #tpu.memory_space<smem>>
    %375 = vector.extract_strided_slice %358 {offsets = [3, 0], sizes = [12, 2], strides = [1, 1]} : vector<16x2xf32> to vector<12x2xf32>
    %376 = vector.broadcast %374 : f32 to vector<12x2xf32>
    %377 = arith.mulf %376, %375 : vector<12x2xf32>
    %378 = arith.addf %373, %377 : vector<12x2xf32>
    %c64 = arith.constant 64 : index
    %379 = memref.load %arg2[%c64] : memref<160xf32, #tpu.memory_space<smem>>
    %380 = vector.extract_strided_slice %358 {offsets = [4, 0], sizes = [12, 2], strides = [1, 1]} : vector<16x2xf32> to vector<12x2xf32>
    %381 = vector.broadcast %379 : f32 to vector<12x2xf32>
    %382 = arith.mulf %381, %380 : vector<12x2xf32>
    %383 = arith.addf %378, %382 : vector<12x2xf32>
    %384 = vector.extract_strided_slice %1 {offsets = [1, 0, 0], sizes = [1, 16, 2], strides = [1, 1, 1]} : vector<4x16x2xf32> to vector<1x16x2xf32>
    %385 = vector.shape_cast %384 : vector<1x16x2xf32> to vector<16x2xf32>
    %c65 = arith.constant 65 : index
    %386 = memref.load %arg2[%c65] : memref<160xf32, #tpu.memory_space<smem>>
    %387 = vector.extract_strided_slice %385 {offsets = [0, 0], sizes = [12, 2], strides = [1, 1]} : vector<16x2xf32> to vector<12x2xf32>
    %388 = vector.broadcast %386 : f32 to vector<12x2xf32>
    %389 = arith.mulf %388, %387 : vector<12x2xf32>
    %390 = arith.addf %383, %389 : vector<12x2xf32>
    %c66 = arith.constant 66 : index
    %391 = memref.load %arg2[%c66] : memref<160xf32, #tpu.memory_space<smem>>
    %392 = vector.extract_strided_slice %385 {offsets = [1, 0], sizes = [12, 2], strides = [1, 1]} : vector<16x2xf32> to vector<12x2xf32>
    %393 = vector.broadcast %391 : f32 to vector<12x2xf32>
    %394 = arith.mulf %393, %392 : vector<12x2xf32>
    %395 = arith.addf %390, %394 : vector<12x2xf32>
    %c67 = arith.constant 67 : index
    %396 = memref.load %arg2[%c67] : memref<160xf32, #tpu.memory_space<smem>>
    %397 = vector.extract_strided_slice %385 {offsets = [2, 0], sizes = [12, 2], strides = [1, 1]} : vector<16x2xf32> to vector<12x2xf32>
    %398 = vector.broadcast %396 : f32 to vector<12x2xf32>
    %399 = arith.mulf %398, %397 : vector<12x2xf32>
    %400 = arith.addf %395, %399 : vector<12x2xf32>
    %c68 = arith.constant 68 : index
    %401 = memref.load %arg2[%c68] : memref<160xf32, #tpu.memory_space<smem>>
    %402 = vector.extract_strided_slice %385 {offsets = [3, 0], sizes = [12, 2], strides = [1, 1]} : vector<16x2xf32> to vector<12x2xf32>
    %403 = vector.broadcast %401 : f32 to vector<12x2xf32>
    %404 = arith.mulf %403, %402 : vector<12x2xf32>
    %405 = arith.addf %400, %404 : vector<12x2xf32>
    %c69 = arith.constant 69 : index
    %406 = memref.load %arg2[%c69] : memref<160xf32, #tpu.memory_space<smem>>
    %407 = vector.extract_strided_slice %385 {offsets = [4, 0], sizes = [12, 2], strides = [1, 1]} : vector<16x2xf32> to vector<12x2xf32>
    %408 = vector.broadcast %406 : f32 to vector<12x2xf32>
    %409 = arith.mulf %408, %407 : vector<12x2xf32>
    %410 = arith.addf %405, %409 : vector<12x2xf32>
    %411 = vector.extract_strided_slice %1 {offsets = [2, 0, 0], sizes = [1, 16, 2], strides = [1, 1, 1]} : vector<4x16x2xf32> to vector<1x16x2xf32>
    %412 = vector.shape_cast %411 : vector<1x16x2xf32> to vector<16x2xf32>
    %c70 = arith.constant 70 : index
    %413 = memref.load %arg2[%c70] : memref<160xf32, #tpu.memory_space<smem>>
    %414 = vector.extract_strided_slice %412 {offsets = [0, 0], sizes = [12, 2], strides = [1, 1]} : vector<16x2xf32> to vector<12x2xf32>
    %415 = vector.broadcast %413 : f32 to vector<12x2xf32>
    %416 = arith.mulf %415, %414 : vector<12x2xf32>
    %417 = arith.addf %410, %416 : vector<12x2xf32>
    %c71 = arith.constant 71 : index
    %418 = memref.load %arg2[%c71] : memref<160xf32, #tpu.memory_space<smem>>
    %419 = vector.extract_strided_slice %412 {offsets = [1, 0], sizes = [12, 2], strides = [1, 1]} : vector<16x2xf32> to vector<12x2xf32>
    %420 = vector.broadcast %418 : f32 to vector<12x2xf32>
    %421 = arith.mulf %420, %419 : vector<12x2xf32>
    %422 = arith.addf %417, %421 : vector<12x2xf32>
    %c72 = arith.constant 72 : index
    %423 = memref.load %arg2[%c72] : memref<160xf32, #tpu.memory_space<smem>>
    %424 = vector.extract_strided_slice %412 {offsets = [2, 0], sizes = [12, 2], strides = [1, 1]} : vector<16x2xf32> to vector<12x2xf32>
    %425 = vector.broadcast %423 : f32 to vector<12x2xf32>
    %426 = arith.mulf %425, %424 : vector<12x2xf32>
    %427 = arith.addf %422, %426 : vector<12x2xf32>
    %c73 = arith.constant 73 : index
    %428 = memref.load %arg2[%c73] : memref<160xf32, #tpu.memory_space<smem>>
    %429 = vector.extract_strided_slice %412 {offsets = [3, 0], sizes = [12, 2], strides = [1, 1]} : vector<16x2xf32> to vector<12x2xf32>
    %430 = vector.broadcast %428 : f32 to vector<12x2xf32>
    %431 = arith.mulf %430, %429 : vector<12x2xf32>
    %432 = arith.addf %427, %431 : vector<12x2xf32>
    %c74 = arith.constant 74 : index
    %433 = memref.load %arg2[%c74] : memref<160xf32, #tpu.memory_space<smem>>
    %434 = vector.extract_strided_slice %412 {offsets = [4, 0], sizes = [12, 2], strides = [1, 1]} : vector<16x2xf32> to vector<12x2xf32>
    %435 = vector.broadcast %433 : f32 to vector<12x2xf32>
    %436 = arith.mulf %435, %434 : vector<12x2xf32>
    %437 = arith.addf %432, %436 : vector<12x2xf32>
    %438 = vector.extract_strided_slice %1 {offsets = [3, 0, 0], sizes = [1, 16, 2], strides = [1, 1, 1]} : vector<4x16x2xf32> to vector<1x16x2xf32>
    %439 = vector.shape_cast %438 : vector<1x16x2xf32> to vector<16x2xf32>
    %c75 = arith.constant 75 : index
    %440 = memref.load %arg2[%c75] : memref<160xf32, #tpu.memory_space<smem>>
    %441 = vector.extract_strided_slice %439 {offsets = [0, 0], sizes = [12, 2], strides = [1, 1]} : vector<16x2xf32> to vector<12x2xf32>
    %442 = vector.broadcast %440 : f32 to vector<12x2xf32>
    %443 = arith.mulf %442, %441 : vector<12x2xf32>
    %444 = arith.addf %437, %443 : vector<12x2xf32>
    %c76 = arith.constant 76 : index
    %445 = memref.load %arg2[%c76] : memref<160xf32, #tpu.memory_space<smem>>
    %446 = vector.extract_strided_slice %439 {offsets = [1, 0], sizes = [12, 2], strides = [1, 1]} : vector<16x2xf32> to vector<12x2xf32>
    %447 = vector.broadcast %445 : f32 to vector<12x2xf32>
    %448 = arith.mulf %447, %446 : vector<12x2xf32>
    %449 = arith.addf %444, %448 : vector<12x2xf32>
    %c77 = arith.constant 77 : index
    %450 = memref.load %arg2[%c77] : memref<160xf32, #tpu.memory_space<smem>>
    %451 = vector.extract_strided_slice %439 {offsets = [2, 0], sizes = [12, 2], strides = [1, 1]} : vector<16x2xf32> to vector<12x2xf32>
    %452 = vector.broadcast %450 : f32 to vector<12x2xf32>
    %453 = arith.mulf %452, %451 : vector<12x2xf32>
    %454 = arith.addf %449, %453 : vector<12x2xf32>
    %c78 = arith.constant 78 : index
    %455 = memref.load %arg2[%c78] : memref<160xf32, #tpu.memory_space<smem>>
    %456 = vector.extract_strided_slice %439 {offsets = [3, 0], sizes = [12, 2], strides = [1, 1]} : vector<16x2xf32> to vector<12x2xf32>
    %457 = vector.broadcast %455 : f32 to vector<12x2xf32>
    %458 = arith.mulf %457, %456 : vector<12x2xf32>
    %459 = arith.addf %454, %458 : vector<12x2xf32>
    %c79 = arith.constant 79 : index
    %460 = memref.load %arg2[%c79] : memref<160xf32, #tpu.memory_space<smem>>
    %461 = vector.extract_strided_slice %439 {offsets = [4, 0], sizes = [12, 2], strides = [1, 1]} : vector<16x2xf32> to vector<12x2xf32>
    %462 = vector.broadcast %460 : f32 to vector<12x2xf32>
    %463 = arith.mulf %462, %461 : vector<12x2xf32>
    %464 = arith.addf %459, %463 : vector<12x2xf32>
    %c3_21 = arith.constant 3 : index
    %465 = memref.load %arg3[%c3_21] : memref<8xf32, #tpu.memory_space<smem>>
    %466 = vector.broadcast %465 : f32 to vector<12x2xf32>
    %467 = arith.addf %464, %466 : vector<12x2xf32>
    %cst_22 = arith.constant 0.000000e+00 : f32
    %468 = vector.broadcast %cst_22 : f32 to vector<12x2xf32>
    %469 = arith.maximumf %467, %468 : vector<12x2xf32>
    %cst_23 = arith.constant dense<0xFF800000> : vector<2xf32>
    %470 = vector.multi_reduction <maximumf>, %469, %cst_23 [0] : vector<12x2xf32> to vector<2xf32>
    %c3_24 = arith.constant 3 : index
    %c0_25 = arith.constant 0 : index
    %471 = vector.load %arg4[%c3_24, %c0_25] : memref<8x2xf32, #tpu.memory_space<vmem>>, vector<1x2xf32>
    %472 = vector.shape_cast %471 : vector<1x2xf32> to vector<2xf32>
    %473 = vector.shape_cast %470 : vector<2xf32> to vector<1x2xf32>
    tpu.vector_store %arg4[%c3_24, %c0_25], %473 {strides = array<i32>} : memref<8x2xf32, #tpu.memory_space<vmem>>, vector<1x2xf32>,
    %cst_26 = arith.constant 0.000000e+00 : f32
    %474 = vector.broadcast %cst_26 : f32 to vector<12x2xf32>
    %475 = vector.extract_strided_slice %1 {offsets = [0, 0, 0], sizes = [1, 16, 2], strides = [1, 1, 1]} : vector<4x16x2xf32> to vector<1x16x2xf32>
    %476 = vector.shape_cast %475 : vector<1x16x2xf32> to vector<16x2xf32>
    %c80 = arith.constant 80 : index
    %477 = memref.load %arg2[%c80] : memref<160xf32, #tpu.memory_space<smem>>
    %478 = vector.extract_strided_slice %476 {offsets = [0, 0], sizes = [12, 2], strides = [1, 1]} : vector<16x2xf32> to vector<12x2xf32>
    %479 = vector.broadcast %477 : f32 to vector<12x2xf32>
    %480 = arith.mulf %479, %478 : vector<12x2xf32>
    %481 = arith.addf %474, %480 : vector<12x2xf32>
    %c81 = arith.constant 81 : index
    %482 = memref.load %arg2[%c81] : memref<160xf32, #tpu.memory_space<smem>>
    %483 = vector.extract_strided_slice %476 {offsets = [1, 0], sizes = [12, 2], strides = [1, 1]} : vector<16x2xf32> to vector<12x2xf32>
    %484 = vector.broadcast %482 : f32 to vector<12x2xf32>
    %485 = arith.mulf %484, %483 : vector<12x2xf32>
    %486 = arith.addf %481, %485 : vector<12x2xf32>
    %c82 = arith.constant 82 : index
    %487 = memref.load %arg2[%c82] : memref<160xf32, #tpu.memory_space<smem>>
    %488 = vector.extract_strided_slice %476 {offsets = [2, 0], sizes = [12, 2], strides = [1, 1]} : vector<16x2xf32> to vector<12x2xf32>
    %489 = vector.broadcast %487 : f32 to vector<12x2xf32>
    %490 = arith.mulf %489, %488 : vector<12x2xf32>
    %491 = arith.addf %486, %490 : vector<12x2xf32>
    %c83 = arith.constant 83 : index
    %492 = memref.load %arg2[%c83] : memref<160xf32, #tpu.memory_space<smem>>
    %493 = vector.extract_strided_slice %476 {offsets = [3, 0], sizes = [12, 2], strides = [1, 1]} : vector<16x2xf32> to vector<12x2xf32>
    %494 = vector.broadcast %492 : f32 to vector<12x2xf32>
    %495 = arith.mulf %494, %493 : vector<12x2xf32>
    %496 = arith.addf %491, %495 : vector<12x2xf32>
    %c84 = arith.constant 84 : index
    %497 = memref.load %arg2[%c84] : memref<160xf32, #tpu.memory_space<smem>>
    %498 = vector.extract_strided_slice %476 {offsets = [4, 0], sizes = [12, 2], strides = [1, 1]} : vector<16x2xf32> to vector<12x2xf32>
    %499 = vector.broadcast %497 : f32 to vector<12x2xf32>
    %500 = arith.mulf %499, %498 : vector<12x2xf32>
    %501 = arith.addf %496, %500 : vector<12x2xf32>
    %502 = vector.extract_strided_slice %1 {offsets = [1, 0, 0], sizes = [1, 16, 2], strides = [1, 1, 1]} : vector<4x16x2xf32> to vector<1x16x2xf32>
    %503 = vector.shape_cast %502 : vector<1x16x2xf32> to vector<16x2xf32>
    %c85 = arith.constant 85 : index
    %504 = memref.load %arg2[%c85] : memref<160xf32, #tpu.memory_space<smem>>
    %505 = vector.extract_strided_slice %503 {offsets = [0, 0], sizes = [12, 2], strides = [1, 1]} : vector<16x2xf32> to vector<12x2xf32>
    %506 = vector.broadcast %504 : f32 to vector<12x2xf32>
    %507 = arith.mulf %506, %505 : vector<12x2xf32>
    %508 = arith.addf %501, %507 : vector<12x2xf32>
    %c86 = arith.constant 86 : index
    %509 = memref.load %arg2[%c86] : memref<160xf32, #tpu.memory_space<smem>>
    %510 = vector.extract_strided_slice %503 {offsets = [1, 0], sizes = [12, 2], strides = [1, 1]} : vector<16x2xf32> to vector<12x2xf32>
    %511 = vector.broadcast %509 : f32 to vector<12x2xf32>
    %512 = arith.mulf %511, %510 : vector<12x2xf32>
    %513 = arith.addf %508, %512 : vector<12x2xf32>
    %c87 = arith.constant 87 : index
    %514 = memref.load %arg2[%c87] : memref<160xf32, #tpu.memory_space<smem>>
    %515 = vector.extract_strided_slice %503 {offsets = [2, 0], sizes = [12, 2], strides = [1, 1]} : vector<16x2xf32> to vector<12x2xf32>
    %516 = vector.broadcast %514 : f32 to vector<12x2xf32>
    %517 = arith.mulf %516, %515 : vector<12x2xf32>
    %518 = arith.addf %513, %517 : vector<12x2xf32>
    %c88 = arith.constant 88 : index
    %519 = memref.load %arg2[%c88] : memref<160xf32, #tpu.memory_space<smem>>
    %520 = vector.extract_strided_slice %503 {offsets = [3, 0], sizes = [12, 2], strides = [1, 1]} : vector<16x2xf32> to vector<12x2xf32>
    %521 = vector.broadcast %519 : f32 to vector<12x2xf32>
    %522 = arith.mulf %521, %520 : vector<12x2xf32>
    %523 = arith.addf %518, %522 : vector<12x2xf32>
    %c89 = arith.constant 89 : index
    %524 = memref.load %arg2[%c89] : memref<160xf32, #tpu.memory_space<smem>>
    %525 = vector.extract_strided_slice %503 {offsets = [4, 0], sizes = [12, 2], strides = [1, 1]} : vector<16x2xf32> to vector<12x2xf32>
    %526 = vector.broadcast %524 : f32 to vector<12x2xf32>
    %527 = arith.mulf %526, %525 : vector<12x2xf32>
    %528 = arith.addf %523, %527 : vector<12x2xf32>
    %529 = vector.extract_strided_slice %1 {offsets = [2, 0, 0], sizes = [1, 16, 2], strides = [1, 1, 1]} : vector<4x16x2xf32> to vector<1x16x2xf32>
    %530 = vector.shape_cast %529 : vector<1x16x2xf32> to vector<16x2xf32>
    %c90 = arith.constant 90 : index
    %531 = memref.load %arg2[%c90] : memref<160xf32, #tpu.memory_space<smem>>
    %532 = vector.extract_strided_slice %530 {offsets = [0, 0], sizes = [12, 2], strides = [1, 1]} : vector<16x2xf32> to vector<12x2xf32>
    %533 = vector.broadcast %531 : f32 to vector<12x2xf32>
    %534 = arith.mulf %533, %532 : vector<12x2xf32>
    %535 = arith.addf %528, %534 : vector<12x2xf32>
    %c91 = arith.constant 91 : index
    %536 = memref.load %arg2[%c91] : memref<160xf32, #tpu.memory_space<smem>>
    %537 = vector.extract_strided_slice %530 {offsets = [1, 0], sizes = [12, 2], strides = [1, 1]} : vector<16x2xf32> to vector<12x2xf32>
    %538 = vector.broadcast %536 : f32 to vector<12x2xf32>
    %539 = arith.mulf %538, %537 : vector<12x2xf32>
    %540 = arith.addf %535, %539 : vector<12x2xf32>
    %c92 = arith.constant 92 : index
    %541 = memref.load %arg2[%c92] : memref<160xf32, #tpu.memory_space<smem>>
    %542 = vector.extract_strided_slice %530 {offsets = [2, 0], sizes = [12, 2], strides = [1, 1]} : vector<16x2xf32> to vector<12x2xf32>
    %543 = vector.broadcast %541 : f32 to vector<12x2xf32>
    %544 = arith.mulf %543, %542 : vector<12x2xf32>
    %545 = arith.addf %540, %544 : vector<12x2xf32>
    %c93 = arith.constant 93 : index
    %546 = memref.load %arg2[%c93] : memref<160xf32, #tpu.memory_space<smem>>
    %547 = vector.extract_strided_slice %530 {offsets = [3, 0], sizes = [12, 2], strides = [1, 1]} : vector<16x2xf32> to vector<12x2xf32>
    %548 = vector.broadcast %546 : f32 to vector<12x2xf32>
    %549 = arith.mulf %548, %547 : vector<12x2xf32>
    %550 = arith.addf %545, %549 : vector<12x2xf32>
    %c94 = arith.constant 94 : index
    %551 = memref.load %arg2[%c94] : memref<160xf32, #tpu.memory_space<smem>>
    %552 = vector.extract_strided_slice %530 {offsets = [4, 0], sizes = [12, 2], strides = [1, 1]} : vector<16x2xf32> to vector<12x2xf32>
    %553 = vector.broadcast %551 : f32 to vector<12x2xf32>
    %554 = arith.mulf %553, %552 : vector<12x2xf32>
    %555 = arith.addf %550, %554 : vector<12x2xf32>
    %556 = vector.extract_strided_slice %1 {offsets = [3, 0, 0], sizes = [1, 16, 2], strides = [1, 1, 1]} : vector<4x16x2xf32> to vector<1x16x2xf32>
    %557 = vector.shape_cast %556 : vector<1x16x2xf32> to vector<16x2xf32>
    %c95 = arith.constant 95 : index
    %558 = memref.load %arg2[%c95] : memref<160xf32, #tpu.memory_space<smem>>
    %559 = vector.extract_strided_slice %557 {offsets = [0, 0], sizes = [12, 2], strides = [1, 1]} : vector<16x2xf32> to vector<12x2xf32>
    %560 = vector.broadcast %558 : f32 to vector<12x2xf32>
    %561 = arith.mulf %560, %559 : vector<12x2xf32>
    %562 = arith.addf %555, %561 : vector<12x2xf32>
    %c96 = arith.constant 96 : index
    %563 = memref.load %arg2[%c96] : memref<160xf32, #tpu.memory_space<smem>>
    %564 = vector.extract_strided_slice %557 {offsets = [1, 0], sizes = [12, 2], strides = [1, 1]} : vector<16x2xf32> to vector<12x2xf32>
    %565 = vector.broadcast %563 : f32 to vector<12x2xf32>
    %566 = arith.mulf %565, %564 : vector<12x2xf32>
    %567 = arith.addf %562, %566 : vector<12x2xf32>
    %c97 = arith.constant 97 : index
    %568 = memref.load %arg2[%c97] : memref<160xf32, #tpu.memory_space<smem>>
    %569 = vector.extract_strided_slice %557 {offsets = [2, 0], sizes = [12, 2], strides = [1, 1]} : vector<16x2xf32> to vector<12x2xf32>
    %570 = vector.broadcast %568 : f32 to vector<12x2xf32>
    %571 = arith.mulf %570, %569 : vector<12x2xf32>
    %572 = arith.addf %567, %571 : vector<12x2xf32>
    %c98 = arith.constant 98 : index
    %573 = memref.load %arg2[%c98] : memref<160xf32, #tpu.memory_space<smem>>
    %574 = vector.extract_strided_slice %557 {offsets = [3, 0], sizes = [12, 2], strides = [1, 1]} : vector<16x2xf32> to vector<12x2xf32>
    %575 = vector.broadcast %573 : f32 to vector<12x2xf32>
    %576 = arith.mulf %575, %574 : vector<12x2xf32>
    %577 = arith.addf %572, %576 : vector<12x2xf32>
    %c99 = arith.constant 99 : index
    %578 = memref.load %arg2[%c99] : memref<160xf32, #tpu.memory_space<smem>>
    %579 = vector.extract_strided_slice %557 {offsets = [4, 0], sizes = [12, 2], strides = [1, 1]} : vector<16x2xf32> to vector<12x2xf32>
    %580 = vector.broadcast %578 : f32 to vector<12x2xf32>
    %581 = arith.mulf %580, %579 : vector<12x2xf32>
    %582 = arith.addf %577, %581 : vector<12x2xf32>
    %c4_27 = arith.constant 4 : index
    %583 = memref.load %arg3[%c4_27] : memref<8xf32, #tpu.memory_space<smem>>
    %584 = vector.broadcast %583 : f32 to vector<12x2xf32>
    %585 = arith.addf %582, %584 : vector<12x2xf32>
    %cst_28 = arith.constant 0.000000e+00 : f32
    %586 = vector.broadcast %cst_28 : f32 to vector<12x2xf32>
    %587 = arith.maximumf %585, %586 : vector<12x2xf32>
    %cst_29 = arith.constant dense<0xFF800000> : vector<2xf32>
    %588 = vector.multi_reduction <maximumf>, %587, %cst_29 [0] : vector<12x2xf32> to vector<2xf32>
    %c4_30 = arith.constant 4 : index
    %c0_31 = arith.constant 0 : index
    %589 = vector.load %arg4[%c4_30, %c0_31] : memref<8x2xf32, #tpu.memory_space<vmem>>, vector<1x2xf32>
    %590 = vector.shape_cast %589 : vector<1x2xf32> to vector<2xf32>
    %591 = vector.shape_cast %588 : vector<2xf32> to vector<1x2xf32>
    tpu.vector_store %arg4[%c4_30, %c0_31], %591 {strides = array<i32>} : memref<8x2xf32, #tpu.memory_space<vmem>>, vector<1x2xf32>,
    %cst_32 = arith.constant 0.000000e+00 : f32
    %592 = vector.broadcast %cst_32 : f32 to vector<12x2xf32>
    %593 = vector.extract_strided_slice %1 {offsets = [0, 0, 0], sizes = [1, 16, 2], strides = [1, 1, 1]} : vector<4x16x2xf32> to vector<1x16x2xf32>
    %594 = vector.shape_cast %593 : vector<1x16x2xf32> to vector<16x2xf32>
    %c100 = arith.constant 100 : index
    %595 = memref.load %arg2[%c100] : memref<160xf32, #tpu.memory_space<smem>>
    %596 = vector.extract_strided_slice %594 {offsets = [0, 0], sizes = [12, 2], strides = [1, 1]} : vector<16x2xf32> to vector<12x2xf32>
    %597 = vector.broadcast %595 : f32 to vector<12x2xf32>
    %598 = arith.mulf %597, %596 : vector<12x2xf32>
    %599 = arith.addf %592, %598 : vector<12x2xf32>
    %c101 = arith.constant 101 : index
    %600 = memref.load %arg2[%c101] : memref<160xf32, #tpu.memory_space<smem>>
    %601 = vector.extract_strided_slice %594 {offsets = [1, 0], sizes = [12, 2], strides = [1, 1]} : vector<16x2xf32> to vector<12x2xf32>
    %602 = vector.broadcast %600 : f32 to vector<12x2xf32>
    %603 = arith.mulf %602, %601 : vector<12x2xf32>
    %604 = arith.addf %599, %603 : vector<12x2xf32>
    %c102 = arith.constant 102 : index
    %605 = memref.load %arg2[%c102] : memref<160xf32, #tpu.memory_space<smem>>
    %606 = vector.extract_strided_slice %594 {offsets = [2, 0], sizes = [12, 2], strides = [1, 1]} : vector<16x2xf32> to vector<12x2xf32>
    %607 = vector.broadcast %605 : f32 to vector<12x2xf32>
    %608 = arith.mulf %607, %606 : vector<12x2xf32>
    %609 = arith.addf %604, %608 : vector<12x2xf32>
    %c103 = arith.constant 103 : index
    %610 = memref.load %arg2[%c103] : memref<160xf32, #tpu.memory_space<smem>>
    %611 = vector.extract_strided_slice %594 {offsets = [3, 0], sizes = [12, 2], strides = [1, 1]} : vector<16x2xf32> to vector<12x2xf32>
    %612 = vector.broadcast %610 : f32 to vector<12x2xf32>
    %613 = arith.mulf %612, %611 : vector<12x2xf32>
    %614 = arith.addf %609, %613 : vector<12x2xf32>
    %c104 = arith.constant 104 : index
    %615 = memref.load %arg2[%c104] : memref<160xf32, #tpu.memory_space<smem>>
    %616 = vector.extract_strided_slice %594 {offsets = [4, 0], sizes = [12, 2], strides = [1, 1]} : vector<16x2xf32> to vector<12x2xf32>
    %617 = vector.broadcast %615 : f32 to vector<12x2xf32>
    %618 = arith.mulf %617, %616 : vector<12x2xf32>
    %619 = arith.addf %614, %618 : vector<12x2xf32>
    %620 = vector.extract_strided_slice %1 {offsets = [1, 0, 0], sizes = [1, 16, 2], strides = [1, 1, 1]} : vector<4x16x2xf32> to vector<1x16x2xf32>
    %621 = vector.shape_cast %620 : vector<1x16x2xf32> to vector<16x2xf32>
    %c105 = arith.constant 105 : index
    %622 = memref.load %arg2[%c105] : memref<160xf32, #tpu.memory_space<smem>>
    %623 = vector.extract_strided_slice %621 {offsets = [0, 0], sizes = [12, 2], strides = [1, 1]} : vector<16x2xf32> to vector<12x2xf32>
    %624 = vector.broadcast %622 : f32 to vector<12x2xf32>
    %625 = arith.mulf %624, %623 : vector<12x2xf32>
    %626 = arith.addf %619, %625 : vector<12x2xf32>
    %c106 = arith.constant 106 : index
    %627 = memref.load %arg2[%c106] : memref<160xf32, #tpu.memory_space<smem>>
    %628 = vector.extract_strided_slice %621 {offsets = [1, 0], sizes = [12, 2], strides = [1, 1]} : vector<16x2xf32> to vector<12x2xf32>
    %629 = vector.broadcast %627 : f32 to vector<12x2xf32>
    %630 = arith.mulf %629, %628 : vector<12x2xf32>
    %631 = arith.addf %626, %630 : vector<12x2xf32>
    %c107 = arith.constant 107 : index
    %632 = memref.load %arg2[%c107] : memref<160xf32, #tpu.memory_space<smem>>
    %633 = vector.extract_strided_slice %621 {offsets = [2, 0], sizes = [12, 2], strides = [1, 1]} : vector<16x2xf32> to vector<12x2xf32>
    %634 = vector.broadcast %632 : f32 to vector<12x2xf32>
    %635 = arith.mulf %634, %633 : vector<12x2xf32>
    %636 = arith.addf %631, %635 : vector<12x2xf32>
    %c108 = arith.constant 108 : index
    %637 = memref.load %arg2[%c108] : memref<160xf32, #tpu.memory_space<smem>>
    %638 = vector.extract_strided_slice %621 {offsets = [3, 0], sizes = [12, 2], strides = [1, 1]} : vector<16x2xf32> to vector<12x2xf32>
    %639 = vector.broadcast %637 : f32 to vector<12x2xf32>
    %640 = arith.mulf %639, %638 : vector<12x2xf32>
    %641 = arith.addf %636, %640 : vector<12x2xf32>
    %c109 = arith.constant 109 : index
    %642 = memref.load %arg2[%c109] : memref<160xf32, #tpu.memory_space<smem>>
    %643 = vector.extract_strided_slice %621 {offsets = [4, 0], sizes = [12, 2], strides = [1, 1]} : vector<16x2xf32> to vector<12x2xf32>
    %644 = vector.broadcast %642 : f32 to vector<12x2xf32>
    %645 = arith.mulf %644, %643 : vector<12x2xf32>
    %646 = arith.addf %641, %645 : vector<12x2xf32>
    %647 = vector.extract_strided_slice %1 {offsets = [2, 0, 0], sizes = [1, 16, 2], strides = [1, 1, 1]} : vector<4x16x2xf32> to vector<1x16x2xf32>
    %648 = vector.shape_cast %647 : vector<1x16x2xf32> to vector<16x2xf32>
    %c110 = arith.constant 110 : index
    %649 = memref.load %arg2[%c110] : memref<160xf32, #tpu.memory_space<smem>>
    %650 = vector.extract_strided_slice %648 {offsets = [0, 0], sizes = [12, 2], strides = [1, 1]} : vector<16x2xf32> to vector<12x2xf32>
    %651 = vector.broadcast %649 : f32 to vector<12x2xf32>
    %652 = arith.mulf %651, %650 : vector<12x2xf32>
    %653 = arith.addf %646, %652 : vector<12x2xf32>
    %c111 = arith.constant 111 : index
    %654 = memref.load %arg2[%c111] : memref<160xf32, #tpu.memory_space<smem>>
    %655 = vector.extract_strided_slice %648 {offsets = [1, 0], sizes = [12, 2], strides = [1, 1]} : vector<16x2xf32> to vector<12x2xf32>
    %656 = vector.broadcast %654 : f32 to vector<12x2xf32>
    %657 = arith.mulf %656, %655 : vector<12x2xf32>
    %658 = arith.addf %653, %657 : vector<12x2xf32>
    %c112 = arith.constant 112 : index
    %659 = memref.load %arg2[%c112] : memref<160xf32, #tpu.memory_space<smem>>
    %660 = vector.extract_strided_slice %648 {offsets = [2, 0], sizes = [12, 2], strides = [1, 1]} : vector<16x2xf32> to vector<12x2xf32>
    %661 = vector.broadcast %659 : f32 to vector<12x2xf32>
    %662 = arith.mulf %661, %660 : vector<12x2xf32>
    %663 = arith.addf %658, %662 : vector<12x2xf32>
    %c113 = arith.constant 113 : index
    %664 = memref.load %arg2[%c113] : memref<160xf32, #tpu.memory_space<smem>>
    %665 = vector.extract_strided_slice %648 {offsets = [3, 0], sizes = [12, 2], strides = [1, 1]} : vector<16x2xf32> to vector<12x2xf32>
    %666 = vector.broadcast %664 : f32 to vector<12x2xf32>
    %667 = arith.mulf %666, %665 : vector<12x2xf32>
    %668 = arith.addf %663, %667 : vector<12x2xf32>
    %c114 = arith.constant 114 : index
    %669 = memref.load %arg2[%c114] : memref<160xf32, #tpu.memory_space<smem>>
    %670 = vector.extract_strided_slice %648 {offsets = [4, 0], sizes = [12, 2], strides = [1, 1]} : vector<16x2xf32> to vector<12x2xf32>
    %671 = vector.broadcast %669 : f32 to vector<12x2xf32>
    %672 = arith.mulf %671, %670 : vector<12x2xf32>
    %673 = arith.addf %668, %672 : vector<12x2xf32>
    %674 = vector.extract_strided_slice %1 {offsets = [3, 0, 0], sizes = [1, 16, 2], strides = [1, 1, 1]} : vector<4x16x2xf32> to vector<1x16x2xf32>
    %675 = vector.shape_cast %674 : vector<1x16x2xf32> to vector<16x2xf32>
    %c115 = arith.constant 115 : index
    %676 = memref.load %arg2[%c115] : memref<160xf32, #tpu.memory_space<smem>>
    %677 = vector.extract_strided_slice %675 {offsets = [0, 0], sizes = [12, 2], strides = [1, 1]} : vector<16x2xf32> to vector<12x2xf32>
    %678 = vector.broadcast %676 : f32 to vector<12x2xf32>
    %679 = arith.mulf %678, %677 : vector<12x2xf32>
    %680 = arith.addf %673, %679 : vector<12x2xf32>
    %c116 = arith.constant 116 : index
    %681 = memref.load %arg2[%c116] : memref<160xf32, #tpu.memory_space<smem>>
    %682 = vector.extract_strided_slice %675 {offsets = [1, 0], sizes = [12, 2], strides = [1, 1]} : vector<16x2xf32> to vector<12x2xf32>
    %683 = vector.broadcast %681 : f32 to vector<12x2xf32>
    %684 = arith.mulf %683, %682 : vector<12x2xf32>
    %685 = arith.addf %680, %684 : vector<12x2xf32>
    %c117 = arith.constant 117 : index
    %686 = memref.load %arg2[%c117] : memref<160xf32, #tpu.memory_space<smem>>
    %687 = vector.extract_strided_slice %675 {offsets = [2, 0], sizes = [12, 2], strides = [1, 1]} : vector<16x2xf32> to vector<12x2xf32>
    %688 = vector.broadcast %686 : f32 to vector<12x2xf32>
    %689 = arith.mulf %688, %687 : vector<12x2xf32>
    %690 = arith.addf %685, %689 : vector<12x2xf32>
    %c118 = arith.constant 118 : index
    %691 = memref.load %arg2[%c118] : memref<160xf32, #tpu.memory_space<smem>>
    %692 = vector.extract_strided_slice %675 {offsets = [3, 0], sizes = [12, 2], strides = [1, 1]} : vector<16x2xf32> to vector<12x2xf32>
    %693 = vector.broadcast %691 : f32 to vector<12x2xf32>
    %694 = arith.mulf %693, %692 : vector<12x2xf32>
    %695 = arith.addf %690, %694 : vector<12x2xf32>
    %c119 = arith.constant 119 : index
    %696 = memref.load %arg2[%c119] : memref<160xf32, #tpu.memory_space<smem>>
    %697 = vector.extract_strided_slice %675 {offsets = [4, 0], sizes = [12, 2], strides = [1, 1]} : vector<16x2xf32> to vector<12x2xf32>
    %698 = vector.broadcast %696 : f32 to vector<12x2xf32>
    %699 = arith.mulf %698, %697 : vector<12x2xf32>
    %700 = arith.addf %695, %699 : vector<12x2xf32>
    %c5_33 = arith.constant 5 : index
    %701 = memref.load %arg3[%c5_33] : memref<8xf32, #tpu.memory_space<smem>>
    %702 = vector.broadcast %701 : f32 to vector<12x2xf32>
    %703 = arith.addf %700, %702 : vector<12x2xf32>
    %cst_34 = arith.constant 0.000000e+00 : f32
    %704 = vector.broadcast %cst_34 : f32 to vector<12x2xf32>
    %705 = arith.maximumf %703, %704 : vector<12x2xf32>
    %cst_35 = arith.constant dense<0xFF800000> : vector<2xf32>
    %706 = vector.multi_reduction <maximumf>, %705, %cst_35 [0] : vector<12x2xf32> to vector<2xf32>
    %c5_36 = arith.constant 5 : index
    %c0_37 = arith.constant 0 : index
    %707 = vector.load %arg4[%c5_36, %c0_37] : memref<8x2xf32, #tpu.memory_space<vmem>>, vector<1x2xf32>
    %708 = vector.shape_cast %707 : vector<1x2xf32> to vector<2xf32>
    %709 = vector.shape_cast %706 : vector<2xf32> to vector<1x2xf32>
    tpu.vector_store %arg4[%c5_36, %c0_37], %709 {strides = array<i32>} : memref<8x2xf32, #tpu.memory_space<vmem>>, vector<1x2xf32>,
    %cst_38 = arith.constant 0.000000e+00 : f32
    %710 = vector.broadcast %cst_38 : f32 to vector<12x2xf32>
    %711 = vector.extract_strided_slice %1 {offsets = [0, 0, 0], sizes = [1, 16, 2], strides = [1, 1, 1]} : vector<4x16x2xf32> to vector<1x16x2xf32>
    %712 = vector.shape_cast %711 : vector<1x16x2xf32> to vector<16x2xf32>
    %c120 = arith.constant 120 : index
    %713 = memref.load %arg2[%c120] : memref<160xf32, #tpu.memory_space<smem>>
    %714 = vector.extract_strided_slice %712 {offsets = [0, 0], sizes = [12, 2], strides = [1, 1]} : vector<16x2xf32> to vector<12x2xf32>
    %715 = vector.broadcast %713 : f32 to vector<12x2xf32>
    %716 = arith.mulf %715, %714 : vector<12x2xf32>
    %717 = arith.addf %710, %716 : vector<12x2xf32>
    %c121 = arith.constant 121 : index
    %718 = memref.load %arg2[%c121] : memref<160xf32, #tpu.memory_space<smem>>
    %719 = vector.extract_strided_slice %712 {offsets = [1, 0], sizes = [12, 2], strides = [1, 1]} : vector<16x2xf32> to vector<12x2xf32>
    %720 = vector.broadcast %718 : f32 to vector<12x2xf32>
    %721 = arith.mulf %720, %719 : vector<12x2xf32>
    %722 = arith.addf %717, %721 : vector<12x2xf32>
    %c122 = arith.constant 122 : index
    %723 = memref.load %arg2[%c122] : memref<160xf32, #tpu.memory_space<smem>>
    %724 = vector.extract_strided_slice %712 {offsets = [2, 0], sizes = [12, 2], strides = [1, 1]} : vector<16x2xf32> to vector<12x2xf32>
    %725 = vector.broadcast %723 : f32 to vector<12x2xf32>
    %726 = arith.mulf %725, %724 : vector<12x2xf32>
    %727 = arith.addf %722, %726 : vector<12x2xf32>
    %c123 = arith.constant 123 : index
    %728 = memref.load %arg2[%c123] : memref<160xf32, #tpu.memory_space<smem>>
    %729 = vector.extract_strided_slice %712 {offsets = [3, 0], sizes = [12, 2], strides = [1, 1]} : vector<16x2xf32> to vector<12x2xf32>
    %730 = vector.broadcast %728 : f32 to vector<12x2xf32>
    %731 = arith.mulf %730, %729 : vector<12x2xf32>
    %732 = arith.addf %727, %731 : vector<12x2xf32>
    %c124 = arith.constant 124 : index
    %733 = memref.load %arg2[%c124] : memref<160xf32, #tpu.memory_space<smem>>
    %734 = vector.extract_strided_slice %712 {offsets = [4, 0], sizes = [12, 2], strides = [1, 1]} : vector<16x2xf32> to vector<12x2xf32>
    %735 = vector.broadcast %733 : f32 to vector<12x2xf32>
    %736 = arith.mulf %735, %734 : vector<12x2xf32>
    %737 = arith.addf %732, %736 : vector<12x2xf32>
    %738 = vector.extract_strided_slice %1 {offsets = [1, 0, 0], sizes = [1, 16, 2], strides = [1, 1, 1]} : vector<4x16x2xf32> to vector<1x16x2xf32>
    %739 = vector.shape_cast %738 : vector<1x16x2xf32> to vector<16x2xf32>
    %c125 = arith.constant 125 : index
    %740 = memref.load %arg2[%c125] : memref<160xf32, #tpu.memory_space<smem>>
    %741 = vector.extract_strided_slice %739 {offsets = [0, 0], sizes = [12, 2], strides = [1, 1]} : vector<16x2xf32> to vector<12x2xf32>
    %742 = vector.broadcast %740 : f32 to vector<12x2xf32>
    %743 = arith.mulf %742, %741 : vector<12x2xf32>
    %744 = arith.addf %737, %743 : vector<12x2xf32>
    %c126 = arith.constant 126 : index
    %745 = memref.load %arg2[%c126] : memref<160xf32, #tpu.memory_space<smem>>
    %746 = vector.extract_strided_slice %739 {offsets = [1, 0], sizes = [12, 2], strides = [1, 1]} : vector<16x2xf32> to vector<12x2xf32>
    %747 = vector.broadcast %745 : f32 to vector<12x2xf32>
    %748 = arith.mulf %747, %746 : vector<12x2xf32>
    %749 = arith.addf %744, %748 : vector<12x2xf32>
    %c127 = arith.constant 127 : index
    %750 = memref.load %arg2[%c127] : memref<160xf32, #tpu.memory_space<smem>>
    %751 = vector.extract_strided_slice %739 {offsets = [2, 0], sizes = [12, 2], strides = [1, 1]} : vector<16x2xf32> to vector<12x2xf32>
    %752 = vector.broadcast %750 : f32 to vector<12x2xf32>
    %753 = arith.mulf %752, %751 : vector<12x2xf32>
    %754 = arith.addf %749, %753 : vector<12x2xf32>
    %c128 = arith.constant 128 : index
    %755 = memref.load %arg2[%c128] : memref<160xf32, #tpu.memory_space<smem>>
    %756 = vector.extract_strided_slice %739 {offsets = [3, 0], sizes = [12, 2], strides = [1, 1]} : vector<16x2xf32> to vector<12x2xf32>
    %757 = vector.broadcast %755 : f32 to vector<12x2xf32>
    %758 = arith.mulf %757, %756 : vector<12x2xf32>
    %759 = arith.addf %754, %758 : vector<12x2xf32>
    %c129 = arith.constant 129 : index
    %760 = memref.load %arg2[%c129] : memref<160xf32, #tpu.memory_space<smem>>
    %761 = vector.extract_strided_slice %739 {offsets = [4, 0], sizes = [12, 2], strides = [1, 1]} : vector<16x2xf32> to vector<12x2xf32>
    %762 = vector.broadcast %760 : f32 to vector<12x2xf32>
    %763 = arith.mulf %762, %761 : vector<12x2xf32>
    %764 = arith.addf %759, %763 : vector<12x2xf32>
    %765 = vector.extract_strided_slice %1 {offsets = [2, 0, 0], sizes = [1, 16, 2], strides = [1, 1, 1]} : vector<4x16x2xf32> to vector<1x16x2xf32>
    %766 = vector.shape_cast %765 : vector<1x16x2xf32> to vector<16x2xf32>
    %c130 = arith.constant 130 : index
    %767 = memref.load %arg2[%c130] : memref<160xf32, #tpu.memory_space<smem>>
    %768 = vector.extract_strided_slice %766 {offsets = [0, 0], sizes = [12, 2], strides = [1, 1]} : vector<16x2xf32> to vector<12x2xf32>
    %769 = vector.broadcast %767 : f32 to vector<12x2xf32>
    %770 = arith.mulf %769, %768 : vector<12x2xf32>
    %771 = arith.addf %764, %770 : vector<12x2xf32>
    %c131 = arith.constant 131 : index
    %772 = memref.load %arg2[%c131] : memref<160xf32, #tpu.memory_space<smem>>
    %773 = vector.extract_strided_slice %766 {offsets = [1, 0], sizes = [12, 2], strides = [1, 1]} : vector<16x2xf32> to vector<12x2xf32>
    %774 = vector.broadcast %772 : f32 to vector<12x2xf32>
    %775 = arith.mulf %774, %773 : vector<12x2xf32>
    %776 = arith.addf %771, %775 : vector<12x2xf32>
    %c132 = arith.constant 132 : index
    %777 = memref.load %arg2[%c132] : memref<160xf32, #tpu.memory_space<smem>>
    %778 = vector.extract_strided_slice %766 {offsets = [2, 0], sizes = [12, 2], strides = [1, 1]} : vector<16x2xf32> to vector<12x2xf32>
    %779 = vector.broadcast %777 : f32 to vector<12x2xf32>
    %780 = arith.mulf %779, %778 : vector<12x2xf32>
    %781 = arith.addf %776, %780 : vector<12x2xf32>
    %c133 = arith.constant 133 : index
    %782 = memref.load %arg2[%c133] : memref<160xf32, #tpu.memory_space<smem>>
    %783 = vector.extract_strided_slice %766 {offsets = [3, 0], sizes = [12, 2], strides = [1, 1]} : vector<16x2xf32> to vector<12x2xf32>
    %784 = vector.broadcast %782 : f32 to vector<12x2xf32>
    %785 = arith.mulf %784, %783 : vector<12x2xf32>
    %786 = arith.addf %781, %785 : vector<12x2xf32>
    %c134 = arith.constant 134 : index
    %787 = memref.load %arg2[%c134] : memref<160xf32, #tpu.memory_space<smem>>
    %788 = vector.extract_strided_slice %766 {offsets = [4, 0], sizes = [12, 2], strides = [1, 1]} : vector<16x2xf32> to vector<12x2xf32>
    %789 = vector.broadcast %787 : f32 to vector<12x2xf32>
    %790 = arith.mulf %789, %788 : vector<12x2xf32>
    %791 = arith.addf %786, %790 : vector<12x2xf32>
    %792 = vector.extract_strided_slice %1 {offsets = [3, 0, 0], sizes = [1, 16, 2], strides = [1, 1, 1]} : vector<4x16x2xf32> to vector<1x16x2xf32>
    %793 = vector.shape_cast %792 : vector<1x16x2xf32> to vector<16x2xf32>
    %c135 = arith.constant 135 : index
    %794 = memref.load %arg2[%c135] : memref<160xf32, #tpu.memory_space<smem>>
    %795 = vector.extract_strided_slice %793 {offsets = [0, 0], sizes = [12, 2], strides = [1, 1]} : vector<16x2xf32> to vector<12x2xf32>
    %796 = vector.broadcast %794 : f32 to vector<12x2xf32>
    %797 = arith.mulf %796, %795 : vector<12x2xf32>
    %798 = arith.addf %791, %797 : vector<12x2xf32>
    %c136 = arith.constant 136 : index
    %799 = memref.load %arg2[%c136] : memref<160xf32, #tpu.memory_space<smem>>
    %800 = vector.extract_strided_slice %793 {offsets = [1, 0], sizes = [12, 2], strides = [1, 1]} : vector<16x2xf32> to vector<12x2xf32>
    %801 = vector.broadcast %799 : f32 to vector<12x2xf32>
    %802 = arith.mulf %801, %800 : vector<12x2xf32>
    %803 = arith.addf %798, %802 : vector<12x2xf32>
    %c137 = arith.constant 137 : index
    %804 = memref.load %arg2[%c137] : memref<160xf32, #tpu.memory_space<smem>>
    %805 = vector.extract_strided_slice %793 {offsets = [2, 0], sizes = [12, 2], strides = [1, 1]} : vector<16x2xf32> to vector<12x2xf32>
    %806 = vector.broadcast %804 : f32 to vector<12x2xf32>
    %807 = arith.mulf %806, %805 : vector<12x2xf32>
    %808 = arith.addf %803, %807 : vector<12x2xf32>
    %c138 = arith.constant 138 : index
    %809 = memref.load %arg2[%c138] : memref<160xf32, #tpu.memory_space<smem>>
    %810 = vector.extract_strided_slice %793 {offsets = [3, 0], sizes = [12, 2], strides = [1, 1]} : vector<16x2xf32> to vector<12x2xf32>
    %811 = vector.broadcast %809 : f32 to vector<12x2xf32>
    %812 = arith.mulf %811, %810 : vector<12x2xf32>
    %813 = arith.addf %808, %812 : vector<12x2xf32>
    %c139 = arith.constant 139 : index
    %814 = memref.load %arg2[%c139] : memref<160xf32, #tpu.memory_space<smem>>
    %815 = vector.extract_strided_slice %793 {offsets = [4, 0], sizes = [12, 2], strides = [1, 1]} : vector<16x2xf32> to vector<12x2xf32>
    %816 = vector.broadcast %814 : f32 to vector<12x2xf32>
    %817 = arith.mulf %816, %815 : vector<12x2xf32>
    %818 = arith.addf %813, %817 : vector<12x2xf32>
    %c6_39 = arith.constant 6 : index
    %819 = memref.load %arg3[%c6_39] : memref<8xf32, #tpu.memory_space<smem>>
    %820 = vector.broadcast %819 : f32 to vector<12x2xf32>
    %821 = arith.addf %818, %820 : vector<12x2xf32>
    %cst_40 = arith.constant 0.000000e+00 : f32
    %822 = vector.broadcast %cst_40 : f32 to vector<12x2xf32>
    %823 = arith.maximumf %821, %822 : vector<12x2xf32>
    %cst_41 = arith.constant dense<0xFF800000> : vector<2xf32>
    %824 = vector.multi_reduction <maximumf>, %823, %cst_41 [0] : vector<12x2xf32> to vector<2xf32>
    %c6_42 = arith.constant 6 : index
    %c0_43 = arith.constant 0 : index
    %825 = vector.load %arg4[%c6_42, %c0_43] : memref<8x2xf32, #tpu.memory_space<vmem>>, vector<1x2xf32>
    %826 = vector.shape_cast %825 : vector<1x2xf32> to vector<2xf32>
    %827 = vector.shape_cast %824 : vector<2xf32> to vector<1x2xf32>
    tpu.vector_store %arg4[%c6_42, %c0_43], %827 {strides = array<i32>} : memref<8x2xf32, #tpu.memory_space<vmem>>, vector<1x2xf32>,
    %cst_44 = arith.constant 0.000000e+00 : f32
    %828 = vector.broadcast %cst_44 : f32 to vector<12x2xf32>
    %829 = vector.extract_strided_slice %1 {offsets = [0, 0, 0], sizes = [1, 16, 2], strides = [1, 1, 1]} : vector<4x16x2xf32> to vector<1x16x2xf32>
    %830 = vector.shape_cast %829 : vector<1x16x2xf32> to vector<16x2xf32>
    %c140 = arith.constant 140 : index
    %831 = memref.load %arg2[%c140] : memref<160xf32, #tpu.memory_space<smem>>
    %832 = vector.extract_strided_slice %830 {offsets = [0, 0], sizes = [12, 2], strides = [1, 1]} : vector<16x2xf32> to vector<12x2xf32>
    %833 = vector.broadcast %831 : f32 to vector<12x2xf32>
    %834 = arith.mulf %833, %832 : vector<12x2xf32>
    %835 = arith.addf %828, %834 : vector<12x2xf32>
    %c141 = arith.constant 141 : index
    %836 = memref.load %arg2[%c141] : memref<160xf32, #tpu.memory_space<smem>>
    %837 = vector.extract_strided_slice %830 {offsets = [1, 0], sizes = [12, 2], strides = [1, 1]} : vector<16x2xf32> to vector<12x2xf32>
    %838 = vector.broadcast %836 : f32 to vector<12x2xf32>
    %839 = arith.mulf %838, %837 : vector<12x2xf32>
    %840 = arith.addf %835, %839 : vector<12x2xf32>
    %c142 = arith.constant 142 : index
    %841 = memref.load %arg2[%c142] : memref<160xf32, #tpu.memory_space<smem>>
    %842 = vector.extract_strided_slice %830 {offsets = [2, 0], sizes = [12, 2], strides = [1, 1]} : vector<16x2xf32> to vector<12x2xf32>
    %843 = vector.broadcast %841 : f32 to vector<12x2xf32>
    %844 = arith.mulf %843, %842 : vector<12x2xf32>
    %845 = arith.addf %840, %844 : vector<12x2xf32>
    %c143 = arith.constant 143 : index
    %846 = memref.load %arg2[%c143] : memref<160xf32, #tpu.memory_space<smem>>
    %847 = vector.extract_strided_slice %830 {offsets = [3, 0], sizes = [12, 2], strides = [1, 1]} : vector<16x2xf32> to vector<12x2xf32>
    %848 = vector.broadcast %846 : f32 to vector<12x2xf32>
    %849 = arith.mulf %848, %847 : vector<12x2xf32>
    %850 = arith.addf %845, %849 : vector<12x2xf32>
    %c144 = arith.constant 144 : index
    %851 = memref.load %arg2[%c144] : memref<160xf32, #tpu.memory_space<smem>>
    %852 = vector.extract_strided_slice %830 {offsets = [4, 0], sizes = [12, 2], strides = [1, 1]} : vector<16x2xf32> to vector<12x2xf32>
    %853 = vector.broadcast %851 : f32 to vector<12x2xf32>
    %854 = arith.mulf %853, %852 : vector<12x2xf32>
    %855 = arith.addf %850, %854 : vector<12x2xf32>
    %856 = vector.extract_strided_slice %1 {offsets = [1, 0, 0], sizes = [1, 16, 2], strides = [1, 1, 1]} : vector<4x16x2xf32> to vector<1x16x2xf32>
    %857 = vector.shape_cast %856 : vector<1x16x2xf32> to vector<16x2xf32>
    %c145 = arith.constant 145 : index
    %858 = memref.load %arg2[%c145] : memref<160xf32, #tpu.memory_space<smem>>
    %859 = vector.extract_strided_slice %857 {offsets = [0, 0], sizes = [12, 2], strides = [1, 1]} : vector<16x2xf32> to vector<12x2xf32>
    %860 = vector.broadcast %858 : f32 to vector<12x2xf32>
    %861 = arith.mulf %860, %859 : vector<12x2xf32>
    %862 = arith.addf %855, %861 : vector<12x2xf32>
    %c146 = arith.constant 146 : index
    %863 = memref.load %arg2[%c146] : memref<160xf32, #tpu.memory_space<smem>>
    %864 = vector.extract_strided_slice %857 {offsets = [1, 0], sizes = [12, 2], strides = [1, 1]} : vector<16x2xf32> to vector<12x2xf32>
    %865 = vector.broadcast %863 : f32 to vector<12x2xf32>
    %866 = arith.mulf %865, %864 : vector<12x2xf32>
    %867 = arith.addf %862, %866 : vector<12x2xf32>
    %c147 = arith.constant 147 : index
    %868 = memref.load %arg2[%c147] : memref<160xf32, #tpu.memory_space<smem>>
    %869 = vector.extract_strided_slice %857 {offsets = [2, 0], sizes = [12, 2], strides = [1, 1]} : vector<16x2xf32> to vector<12x2xf32>
    %870 = vector.broadcast %868 : f32 to vector<12x2xf32>
    %871 = arith.mulf %870, %869 : vector<12x2xf32>
    %872 = arith.addf %867, %871 : vector<12x2xf32>
    %c148 = arith.constant 148 : index
    %873 = memref.load %arg2[%c148] : memref<160xf32, #tpu.memory_space<smem>>
    %874 = vector.extract_strided_slice %857 {offsets = [3, 0], sizes = [12, 2], strides = [1, 1]} : vector<16x2xf32> to vector<12x2xf32>
    %875 = vector.broadcast %873 : f32 to vector<12x2xf32>
    %876 = arith.mulf %875, %874 : vector<12x2xf32>
    %877 = arith.addf %872, %876 : vector<12x2xf32>
    %c149 = arith.constant 149 : index
    %878 = memref.load %arg2[%c149] : memref<160xf32, #tpu.memory_space<smem>>
    %879 = vector.extract_strided_slice %857 {offsets = [4, 0], sizes = [12, 2], strides = [1, 1]} : vector<16x2xf32> to vector<12x2xf32>
    %880 = vector.broadcast %878 : f32 to vector<12x2xf32>
    %881 = arith.mulf %880, %879 : vector<12x2xf32>
    %882 = arith.addf %877, %881 : vector<12x2xf32>
    %883 = vector.extract_strided_slice %1 {offsets = [2, 0, 0], sizes = [1, 16, 2], strides = [1, 1, 1]} : vector<4x16x2xf32> to vector<1x16x2xf32>
    %884 = vector.shape_cast %883 : vector<1x16x2xf32> to vector<16x2xf32>
    %c150 = arith.constant 150 : index
    %885 = memref.load %arg2[%c150] : memref<160xf32, #tpu.memory_space<smem>>
    %886 = vector.extract_strided_slice %884 {offsets = [0, 0], sizes = [12, 2], strides = [1, 1]} : vector<16x2xf32> to vector<12x2xf32>
    %887 = vector.broadcast %885 : f32 to vector<12x2xf32>
    %888 = arith.mulf %887, %886 : vector<12x2xf32>
    %889 = arith.addf %882, %888 : vector<12x2xf32>
    %c151 = arith.constant 151 : index
    %890 = memref.load %arg2[%c151] : memref<160xf32, #tpu.memory_space<smem>>
    %891 = vector.extract_strided_slice %884 {offsets = [1, 0], sizes = [12, 2], strides = [1, 1]} : vector<16x2xf32> to vector<12x2xf32>
    %892 = vector.broadcast %890 : f32 to vector<12x2xf32>
    %893 = arith.mulf %892, %891 : vector<12x2xf32>
    %894 = arith.addf %889, %893 : vector<12x2xf32>
    %c152 = arith.constant 152 : index
    %895 = memref.load %arg2[%c152] : memref<160xf32, #tpu.memory_space<smem>>
    %896 = vector.extract_strided_slice %884 {offsets = [2, 0], sizes = [12, 2], strides = [1, 1]} : vector<16x2xf32> to vector<12x2xf32>
    %897 = vector.broadcast %895 : f32 to vector<12x2xf32>
    %898 = arith.mulf %897, %896 : vector<12x2xf32>
    %899 = arith.addf %894, %898 : vector<12x2xf32>
    %c153 = arith.constant 153 : index
    %900 = memref.load %arg2[%c153] : memref<160xf32, #tpu.memory_space<smem>>
    %901 = vector.extract_strided_slice %884 {offsets = [3, 0], sizes = [12, 2], strides = [1, 1]} : vector<16x2xf32> to vector<12x2xf32>
    %902 = vector.broadcast %900 : f32 to vector<12x2xf32>
    %903 = arith.mulf %902, %901 : vector<12x2xf32>
    %904 = arith.addf %899, %903 : vector<12x2xf32>
    %c154 = arith.constant 154 : index
    %905 = memref.load %arg2[%c154] : memref<160xf32, #tpu.memory_space<smem>>
    %906 = vector.extract_strided_slice %884 {offsets = [4, 0], sizes = [12, 2], strides = [1, 1]} : vector<16x2xf32> to vector<12x2xf32>
    %907 = vector.broadcast %905 : f32 to vector<12x2xf32>
    %908 = arith.mulf %907, %906 : vector<12x2xf32>
    %909 = arith.addf %904, %908 : vector<12x2xf32>
    %910 = vector.extract_strided_slice %1 {offsets = [3, 0, 0], sizes = [1, 16, 2], strides = [1, 1, 1]} : vector<4x16x2xf32> to vector<1x16x2xf32>
    %911 = vector.shape_cast %910 : vector<1x16x2xf32> to vector<16x2xf32>
    %c155 = arith.constant 155 : index
    %912 = memref.load %arg2[%c155] : memref<160xf32, #tpu.memory_space<smem>>
    %913 = vector.extract_strided_slice %911 {offsets = [0, 0], sizes = [12, 2], strides = [1, 1]} : vector<16x2xf32> to vector<12x2xf32>
    %914 = vector.broadcast %912 : f32 to vector<12x2xf32>
    %915 = arith.mulf %914, %913 : vector<12x2xf32>
    %916 = arith.addf %909, %915 : vector<12x2xf32>
    %c156 = arith.constant 156 : index
    %917 = memref.load %arg2[%c156] : memref<160xf32, #tpu.memory_space<smem>>
    %918 = vector.extract_strided_slice %911 {offsets = [1, 0], sizes = [12, 2], strides = [1, 1]} : vector<16x2xf32> to vector<12x2xf32>
    %919 = vector.broadcast %917 : f32 to vector<12x2xf32>
    %920 = arith.mulf %919, %918 : vector<12x2xf32>
    %921 = arith.addf %916, %920 : vector<12x2xf32>
    %c157 = arith.constant 157 : index
    %922 = memref.load %arg2[%c157] : memref<160xf32, #tpu.memory_space<smem>>
    %923 = vector.extract_strided_slice %911 {offsets = [2, 0], sizes = [12, 2], strides = [1, 1]} : vector<16x2xf32> to vector<12x2xf32>
    %924 = vector.broadcast %922 : f32 to vector<12x2xf32>
    %925 = arith.mulf %924, %923 : vector<12x2xf32>
    %926 = arith.addf %921, %925 : vector<12x2xf32>
    %c158 = arith.constant 158 : index
    %927 = memref.load %arg2[%c158] : memref<160xf32, #tpu.memory_space<smem>>
    %928 = vector.extract_strided_slice %911 {offsets = [3, 0], sizes = [12, 2], strides = [1, 1]} : vector<16x2xf32> to vector<12x2xf32>
    %929 = vector.broadcast %927 : f32 to vector<12x2xf32>
    %930 = arith.mulf %929, %928 : vector<12x2xf32>
    %931 = arith.addf %926, %930 : vector<12x2xf32>
    %c159 = arith.constant 159 : index
    %932 = memref.load %arg2[%c159] : memref<160xf32, #tpu.memory_space<smem>>
    %933 = vector.extract_strided_slice %911 {offsets = [4, 0], sizes = [12, 2], strides = [1, 1]} : vector<16x2xf32> to vector<12x2xf32>
    %934 = vector.broadcast %932 : f32 to vector<12x2xf32>
    %935 = arith.mulf %934, %933 : vector<12x2xf32>
    %936 = arith.addf %931, %935 : vector<12x2xf32>
    %c7_45 = arith.constant 7 : index
    %937 = memref.load %arg3[%c7_45] : memref<8xf32, #tpu.memory_space<smem>>
    %938 = vector.broadcast %937 : f32 to vector<12x2xf32>
    %939 = arith.addf %936, %938 : vector<12x2xf32>
    %cst_46 = arith.constant 0.000000e+00 : f32
    %940 = vector.broadcast %cst_46 : f32 to vector<12x2xf32>
    %941 = arith.maximumf %939, %940 : vector<12x2xf32>
    %cst_47 = arith.constant dense<0xFF800000> : vector<2xf32>
    %942 = vector.multi_reduction <maximumf>, %941, %cst_47 [0] : vector<12x2xf32> to vector<2xf32>
    %c7_48 = arith.constant 7 : index
    %c0_49 = arith.constant 0 : index
    %943 = vector.load %arg4[%c7_48, %c0_49] : memref<8x2xf32, #tpu.memory_space<vmem>>, vector<1x2xf32>
    %944 = vector.shape_cast %943 : vector<1x2xf32> to vector<2xf32>
    %945 = vector.shape_cast %942 : vector<2xf32> to vector<1x2xf32>
    tpu.vector_store %arg4[%c7_48, %c0_49], %945 {strides = array<i32>} : memref<8x2xf32, #tpu.memory_space<vmem>>, vector<1x2xf32>,
    return
  }
  func.func @transform_0(%arg0: i32) -> (i32, i32, i32) {
    %c0_i32 = arith.constant 0 : i32
    %c0_i32_0 = arith.constant 0 : i32
    %c0_i32_1 = arith.constant 0 : i32
    return %c0_i32, %c0_i32_0, %arg0 : i32, i32, i32
  }
  func.func @transform_1(%arg0: i32) -> i32 {
    %c0_i32 = arith.constant 0 : i32
    %c0_i32_0 = arith.constant 0 : i32
    return %c0_i32 : i32
  }
  func.func @transform_2(%arg0: i32) -> i32 {
    %c0_i32 = arith.constant 0 : i32
    %c0_i32_0 = arith.constant 0 : i32
    return %c0_i32 : i32
  }
  func.func @transform_3(%arg0: i32) -> (i32, i32) {
    %c0_i32 = arith.constant 0 : i32
    %c0_i32_0 = arith.constant 0 : i32
    return %c0_i32, %arg0 : i32, i32
  }
}

</mosaic_0001>

<bundles_post_ra>
// kernel: tpu_custom_call.1
= control target key start
LH: loop header
LB: loop body
LE: loop exit
PB: predicated region body
PF: predicated region fallthrough
CT: control target
= control target key end

     0   :  { %8 = vsyncpa [#allocation3], 0  ;;  %s3308_s0 = inlined_call_operand.vmem [shape: bf16[4,16,2], index: 0, kind: input, shape index: {}]   ;;  %s3309_s1 = inlined_call_operand.vmem [shape: f32[160], index: 1, kind: input, shape index: {}]   ;;  %s3310_s2 = inlined_call_operand.vmem [shape: f32[8], index: 2, kind: input, shape index: {}]   ;;  %s3311_s3 = inlined_call_operand.vmem [shape: f32[8,2], index: 3, kind: output, shape index: {}]  }
   0x1   :  { %s17_s14 = sshll.u32 %s3309_s1, 4  ;;  %s18_s14 = int_to_ptr.vmem [resolvable:$true] %s17_s14 }
   0x2   :  { %9 = vsyncpa [#allocation5], 0  ;;  %s26_s17 = sshll.u32 %s3310_s2, 4  ;;  %s2267_s18 = smov [#allocation2]   ;;  %s27_s17 = int_to_ptr.vmem [resolvable:$true] %s26_s17 }
   0x3   :  { %20 = dma.vmem_to_smem %s18_s14, 32, %s2267_s18, [#allocation3]  }
   0x4   :  { %s2268_s19 = smov [#allocation4]  }
   0x5   :  { %29 = dma.vmem_to_smem %s27_s17, 16, %s2268_s19, [#allocation5]  }
   0x6   :  { %2263 = dma.done.wait [#allocation3], 32  }
   0x7   :  { %2264 = vsyncadd [#allocation3], 4294967264 }
   0x8   :  { %2265 = dma.done.wait [#allocation5], 16  }
   0x9   :  { %2266 = vsyncadd [#allocation5], 4294967280 }
   0xa   :  { %38 = sfence }
   0xb   :  { %s55_s20 = sld [smem:[#allocation2]]  ;;  %v2219_v0 = vld [vmem:[%s3308_s0] sm:$0xff]   ;;  %v2234_v1 = vld [vmem:[%s3308_s0 + $0x8] sm:$0xff]   ;;  %v2235_v2 = vld [vmem:[%s3308_s0 + $0x10] sm:$0xff]   ;;  %vm67_vm0 = vcmask 1046528   ;;  %vm81_vm1 = vcmask 1045504  }
   0xc   :  { %s2052_s1 = sld [smem:[#allocation2 + $0x1]]  ;;  %v2236_v3 = vld [vmem:[%s3308_s0 + $0x18] sm:$0xff]   ;;  %v2307_v4 = vunpack.c.l.bf16 %v2219_v0  ;;  %v2309_v5 = vunpack.c.h.bf16 %v2219_v0  ;;  %v2313_v6 = vunpack.c.l.bf16 %v2234_v1  ;;  %v2315_v7 = vunpack.c.h.bf16 %v2234_v1 }
   0xd   :  { %s2053_s26 = sld [smem:[#allocation2 + $0x2]]  ;;  %v2317_v8 = vunpack.c.l.bf16 %v2235_v2  ;;  %v2321_v9 = vunpack.c.h.bf16 %v2235_v2  ;;  %v2323_v10 = vunpack.c.l.bf16 %v2236_v3  ;;  %v2325_v11 = vunpack.c.h.bf16 %v2236_v3 }
   0xe   :  { %s2054_s29 = sld [smem:[#allocation2 + $0x3]]  ;;  %vm95_vm2 = vcmask 1044480   ;;  %vm109_vm3 = vcmask 1043456   ;;  %vm299_vm4 = vcmask 11264   ;;  %vm297_vm5 = vcmask 15360  }
   0xf   :  { %s2311_s30 = sld [smem:[#allocation2 + $0x4]]  ;;  %vm308_vm6 = vcmask 8192  }
  0x10   :  { %s2319_s4 = sld [smem:[#allocation2 + $0x5]] }
  0x11   :  { %v56_v12 = vstv %s55_s20  ;;  %s2327_s0 = sld [smem:[#allocation2 + $0x6]] }
  0x12   :  { %v62_v13 = vstv %s2052_s1  ;;  %v58_v14 = vmul.f32 %v2309_v5, %v56_v12  ;;  %s2332_s5 = sld [smem:[#allocation2 + $0x7]]  ;;  %v57_v18 = vmul.f32 %v2307_v4, %v56_v12 }
  0x13   :  { %v63_v15 = vmul.f32 %v2307_v4, %v62_v13  ;;  %v64_v16 = vmul.f32 %v2309_v5, %v62_v13  ;;  %v76_v17 = vstv %s2053_s26  ;;  %s2339_s6 = sld [smem:[#allocation2 + $0x8]] }
  0x14   :  { %v77_v19 = vmul.f32 %v2307_v4, %v76_v17  ;;  %v78_v20 = vmul.f32 %v2309_v5, %v76_v17  ;;  %v90_v21 = vstv %s2054_s29  ;;  %s2344_s7 = sld [smem:[#allocation2 + $0x9]] }
  0x15   :  { %v68_v22 = vrot.slane %v63_v15, 1  ;;  %v69_v23 = vrot.slane %v64_v16, 1  ;;  %v91_v24 = vmul.f32 %v2307_v4, %v90_v21  ;;  %v92_v25 = vmul.f32 %v2309_v5, %v90_v21  ;;  %s2352_s8 = sld [smem:[#allocation2 + $0xa]] }
  0x16   :  { %v82_v26 = vrot.slane %v77_v19, 2  ;;  %v83_v27 = vrot.slane %v78_v20, 2  ;;  %v104_v28 = vstv %s2311_s30  ;;  %v118_v29 = vstv %s2319_s4  ;;  %s2358_s9 = sld [smem:[#allocation2 + $0xb]] }
  0x17   :  { %v70_v30 = vsel %vm67_vm0, %v68_v22, %v69_v23  ;;  %v74_v31 = vadd.f32 %v69_v23, %v58_v14  ;;  %v96_v32 = vrot.slane %v91_v24, 3  ;;  %v97_v33 = vrot.slane %v92_v25, 3  ;;  %s2363_s10 = sld [smem:[#allocation2 + $0xc]] }
  0x18   :  { %v73_v34 = vadd.f32 %v70_v30, %v57_v18  ;;  %v84_v35 = vsel %vm81_vm1, %v82_v26, %v83_v27  ;;  %v105_v36 = vmul.f32 %v2307_v4, %v104_v28  ;;  %v106_v37 = vmul.f32 %v2309_v5, %v104_v28  ;;  %s2367_s11 = sld [smem:[#allocation2 + $0xd]] }
  0x19   :  { %v88_v38 = vadd.f32 %v83_v27, %v74_v31  ;;  %v98_v39 = vsel %vm95_vm2, %v96_v32, %v97_v33  ;;  %v119_v40 = vmul.f32 %v2313_v6, %v118_v29  ;;  %v120_v41 = vmul.f32 %v2315_v7, %v118_v29  ;;  %s2374_s12 = sld [smem:[#allocation2 + $0xe]] }
  0x1a   :  { %v87_v42 = vadd.f32 %v84_v35, %v73_v34  ;;  %v110_v43 = vrot.slane %v105_v36, 4  ;;  %v111_v44 = vrot.slane %v106_v37, 4  ;;  %v124_v45 = vstv %s2327_s0  ;;  %s2380_s13 = sld [smem:[#allocation2 + $0xf]] }
  0x1b   :  { %v102_v46 = vadd.f32 %v97_v33, %v88_v38  ;;  %v125_v47 = vmul.f32 %v2313_v6, %v124_v45  ;;  %v126_v48 = vmul.f32 %v2315_v7, %v124_v45  ;;  %v137_v49 = vstv %s2332_s5  ;;  %s2387_s14 = sld [smem:[#allocation2 + $0x10]] }
  0x1c   :  { %v101_v50 = vadd.f32 %v98_v39, %v87_v42  ;;  %v112_v51 = vsel %vm109_vm3, %v110_v43, %v111_v44  ;;  %v138_v52 = vmul.f32 %v2313_v6, %v137_v49  ;;  %v139_v53 = vmul.f32 %v2315_v7, %v137_v49  ;;  %s2392_s15 = sld [smem:[#allocation2 + $0x11]] }
  0x1d   :  { %v116_v54 = vadd.f32 %v111_v44, %v102_v46  ;;  %v129_v55 = vrot.slane %v125_v47, 1  ;;  %v130_v56 = vrot.slane %v126_v48, 1  ;;  %v150_v57 = vstv %s2339_s6  ;;  %s2396_s16 = sld [smem:[#allocation2 + $0x12]] }
  0x1e   :  { %v115_v58 = vadd.f32 %v112_v51, %v101_v50  ;;  %v142_v59 = vrot.slane %v138_v52, 2  ;;  %v143_v60 = vrot.slane %v139_v53, 2  ;;  %v151_v61 = vmul.f32 %v2313_v6, %v150_v57  ;;  %s2403_s17 = sld [smem:[#allocation2 + $0x13]] }
  0x1f   :  { %v122_v62 = vadd.f32 %v120_v41, %v116_v54  ;;  %v131_v63 = vsel %vm67_vm0, %v129_v55, %v130_v56  ;;  %v152_v0 = vmul.f32 %v2315_v7, %v150_v57  ;;  %v163_v1 = vstv %s2344_s7  ;;  %s2409_s18 = sld [smem:[#allocation4]] }
  0x20   :  { %v121_v2 = vadd.f32 %v119_v40, %v115_v58  ;;  %v144_v3 = vsel %vm81_vm1, %v142_v59, %v143_v60  ;;  %v155_v12 = vrot.slane %v151_v61, 3  ;;  %v164_v13 = vmul.f32 %v2313_v6, %v163_v1  ;;  %s2413_s19 = sld [smem:[#allocation2 + $0x14]] }
  0x21   :  { %v135_v14 = vadd.f32 %v130_v56, %v122_v62  ;;  %v156_v15 = vrot.slane %v152_v0, 3  ;;  %v165_v16 = vmul.f32 %v2315_v7, %v163_v1  ;;  %v176_v17 = vstv %s2352_s8  ;;  %s2418_s20 = sld [smem:[#allocation2 + $0x15]] }
  0x22   :  { %v134_v18 = vadd.f32 %v131_v63, %v121_v2  ;;  %v168_v19 = vrot.slane %v164_v13, 4  ;;  %v177_v20 = vmul.f32 %v2317_v8, %v176_v17  ;;  %v178_v21 = vmul.f32 %v2321_v9, %v176_v17  ;;  %s2423_s21 = sld [smem:[#allocation2 + $0x16]] }
  0x23   :  { %v148_v22 = vadd.f32 %v143_v60, %v135_v14  ;;  %v157_v23 = vsel %vm95_vm2, %v155_v12, %v156_v15  ;;  %v169_v24 = vrot.slane %v165_v16, 4  ;;  %v182_v25 = vstv %s2358_s9  ;;  %s2427_s22 = sld [smem:[#allocation2 + $0x17]] }
  0x24   :  { %v147_v26 = vadd.f32 %v144_v3, %v134_v18  ;;  %v183_v27 = vmul.f32 %v2317_v8, %v182_v25  ;;  %v184_v28 = vmul.f32 %v2321_v9, %v182_v25  ;;  %v195_v29 = vstv %s2363_s10  ;;  %s2431_s1 = sld [smem:[#allocation2 + $0x18]] }
  0x25   :  { %v161_v30 = vadd.f32 %v156_v15, %v148_v22  ;;  %v170_v31 = vsel %vm109_vm3, %v168_v19, %v169_v24  ;;  %v196_v32 = vmul.f32 %v2317_v8, %v195_v29  ;;  %v197_v33 = vmul.f32 %v2321_v9, %v195_v29  ;;  %s2445_s23 = sld [smem:[#allocation2 + $0x19]] }
  0x26   :  { %v160_v34 = vadd.f32 %v157_v23, %v147_v26  ;;  %v187_v35 = vrot.slane %v183_v27, 1  ;;  %v188_v36 = vrot.slane %v184_v28, 1  ;;  %v208_v37 = vstv %s2367_s11  ;;  %s2453_s24 = sld [smem:[#allocation2 + $0x1a]] }
  0x27   :  { %v174_v38 = vadd.f32 %v169_v24, %v161_v30  ;;  %v200_v39 = vrot.slane %v196_v32, 2  ;;  %v201_v40 = vrot.slane %v197_v33, 2  ;;  %v209_v41 = vmul.f32 %v2317_v8, %v208_v37  ;;  %s2455_s2 = sld [smem:[#allocation2 + $0x1b]] }
  0x28   :  { %v173_v42 = vadd.f32 %v170_v31, %v160_v34  ;;  %v189_v43 = vsel %vm67_vm0, %v187_v35, %v188_v36  ;;  %v210_v44 = vmul.f32 %v2321_v9, %v208_v37  ;;  %v221_v45 = vstv %s2374_s12  ;;  %s2459_s25 = sld [smem:[#allocation2 + $0x1c]] }
  0x29   :  { %v180_v46 = vadd.f32 %v178_v21, %v174_v38  ;;  %v202_v47 = vsel %vm81_vm1, %v200_v39, %v201_v40  ;;  %v213_v48 = vrot.slane %v209_v41, 3  ;;  %v222_v49 = vmul.f32 %v2317_v8, %v221_v45  ;;  %s2463_s26 = sld [smem:[#allocation2 + $0x1d]] }
  0x2a   :  { %v179_v50 = vadd.f32 %v177_v20, %v173_v42  ;;  %v214_v51 = vrot.slane %v210_v44, 3  ;;  %v223_v52 = vmul.f32 %v2321_v9, %v221_v45  ;;  %v234_v53 = vstv %s2380_s13  ;;  %s2472_s27 = sld [smem:[#allocation2 + $0x1e]] }
  0x2b   :  { %v193_v54 = vadd.f32 %v188_v36, %v180_v46  ;;  %v226_v55 = vrot.slane %v222_v49, 4  ;;  %v235_v56 = vmul.f32 %v2323_v10, %v234_v53  ;;  %v236_v57 = vmul.f32 %v2325_v11, %v234_v53  ;;  %s2477_s28 = sld [smem:[#allocation2 + $0x1f]] }
  0x2c   :  { %v192_v58 = vadd.f32 %v189_v43, %v179_v50  ;;  %v215_v59 = vsel %vm95_vm2, %v213_v48, %v214_v51  ;;  %v227_v60 = vrot.slane %v223_v52, 4  ;;  %v240_v61 = vstv %s2387_s14  ;;  %s2484_s29 = sld [smem:[#allocation2 + $0x20]] }
  0x2d   :  { %v206_v62 = vadd.f32 %v201_v40, %v193_v54  ;;  %v241_v63 = vmul.f32 %v2323_v10, %v240_v61  ;;  %v242_v0 = vmul.f32 %v2325_v11, %v240_v61  ;;  %v253_v1 = vstv %s2392_s15  ;;  %s2490_s30 = sld [smem:[#allocation2 + $0x21]] }
  0x2e   :  { %v205_v2 = vadd.f32 %v202_v47, %v192_v58  ;;  %v228_v3 = vsel %vm109_vm3, %v226_v55, %v227_v60  ;;  %v254_v12 = vmul.f32 %v2323_v10, %v253_v1  ;;  %v255_v13 = vmul.f32 %v2325_v11, %v253_v1  ;;  %s2495_s4 = sld [smem:[#allocation2 + $0x22]] }
  0x2f   :  { %v219_v14 = vadd.f32 %v214_v51, %v206_v62  ;;  %v245_v15 = vrot.slane %v241_v63, 1  ;;  %v246_v16 = vrot.slane %v242_v0, 1  ;;  %v266_v17 = vstv %s2396_s16  ;;  %s2501_s0 = sld [smem:[#allocation2 + $0x23]] }
  0x30   :  { %v218_v18 = vadd.f32 %v215_v59, %v205_v2  ;;  %v258_v19 = vrot.slane %v254_v12, 2  ;;  %v259_v20 = vrot.slane %v255_v13, 2  ;;  %v267_v21 = vmul.f32 %v2323_v10, %v266_v17  ;;  %s2506_s5 = sld [smem:[#allocation2 + $0x24]] }
  0x31   :  { %v232_v22 = vadd.f32 %v227_v60, %v219_v14  ;;  %v268_v23 = vmul.f32 %v2325_v11, %v266_v17  ;;  %v279_v24 = vstv %s2403_s17  ;;  %v247_v29 = vsel %vm67_vm0, %v245_v15, %v246_v16  ;;  %s2510_s6 = sld [smem:[#allocation2 + $0x25]] }
  0x32   :  { %v231_v25 = vadd.f32 %v228_v3, %v218_v18  ;;  %v271_v26 = vrot.slane %v267_v21, 3  ;;  %v280_v27 = vmul.f32 %v2323_v10, %v279_v24  ;;  %v281_v31 = vmul.f32 %v2325_v11, %v279_v24  ;;  %s2514_s7 = sld [smem:[#allocation2 + $0x26]] }
  0x33   :  { %v238_v28 = vadd.f32 %v236_v57, %v232_v22  ;;  %v272_v30 = vrot.slane %v268_v23, 3  ;;  %v260_v33 = vsel %vm81_vm1, %v258_v19, %v259_v20  ;;  %v292_v38 = vstv %s2409_s18  ;;  %s2529_s10 = sld [smem:[#allocation2 + $0x27]] }
  0x34   :  { %v237_v32 = vadd.f32 %v235_v56, %v231_v25  ;;  %v284_v34 = vrot.slane %v280_v27, 4  ;;  %v285_v37 = vrot.slane %v281_v31, 4  ;;  %v311_v40 = vstv %s2413_s19  ;;  %s2534_s11 = sld [smem:[#allocation4 + $0x1]] }
  0x35   :  { %v251_v35 = vadd.f32 %v246_v16, %v238_v28  ;;  %v273_v36 = vsel %vm95_vm2, %v271_v26, %v272_v30  ;;  %v317_v41 = vstv %s2418_s20  ;;  %v330_v42 = vstv %s2423_s21  ;;  %s2537_s12 = sld [smem:[#allocation2 + $0x28]] }
  0x36   :  { %v250_v39 = vadd.f32 %v247_v29, %v237_v32  ;;  %v286_v44 = vsel %vm109_vm3, %v284_v34, %v285_v37  ;;  %v312_v45 = vmul.f32 %v2307_v4, %v311_v40  ;;  %v313_v46 = vmul.f32 %v2309_v5, %v311_v40  ;;  %s2542_s13 = sld [smem:[#allocation2 + $0x29]] }
  0x37   :  { %v264_v43 = vadd.f32 %v259_v20, %v251_v35  ;;  %v318_v48 = vmul.f32 %v2307_v4, %v317_v41  ;;  %v319_v49 = vmul.f32 %v2309_v5, %v317_v41  ;;  %v331_v50 = vmul.f32 %v2307_v4, %v330_v42  ;;  %s2547_s14 = sld [smem:[#allocation2 + $0x2a]] }
  0x38   :  { %v263_v47 = vadd.f32 %v260_v33, %v250_v39  ;;  %v332_v52 = vmul.f32 %v2309_v5, %v330_v42  ;;  %v343_v53 = vstv %s2427_s22  ;;  %v356_v54 = vstv %s2431_s1  ;;  %s2553_s15 = sld [smem:[#allocation2 + $0x2b]] }
  0x39   :  { %v277_v51 = vadd.f32 %v272_v30, %v264_v43  ;;  %v322_v56 = vrot.slane %v318_v48, 1  ;;  %v323_v57 = vrot.slane %v319_v49, 1  ;;  %v335_v58 = vrot.slane %v331_v50, 2  ;;  %s2563_s16 = sld [smem:[#allocation2 + $0x2c]] }
  0x3a   :  { %v276_v55 = vadd.f32 %v273_v36, %v263_v47  ;;  %v336_v60 = vrot.slane %v332_v52, 2  ;;  %v344_v61 = vmul.f32 %v2307_v4, %v343_v53  ;;  %v345_v62 = vmul.f32 %v2309_v5, %v343_v53  ;;  %s2566_s17 = sld [smem:[#allocation2 + $0x2d]] }
  0x3b   :  { %v290_v59 = vadd.f32 %v285_v37, %v277_v51  ;;  %v324_v0 = vsel %vm67_vm0, %v322_v56, %v323_v57  ;;  %v328_v1 = vadd.f32 %v323_v57, %v313_v46  ;;  %v357_v2 = vmul.f32 %v2307_v4, %v356_v54  ;;  %s2577_s18 = sld [smem:[#allocation2 + $0x2e]] }
  0x3c   :  { %v289_v63 = vadd.f32 %v286_v44, %v276_v55  ;;  %v327_v12 = vadd.f32 %v324_v0, %v312_v45  ;;  %v337_v13 = vsel %vm81_vm1, %v335_v58, %v336_v60  ;;  %v348_v14 = vrot.slane %v344_v61, 3  ;;  %s2580_s19 = sld [smem:[#allocation2 + $0x2f]] }
  0x3d   :  { %v294_v3 = vadd.f32 %v292_v38, %v290_v59  ;;  %v341_v16 = vadd.f32 %v336_v60, %v328_v1  ;;  %v349_v17 = vrot.slane %v345_v62, 3  ;;  %v358_v18 = vmul.f32 %v2309_v5, %v356_v54  ;;  %s2584_s20 = sld [smem:[#allocation2 + $0x30]] }
  0x3e   :  { %v293_v15 = vadd.f32 %v292_v38, %v289_v63  ;;  %v340_v20 = vadd.f32 %v337_v13, %v327_v12  ;;  %v361_v21 = vrot.slane %v357_v2, 4  ;;  %v369_v22 = vstv %s2445_s23  ;;  %s2591_s21 = sld [smem:[#allocation2 + $0x31]] }
  0x3f   :  { %v296_v19 = vmax.f32 %v294_v3, 0.0  ;;  %v350_v24 = vsel %vm95_vm2, %v348_v14, %v349_v17  ;;  %v354_v25 = vadd.f32 %v349_v17, %v341_v16  ;;  %v362_v26 = vrot.slane %v358_v18, 4  ;;  %s2598_s22 = sld [smem:[#allocation2 + $0x32]] }
  0x40   :  { %v295_v23 = vmax.f32 %v293_v15, 0.0  ;;  %v353_v28 = vadd.f32 %v350_v24, %v340_v20  ;;  %v370_v29 = vmul.f32 %v2313_v6, %v369_v22  ;;  %v371_v30 = vmul.f32 %v2315_v7, %v369_v22  ;;  %s2602_s1 = sld [smem:[#allocation2 + $0x33]] }
  0x41   :  { %v300_v27 = vsel %vm299_vm4, %v296_v19, -inf  ;;  %v363_v32 = vsel %vm109_vm3, %v361_v21, %v362_v26  ;;  %v367_v33 = vadd.f32 %v362_v26, %v354_v25  ;;  %v375_v34 = vstv %s2453_s24  ;;  %s2610_s23 = sld [smem:[#allocation2 + $0x34]] }
  0x42   :  { %v298_v31 = vsel %vm297_vm5, %v295_v23, -inf  ;;  %v366_v36 = vadd.f32 %v363_v32, %v353_v28  ;;  %v376_v37 = vmul.f32 %v2313_v6, %v375_v34  ;;  %v377_v38 = vmul.f32 %v2315_v7, %v375_v34  ;;  %s2613_s24 = sld [smem:[#allocation2 + $0x35]] }
  0x43   :  { %v301_v35 = vmax.f32 %v298_v31, %v300_v27  ;;  %v373_v39 = vadd.f32 %v371_v30, %v367_v33  ;;  %v388_v40 = vstv %s2455_s2  ;;  %v401_v41 = vstv %s2459_s25  ;;  %s2621_s2 = sld [smem:[#allocation2 + $0x36]] }
  0x44   :  { %v414_v42 = vstv %s2463_s26  ;;  %v372_v44 = vadd.f32 %v370_v29, %v366_v36  ;;  %v380_v45 = vrot.slane %v376_v37, 1  ;;  %v381_v46 = vrot.slane %v377_v38, 1  ;;  %s2626_s25 = sld [smem:[#allocation2 + $0x37]] }
  0x45   :  { %v302_v43 = vrot.slane %v301_v35, 4  ;;  %v389_v47 = vmul.f32 %v2313_v6, %v388_v40  ;;  %v390_v48 = vmul.f32 %v2315_v7, %v388_v40  ;;  %v402_v49 = vmul.f32 %v2313_v6, %v401_v41  ;;  %s2630_s26 = sld [smem:[#allocation2 + $0x38]] }
  0x46   :  { %v403_v50 = vmul.f32 %v2315_v7, %v401_v41  ;;  %v382_v52 = vsel %vm67_vm0, %v380_v45, %v381_v46  ;;  %v386_v53 = vadd.f32 %v381_v46, %v373_v39  ;;  %v415_v54 = vmul.f32 %v2313_v6, %v414_v42  ;;  %s2678_s8 = sld [smem:[#allocation2 + $0x3f]] }
  0x47   :  { %v303_v51 = vmax.f32 %v301_v35, %v302_v43  ;;  %v385_v55 = vadd.f32 %v382_v52, %v372_v44  ;;  %v393_v56 = vrot.slane %v389_v47, 2  ;;  %v394_v57 = vrot.slane %v390_v48, 2  ;;  %s2688_s9 = sld [smem:[#allocation2 + $0x40]] }
  0x48   :  { %v406_v58 = vrot.slane %v402_v49, 3  ;;  %v407_v60 = vrot.slane %v403_v50, 3  ;;  %v416_v61 = vmul.f32 %v2315_v7, %v414_v42  ;;  %v419_v62 = vrot.slane %v415_v54, 4 }
  0x49   :  { %v304_v59 = vrot.slane %v303_v51, 2  ;;  %v395_v63 = vsel %vm81_vm1, %v393_v56, %v394_v57  ;;  %v399_v0 = vadd.f32 %v394_v57, %v386_v53  ;;  %v427_v1 = vstv %s2472_s27  ;;  %s2635_s27 = sld [smem:[#allocation2 + $0x39]] }
  0x4a   :  { %v433_v2 = vstv %s2477_s28  ;;  %v398_v12 = vadd.f32 %v395_v63, %v385_v55  ;;  %v408_v13 = vsel %vm95_vm2, %v406_v58, %v407_v60  ;;  %v420_v14 = vrot.slane %v416_v61, 4  ;;  %s2639_s28 = sld [smem:[#allocation2 + $0x3a]] }
  0x4b   :  { %v305_v3 = vmax.f32 %v303_v51, %v304_v59  ;;  %v412_v15 = vadd.f32 %v407_v60, %v399_v0  ;;  %v428_v16 = vmul.f32 %v2317_v8, %v427_v1  ;;  %v429_v17 = vmul.f32 %v2321_v9, %v427_v1 }
  0x4c   :  { %v434_v18 = vmul.f32 %v2317_v8, %v433_v2  ;;  %v411_v20 = vadd.f32 %v408_v13, %v398_v12  ;;  %v421_v21 = vsel %vm109_vm3, %v419_v62, %v420_v14  ;;  %v435_v22 = vmul.f32 %v2321_v9, %v433_v2 }
  0x4d   :  { %v306_v19 = vrot.slane %v305_v3, 1  ;;  %v425_v23 = vadd.f32 %v420_v14, %v412_v15  ;;  %v446_v25 = vstv %s2484_s29  ;;  %v459_v26 = vstv %s2490_s30  ;;  %s2803_s29 = sld [smem:[#allocation2 + $0x53]] }
  0x4e   :  { %v438_v24 = vrot.slane %v434_v18, 1  ;;  %v424_v28 = vadd.f32 %v421_v21, %v411_v20  ;;  %v439_v29 = vrot.slane %v435_v22, 1  ;;  %v447_v30 = vmul.f32 %v2317_v8, %v446_v25  ;;  %s2813_s30 = sld [smem:[#allocation2 + $0x54]] }
  0x4f   :  { %v307_v27 = vmax.f32 %v305_v3, %v306_v19  ;;  %v431_v31 = vadd.f32 %v429_v17, %v425_v23  ;;  %v448_v32 = vmul.f32 %v2321_v9, %v446_v25  ;;  %v460_v33 = vmul.f32 %v2317_v8, %v459_v26 }
  0x50   :  { %v461_v34 = vmul.f32 %v2321_v9, %v459_v26  ;;  %v430_v35 = vadd.f32 %v428_v16, %v424_v28  ;;  %v440_v36 = vsel %vm67_vm0, %v438_v24, %v439_v29  ;;  %v451_v37 = vrot.slane %v447_v30, 2 }
  0x51   :  { %309 = vst.msk [vmem:[%s3311_s3] sm:$0x1] %vm308_vm6, %v307_v27  ;;  %v472_v38 = vstv %s2495_s4  ;;  %v444_v39 = vadd.f32 %v439_v29, %v431_v31  ;;  %v452_v40 = vrot.slane %v448_v32, 2  ;;  %v464_v41 = vrot.slane %v460_v33, 3  ;;  %s2654_s4 = sld [smem:[#allocation2 + $0x3b]] }
  0x52   :  { %v465_v42 = vrot.slane %v461_v34, 3  ;;  %v443_v43 = vadd.f32 %v440_v36, %v430_v35  ;;  %v473_v44 = vmul.f32 %v2317_v8, %v472_v38  ;;  %v474_v45 = vmul.f32 %v2321_v9, %v472_v38 }
  0x53   :  { %v485_v46 = vstv %s2501_s0  ;;  %v453_v47 = vsel %vm81_vm1, %v451_v37, %v452_v40  ;;  %v457_v48 = vadd.f32 %v452_v40, %v444_v39  ;;  %v491_v56 = vstv %s2506_s5  ;;  %s2659_s0 = sld [smem:[#allocation4 + $0x2]] }
  0x54   :  { %v466_v49 = vsel %vm95_vm2, %v464_v41, %v465_v42  ;;  %v486_v50 = vmul.f32 %v2323_v10, %v485_v46  ;;  %v456_v51 = vadd.f32 %v453_v47, %v443_v43  ;;  %v477_v52 = vrot.slane %v473_v44, 4  ;;  %s2662_s5 = sld [smem:[#allocation2 + $0x3c]] }
  0x55   :  { %v478_v53 = vrot.slane %v474_v45, 4  ;;  %v487_v54 = vmul.f32 %v2325_v11, %v485_v46  ;;  %v470_v55 = vadd.f32 %v465_v42, %v457_v48  ;;  %v504_v57 = vstv %s2510_s6  ;;  %s2667_s6 = sld [smem:[#allocation2 + $0x3d]] }
  0x56   :  { %v517_v58 = vstv %s2514_s7  ;;  %v469_v59 = vadd.f32 %v466_v49, %v456_v51  ;;  %v492_v61 = vmul.f32 %v2323_v10, %v491_v56  ;;  %v493_v62 = vmul.f32 %v2325_v11, %v491_v56  ;;  %s2672_s7 = sld [smem:[#allocation2 + $0x3e]] }
  0x57   :  { %v479_v60 = vsel %vm109_vm3, %v477_v52, %v478_v53  ;;  %v483_v63 = vadd.f32 %v478_v53, %v470_v55  ;;  %v505_v0 = vmul.f32 %v2323_v10, %v504_v57  ;;  %v506_v1 = vmul.f32 %v2325_v11, %v504_v57 }
  0x58   :  { %v518_v2 = vmul.f32 %v2323_v10, %v517_v58  ;;  %v482_v3 = vadd.f32 %v479_v60, %v469_v59  ;;  %v496_v12 = vrot.slane %v492_v61, 1  ;;  %v497_v13 = vrot.slane %v493_v62, 1 }
  0x59   :  { %v519_v14 = vmul.f32 %v2325_v11, %v517_v58  ;;  %v489_v15 = vadd.f32 %v487_v54, %v483_v63  ;;  %v509_v16 = vrot.slane %v505_v0, 2  ;;  %v510_v17 = vrot.slane %v506_v1, 2 }
  0x5a   :  { %v522_v18 = vrot.slane %v518_v2, 3  ;;  %v488_v19 = vadd.f32 %v486_v50, %v482_v3  ;;  %v498_v20 = vsel %vm67_vm0, %v496_v12, %v497_v13  ;;  %v530_v22 = vstv %s2529_s10  ;;  %s2691_s10 = sld [smem:[#allocation2 + $0x41]] }
  0x5b   :  { %v523_v21 = vrot.slane %v519_v14, 3  ;;  %v502_v23 = vadd.f32 %v497_v13, %v489_v15  ;;  %v511_v24 = vsel %vm81_vm1, %v509_v16, %v510_v17  ;;  %v531_v25 = vmul.f32 %v2323_v10, %v530_v22 }
  0x5c   :  { %v532_v26 = vmul.f32 %v2325_v11, %v530_v22  ;;  %v501_v27 = vadd.f32 %v498_v20, %v488_v19  ;;  %v543_v29 = vstv %s2534_s11  ;;  %v559_v30 = vstv %s2537_s12  ;;  %s2702_s11 = sld [smem:[#allocation2 + $0x42]] }
  0x5d   :  { %v524_v28 = vsel %vm95_vm2, %v522_v18, %v523_v21  ;;  %v515_v31 = vadd.f32 %v510_v17, %v502_v23  ;;  %v535_v32 = vrot.slane %v531_v25, 4  ;;  %v560_v34 = vmul.f32 %v2307_v4, %v559_v30  ;;  %s2705_s12 = sld [smem:[#allocation2 + $0x43]] }
  0x5e   :  { %v536_v33 = vrot.slane %v532_v26, 4  ;;  %v514_v35 = vadd.f32 %v511_v24, %v501_v27  ;;  %v561_v36 = vmul.f32 %v2309_v5, %v559_v30  ;;  %v565_v37 = vstv %s2542_s13  ;;  %s2709_s13 = sld [smem:[#allocation2 + $0x44]] }
  0x5f   :  { %v578_v38 = vstv %s2547_s14  ;;  %v528_v39 = vadd.f32 %v523_v21, %v515_v31  ;;  %v566_v41 = vmul.f32 %v2307_v4, %v565_v37  ;;  %v567_v42 = vmul.f32 %v2309_v5, %v565_v37  ;;  %s2716_s14 = sld [smem:[#allocation2 + $0x45]] }
  0x60   :  { %v537_v40 = vsel %vm109_vm3, %v535_v32, %v536_v33  ;;  %v527_v43 = vadd.f32 %v524_v28, %v514_v35  ;;  %v579_v44 = vmul.f32 %v2307_v4, %v578_v38  ;;  %v580_v45 = vmul.f32 %v2309_v5, %v578_v38 }
  0x61   :  { %v591_v46 = vstv %s2553_s15  ;;  %v541_v47 = vadd.f32 %v536_v33, %v528_v39  ;;  %v570_v48 = vrot.slane %v566_v41, 1  ;;  %v571_v49 = vrot.slane %v567_v42, 1  ;;  %s2723_s15 = sld [smem:[#allocation2 + $0x46]] }
  0x62   :  { %v592_v50 = vmul.f32 %v2307_v4, %v591_v46  ;;  %v540_v51 = vadd.f32 %v537_v40, %v527_v43  ;;  %v583_v52 = vrot.slane %v579_v44, 2  ;;  %v584_v53 = vrot.slane %v580_v45, 2 }
  0x63   :  { %v593_v54 = vmul.f32 %v2309_v5, %v591_v46  ;;  %v545_v55 = vadd.f32 %v543_v29, %v541_v47  ;;  %v572_v56 = vsel %vm67_vm0, %v570_v48, %v571_v49  ;;  %v576_v57 = vadd.f32 %v571_v49, %v561_v36 }
  0x64   :  { %v596_v58 = vrot.slane %v592_v50, 3  ;;  %v544_v59 = vadd.f32 %v543_v29, %v540_v51  ;;  %v575_v60 = vadd.f32 %v572_v56, %v560_v34  ;;  %v585_v61 = vsel %vm81_vm1, %v583_v52, %v584_v53 }
  0x65   :  { %v597_v62 = vrot.slane %v593_v54, 3  ;;  %v547_v63 = vmax.f32 %v545_v55, 0.0  ;;  %v589_v0 = vadd.f32 %v584_v53, %v576_v57  ;;  %v604_v1 = vstv %s2563_s16  ;;  %s2727_s16 = sld [smem:[#allocation2 + $0x47]] }
  0x66   :  { %v617_v2 = vstv %s2566_s17  ;;  %v546_v3 = vmax.f32 %v544_v59, 0.0  ;;  %v588_v12 = vadd.f32 %v585_v61, %v575_v60  ;;  %v605_v14 = vmul.f32 %v2307_v4, %v604_v1  ;;  %s2735_s17 = sld [smem:[#allocation2 + $0x48]] }
  0x67   :  { %v598_v13 = vsel %vm95_vm2, %v596_v58, %v597_v62  ;;  %v549_v15 = vsel %vm299_vm4, %v547_v63, -inf  ;;  %v602_v16 = vadd.f32 %v597_v62, %v589_v0  ;;  %v606_v17 = vmul.f32 %v2309_v5, %v604_v1 }
  0x68   :  { %v618_v18 = vmul.f32 %v2313_v6, %v617_v2  ;;  %v548_v19 = vsel %vm297_vm5, %v546_v3, -inf  ;;  %v601_v20 = vadd.f32 %v598_v13, %v588_v12  ;;  %v609_v21 = vrot.slane %v605_v14, 4 }
  0x69   :  { %v619_v22 = vmul.f32 %v2315_v7, %v617_v2  ;;  %v550_v23 = vmax.f32 %v548_v19, %v549_v15  ;;  %v610_v24 = vrot.slane %v606_v17, 4  ;;  %v623_v25 = vstv %s2577_s18  ;;  %s2738_s18 = sld [smem:[#allocation2 + $0x49]] }
  0x6a   :  { %v636_v26 = vstv %s2580_s19  ;;  %v624_v27 = vmul.f32 %v2313_v6, %v623_v25  ;;  %v625_v28 = vmul.f32 %v2315_v7, %v623_v25  ;;  %v649_v34 = vstv %s2584_s20  ;;  %s2746_s19 = sld [smem:[#allocation2 + $0x4a]] }
  0x6b   :  { %v637_v29 = vmul.f32 %v2313_v6, %v636_v26  ;;  %v638_v30 = vmul.f32 %v2315_v7, %v636_v26  ;;  %v551_v31 = vrot.slane %v550_v23, 4  ;;  %v611_v32 = vsel %vm109_vm3, %v609_v21, %v610_v24  ;;  %s2751_s20 = sld [smem:[#allocation2 + $0x4b]] }
  0x6c   :  { %v615_v33 = vadd.f32 %v610_v24, %v602_v16  ;;  %v614_v35 = vadd.f32 %v611_v32, %v601_v20  ;;  %v628_v36 = vrot.slane %v624_v27, 1  ;;  %v629_v37 = vrot.slane %v625_v28, 1 }
  0x6d   :  { %v641_v38 = vrot.slane %v637_v29, 2  ;;  %v552_v39 = vmax.f32 %v550_v23, %v551_v31  ;;  %v642_v41 = vrot.slane %v638_v30, 2  ;;  %v650_v42 = vmul.f32 %v2313_v6, %v649_v34 }
  0x6e   :  { %v621_v40 = vadd.f32 %v619_v22, %v615_v33  ;;  %v620_v43 = vadd.f32 %v618_v18, %v614_v35  ;;  %v630_v44 = vsel %vm67_vm0, %v628_v36, %v629_v37  ;;  %v651_v45 = vmul.f32 %v2315_v7, %v649_v34 }
  0x6f   :  { %v662_v46 = vstv %s2591_s21  ;;  %v553_v47 = vrot.slane %v552_v39, 2  ;;  %v643_v49 = vsel %vm81_vm1, %v641_v38, %v642_v41  ;;  %v654_v50 = vrot.slane %v650_v42, 3  ;;  %s2755_s21 = sld [smem:[#allocation2 + $0x4c]] }
  0x70   :  { %v634_v48 = vadd.f32 %v629_v37, %v621_v40  ;;  %v633_v51 = vadd.f32 %v630_v44, %v620_v43  ;;  %v655_v52 = vrot.slane %v651_v45, 3  ;;  %v663_v53 = vmul.f32 %v2313_v6, %v662_v46 }
  0x71   :  { %v664_v54 = vmul.f32 %v2315_v7, %v662_v46  ;;  %v554_v55 = vmax.f32 %v552_v39, %v553_v47  ;;  %v675_v57 = vstv %s2598_s22  ;;  %v681_v58 = vstv %s2602_s1  ;;  %s2760_s22 = sld [smem:[#allocation2 + $0x4d]] }
  0x72   :  { %v647_v56 = vadd.f32 %v642_v41, %v634_v48  ;;  %v646_v59 = vadd.f32 %v643_v49, %v633_v51  ;;  %v656_v60 = vsel %vm95_vm2, %v654_v50, %v655_v52  ;;  %v667_v61 = vrot.slane %v663_v53, 4  ;;  %s2764_s1 = sld [smem:[#allocation2 + $0x4e]] }
  0x73   :  { %v668_v62 = vrot.slane %v664_v54, 4  ;;  %v555_v63 = vrot.slane %v554_v55, 1  ;;  %v676_v1 = vmul.f32 %v2317_v8, %v675_v57  ;;  %v677_v2 = vmul.f32 %v2321_v9, %v675_v57 }
  0x74   :  { %v660_v0 = vadd.f32 %v655_v52, %v647_v56  ;;  %v659_v3 = vadd.f32 %v656_v60, %v646_v59  ;;  %v682_v13 = vmul.f32 %v2317_v8, %v681_v58  ;;  %v683_v14 = vmul.f32 %v2321_v9, %v681_v58 }
  0x75   :  { %v669_v12 = vsel %vm109_vm3, %v667_v61, %v668_v62  ;;  %v556_v15 = vmax.f32 %v554_v55, %v555_v63  ;;  %v694_v17 = vstv %s2610_s23  ;;  %v707_v18 = vstv %s2613_s24  ;;  %s2928_s23 = sld [smem:[#allocation2 + $0x67]] }
  0x76   :  { %v673_v16 = vadd.f32 %v668_v62, %v660_v0  ;;  %v672_v19 = vadd.f32 %v669_v12, %v659_v3  ;;  %v686_v20 = vrot.slane %v682_v13, 1  ;;  %v687_v21 = vrot.slane %v683_v14, 1  ;;  %s2938_s24 = sld [smem:[#allocation2 + $0x68]] }
  0x77   :  { %v695_v22 = vmul.f32 %v2317_v8, %v694_v17  ;;  %557 = vst.msk [vmem:[%s3311_s3 + $0x1] sm:$0x1] %vm308_vm6, %v556_v15  ;;  %v696_v24 = vmul.f32 %v2321_v9, %v694_v17  ;;  %v708_v25 = vmul.f32 %v2317_v8, %v707_v18  ;;  %v709_v26 = vmul.f32 %v2321_v9, %v707_v18 }
  0x78   :  { %v679_v23 = vadd.f32 %v677_v2, %v673_v16  ;;  %v678_v27 = vadd.f32 %v676_v1, %v672_v19  ;;  %v688_v28 = vsel %vm67_vm0, %v686_v20, %v687_v21  ;;  %v720_v30 = vstv %s2621_s2  ;;  %s2779_s2 = sld [smem:[#allocation2 + $0x4f]] }
  0x79   :  { %v699_v29 = vrot.slane %v695_v22, 2  ;;  %v700_v32 = vrot.slane %v696_v24, 2  ;;  %v712_v33 = vrot.slane %v708_v25, 3  ;;  %v713_v34 = vrot.slane %v709_v26, 3 }
  0x7a   :  { %v692_v31 = vadd.f32 %v687_v21, %v679_v23  ;;  %v691_v35 = vadd.f32 %v688_v28, %v678_v27  ;;  %v721_v36 = vmul.f32 %v2317_v8, %v720_v30  ;;  %v722_v37 = vmul.f32 %v2321_v9, %v720_v30 }
  0x7b   :  { %v733_v38 = vstv %s2626_s25  ;;  %v701_v39 = vsel %vm81_vm1, %v699_v29, %v700_v32  ;;  %v714_v41 = vsel %vm95_vm2, %v712_v33, %v713_v34  ;;  %v739_v48 = vstv %s2630_s26  ;;  %s2784_s25 = sld [smem:[#allocation4 + $0x3]] }
  0x7c   :  { %v705_v40 = vadd.f32 %v700_v32, %v692_v31  ;;  %v734_v42 = vmul.f32 %v2323_v10, %v733_v38  ;;  %v704_v43 = vadd.f32 %v701_v39, %v691_v35  ;;  %v725_v44 = vrot.slane %v721_v36, 4  ;;  %s2787_s26 = sld [smem:[#allocation2 + $0x50]] }
  0x7d   :  { %v726_v45 = vrot.slane %v722_v37, 4  ;;  %v735_v46 = vmul.f32 %v2325_v11, %v733_v38  ;;  %v752_v49 = vstv %s2635_s27  ;;  %v765_v50 = vstv %s2639_s28  ;;  %s2792_s27 = sld [smem:[#allocation2 + $0x51]] }
  0x7e   :  { %v718_v47 = vadd.f32 %v713_v34, %v705_v40  ;;  %v717_v51 = vadd.f32 %v714_v41, %v704_v43  ;;  %v740_v53 = vmul.f32 %v2323_v10, %v739_v48  ;;  %v741_v54 = vmul.f32 %v2325_v11, %v739_v48  ;;  %s2797_s28 = sld [smem:[#allocation2 + $0x52]] }
  0x7f   :  { %v727_v52 = vsel %vm109_vm3, %v725_v44, %v726_v45  ;;  %v753_v56 = vmul.f32 %v2323_v10, %v752_v49  ;;  %v754_v57 = vmul.f32 %v2325_v11, %v752_v49  ;;  %v766_v58 = vmul.f32 %v2323_v10, %v765_v50 }
  0x80   :  { %v731_v55 = vadd.f32 %v726_v45, %v718_v47  ;;  %v730_v59 = vadd.f32 %v727_v52, %v717_v51  ;;  %v744_v60 = vrot.slane %v740_v53, 1  ;;  %v745_v61 = vrot.slane %v741_v54, 1 }
  0x81   :  { %v767_v62 = vmul.f32 %v2325_v11, %v765_v50  ;;  %v757_v0 = vrot.slane %v753_v56, 2  ;;  %v758_v1 = vrot.slane %v754_v57, 2  ;;  %v770_v2 = vrot.slane %v766_v58, 3 }
  0x82   :  { %v737_v63 = vadd.f32 %v735_v46, %v731_v55  ;;  %v736_v3 = vadd.f32 %v734_v42, %v730_v59  ;;  %v746_v12 = vsel %vm67_vm0, %v744_v60, %v745_v61  ;;  %v778_v14 = vstv %s2654_s4  ;;  %s2816_s4 = sld [smem:[#allocation2 + $0x55]] }
  0x83   :  { %v771_v13 = vrot.slane %v767_v62, 3  ;;  %v759_v16 = vsel %vm81_vm1, %v757_v0, %v758_v1  ;;  %v779_v17 = vmul.f32 %v2323_v10, %v778_v14  ;;  %v780_v18 = vmul.f32 %v2325_v11, %v778_v14 }
  0x84   :  { %v750_v15 = vadd.f32 %v745_v61, %v737_v63  ;;  %v749_v19 = vadd.f32 %v746_v12, %v736_v3  ;;  %v791_v21 = vstv %s2659_s0  ;;  %v807_v22 = vstv %s2662_s5  ;;  %s2827_s0 = sld [smem:[#allocation2 + $0x56]] }
  0x85   :  { %v772_v20 = vsel %vm95_vm2, %v770_v2, %v771_v13  ;;  %v783_v24 = vrot.slane %v779_v17, 4  ;;  %v784_v25 = vrot.slane %v780_v18, 4  ;;  %v808_v26 = vmul.f32 %v2307_v4, %v807_v22  ;;  %s2830_s5 = sld [smem:[#allocation2 + $0x57]] }
  0x86   :  { %v763_v23 = vadd.f32 %v758_v1, %v750_v15  ;;  %v762_v27 = vadd.f32 %v759_v16, %v749_v19  ;;  %v809_v28 = vmul.f32 %v2309_v5, %v807_v22  ;;  %v813_v29 = vstv %s2667_s6  ;;  %s2834_s6 = sld [smem:[#allocation2 + $0x58]] }
  0x87   :  { %v826_v30 = vstv %s2672_s7  ;;  %v785_v32 = vsel %vm109_vm3, %v783_v24, %v784_v25  ;;  %v814_v33 = vmul.f32 %v2307_v4, %v813_v29  ;;  %v815_v34 = vmul.f32 %v2309_v5, %v813_v29  ;;  %s2841_s7 = sld [smem:[#allocation2 + $0x59]] }
  0x88   :  { %v776_v31 = vadd.f32 %v771_v13, %v763_v23  ;;  %v775_v35 = vadd.f32 %v772_v20, %v762_v27  ;;  %v827_v36 = vmul.f32 %v2307_v4, %v826_v30  ;;  %v828_v37 = vmul.f32 %v2309_v5, %v826_v30 }
  0x89   :  { %v839_v38 = vstv %s2678_s8  ;;  %v818_v40 = vrot.slane %v814_v33, 1  ;;  %v819_v41 = vrot.slane %v815_v34, 1  ;;  %v852_v57 = vstv %s2688_s9  ;;  %s2848_s8 = sld [smem:[#allocation2 + $0x5a]] }
  0x8a   :  { %v789_v39 = vadd.f32 %v784_v25, %v776_v31  ;;  %v840_v42 = vmul.f32 %v2307_v4, %v839_v38  ;;  %v788_v43 = vadd.f32 %v785_v32, %v775_v35  ;;  %v831_v44 = vrot.slane %v827_v36, 2  ;;  %s2852_s9 = sld [smem:[#allocation2 + $0x5b]] }
  0x8b   :  { %v832_v45 = vrot.slane %v828_v37, 2  ;;  %v841_v46 = vmul.f32 %v2309_v5, %v839_v38  ;;  %v820_v48 = vsel %vm67_vm0, %v818_v40, %v819_v41  ;;  %v824_v49 = vadd.f32 %v819_v41, %v809_v28 }
  0x8c   :  { %v793_v47 = vadd.f32 %v791_v21, %v789_v39  ;;  %v844_v50 = vrot.slane %v840_v42, 3  ;;  %v792_v51 = vadd.f32 %v791_v21, %v788_v43  ;;  %v823_v52 = vadd.f32 %v820_v48, %v808_v26 }
  0x8d   :  { %v833_v53 = vsel %vm81_vm1, %v831_v44, %v832_v45  ;;  %v845_v54 = vrot.slane %v841_v46, 3  ;;  %v837_v56 = vadd.f32 %v832_v45, %v824_v49  ;;  %v865_v58 = vstv %s2691_s10  ;;  %s2860_s10 = sld [smem:[#allocation2 + $0x5c]] }
  0x8e   :  { %v795_v55 = vmax.f32 %v793_v47, 0.0  ;;  %v794_v59 = vmax.f32 %v792_v51, 0.0  ;;  %v836_v60 = vadd.f32 %v833_v53, %v823_v52  ;;  %v853_v62 = vmul.f32 %v2307_v4, %v852_v57 }
  0x8f   :  { %v846_v61 = vsel %vm95_vm2, %v844_v50, %v845_v54  ;;  %v850_v0 = vadd.f32 %v845_v54, %v837_v56  ;;  %v854_v1 = vmul.f32 %v2309_v5, %v852_v57  ;;  %v866_v2 = vmul.f32 %v2313_v6, %v865_v58 }
  0x90   :  { %v797_v63 = vsel %vm299_vm4, %v795_v55, -inf  ;;  %v796_v3 = vsel %vm297_vm5, %v794_v59, -inf  ;;  %v849_v12 = vadd.f32 %v846_v61, %v836_v60  ;;  %v857_v13 = vrot.slane %v853_v62, 4 }
  0x91   :  { %v867_v14 = vmul.f32 %v2315_v7, %v865_v58  ;;  %v798_v15 = vmax.f32 %v796_v3, %v797_v63  ;;  %v858_v16 = vrot.slane %v854_v1, 4  ;;  %v871_v17 = vstv %s2702_s11  ;;  %s2863_s11 = sld [smem:[#allocation2 + $0x5d]] }
  0x92   :  { %v884_v18 = vstv %s2705_s12  ;;  %v872_v19 = vmul.f32 %v2313_v6, %v871_v17  ;;  %v873_v20 = vmul.f32 %v2315_v7, %v871_v17  ;;  %v897_v26 = vstv %s2709_s13  ;;  %s2871_s12 = sld [smem:[#allocation2 + $0x5e]] }
  0x93   :  { %v885_v21 = vmul.f32 %v2313_v6, %v884_v18  ;;  %v886_v22 = vmul.f32 %v2315_v7, %v884_v18  ;;  %v799_v23 = vrot.slane %v798_v15, 4  ;;  %v859_v24 = vsel %vm109_vm3, %v857_v13, %v858_v16  ;;  %s2876_s13 = sld [smem:[#allocation2 + $0x5f]] }
  0x94   :  { %v863_v25 = vadd.f32 %v858_v16, %v850_v0  ;;  %v862_v27 = vadd.f32 %v859_v24, %v849_v12  ;;  %v876_v28 = vrot.slane %v872_v19, 1  ;;  %v877_v29 = vrot.slane %v873_v20, 1 }
  0x95   :  { %v889_v30 = vrot.slane %v885_v21, 2  ;;  %v800_v31 = vmax.f32 %v798_v15, %v799_v23  ;;  %v890_v33 = vrot.slane %v886_v22, 2  ;;  %v898_v34 = vmul.f32 %v2313_v6, %v897_v26 }
  0x96   :  { %v869_v32 = vadd.f32 %v867_v14, %v863_v25  ;;  %v868_v35 = vadd.f32 %v866_v2, %v862_v27  ;;  %v878_v36 = vsel %vm67_vm0, %v876_v28, %v877_v29  ;;  %v899_v37 = vmul.f32 %v2315_v7, %v897_v26 }
  0x97   :  { %v910_v38 = vstv %s2716_s14  ;;  %v801_v39 = vrot.slane %v800_v31, 2  ;;  %v891_v41 = vsel %vm81_vm1, %v889_v30, %v890_v33  ;;  %v902_v42 = vrot.slane %v898_v34, 3  ;;  %s2880_s14 = sld [smem:[#allocation2 + $0x60]] }
  0x98   :  { %v882_v40 = vadd.f32 %v877_v29, %v869_v32  ;;  %v881_v43 = vadd.f32 %v878_v36, %v868_v35  ;;  %v903_v44 = vrot.slane %v899_v37, 3  ;;  %v911_v45 = vmul.f32 %v2313_v6, %v910_v38 }
  0x99   :  { %v912_v46 = vmul.f32 %v2315_v7, %v910_v38  ;;  %v802_v47 = vmax.f32 %v800_v31, %v801_v39  ;;  %v923_v49 = vstv %s2723_s15  ;;  %v929_v50 = vstv %s2727_s16  ;;  %s2885_s15 = sld [smem:[#allocation2 + $0x61]] }
  0x9a   :  { %v895_v48 = vadd.f32 %v890_v33, %v882_v40  ;;  %v894_v51 = vadd.f32 %v891_v41, %v881_v43  ;;  %v904_v52 = vsel %vm95_vm2, %v902_v42, %v903_v44  ;;  %v915_v53 = vrot.slane %v911_v45, 4  ;;  %s2889_s16 = sld [smem:[#allocation2 + $0x62]] }
  0x9b   :  { %v916_v54 = vrot.slane %v912_v46, 4  ;;  %v803_v55 = vrot.slane %v802_v47, 1  ;;  %v924_v57 = vmul.f32 %v2317_v8, %v923_v49  ;;  %v925_v58 = vmul.f32 %v2321_v9, %v923_v49 }
  0x9c   :  { %v908_v56 = vadd.f32 %v903_v44, %v895_v48  ;;  %v907_v59 = vadd.f32 %v904_v52, %v894_v51  ;;  %v930_v61 = vmul.f32 %v2317_v8, %v929_v50  ;;  %v931_v62 = vmul.f32 %v2321_v9, %v929_v50 }
  0x9d   :  { %v917_v60 = vsel %vm109_vm3, %v915_v53, %v916_v54  ;;  %v804_v63 = vmax.f32 %v802_v47, %v803_v55  ;;  %v942_v1 = vstv %s2735_s17  ;;  %v955_v2 = vstv %s2738_s18  ;;  %s3053_s17 = sld [smem:[#allocation2 + $0x7b]] }
  0x9e   :  { %v921_v0 = vadd.f32 %v916_v54, %v908_v56  ;;  %v920_v3 = vadd.f32 %v917_v60, %v907_v59  ;;  %v934_v12 = vrot.slane %v930_v61, 1  ;;  %v935_v13 = vrot.slane %v931_v62, 1  ;;  %s3063_s18 = sld [smem:[#allocation2 + $0x7c]] }
  0x9f   :  { %v943_v14 = vmul.f32 %v2317_v8, %v942_v1  ;;  %805 = vst.msk [vmem:[%s3311_s3 + $0x2] sm:$0x1] %vm308_vm6, %v804_v63  ;;  %v944_v16 = vmul.f32 %v2321_v9, %v942_v1  ;;  %v956_v17 = vmul.f32 %v2317_v8, %v955_v2  ;;  %v957_v18 = vmul.f32 %v2321_v9, %v955_v2 }
  0xa0   :  { %v927_v15 = vadd.f32 %v925_v58, %v921_v0  ;;  %v926_v19 = vadd.f32 %v924_v57, %v920_v3  ;;  %v936_v20 = vsel %vm67_vm0, %v934_v12, %v935_v13  ;;  %v968_v22 = vstv %s2746_s19  ;;  %s2904_s19 = sld [smem:[#allocation2 + $0x63]] }
  0xa1   :  { %v947_v21 = vrot.slane %v943_v14, 2  ;;  %v948_v24 = vrot.slane %v944_v16, 2  ;;  %v960_v25 = vrot.slane %v956_v17, 3  ;;  %v961_v26 = vrot.slane %v957_v18, 3 }
  0xa2   :  { %v940_v23 = vadd.f32 %v935_v13, %v927_v15  ;;  %v939_v27 = vadd.f32 %v936_v20, %v926_v19  ;;  %v969_v28 = vmul.f32 %v2317_v8, %v968_v22  ;;  %v970_v29 = vmul.f32 %v2321_v9, %v968_v22 }
  0xa3   :  { %v981_v30 = vstv %s2751_s20  ;;  %v949_v31 = vsel %vm81_vm1, %v947_v21, %v948_v24  ;;  %v962_v33 = vsel %vm95_vm2, %v960_v25, %v961_v26  ;;  %v987_v40 = vstv %s2755_s21  ;;  %s2909_s20 = sld [smem:[#allocation4 + $0x4]] }
  0xa4   :  { %v953_v32 = vadd.f32 %v948_v24, %v940_v23  ;;  %v982_v34 = vmul.f32 %v2323_v10, %v981_v30  ;;  %v952_v35 = vadd.f32 %v949_v31, %v939_v27  ;;  %v973_v36 = vrot.slane %v969_v28, 4  ;;  %s2912_s21 = sld [smem:[#allocation2 + $0x64]] }
  0xa5   :  { %v974_v37 = vrot.slane %v970_v29, 4  ;;  %v983_v38 = vmul.f32 %v2325_v11, %v981_v30  ;;  %v1000_v41 = vstv %s2760_s22  ;;  %v1013_v42 = vstv %s2764_s1  ;;  %s2917_s22 = sld [smem:[#allocation2 + $0x65]] }
  0xa6   :  { %v966_v39 = vadd.f32 %v961_v26, %v953_v32  ;;  %v965_v43 = vadd.f32 %v962_v33, %v952_v35  ;;  %v988_v45 = vmul.f32 %v2323_v10, %v987_v40  ;;  %v989_v46 = vmul.f32 %v2325_v11, %v987_v40  ;;  %s2922_s1 = sld [smem:[#allocation2 + $0x66]] }
  0xa7   :  { %v975_v44 = vsel %vm109_vm3, %v973_v36, %v974_v37  ;;  %v1001_v48 = vmul.f32 %v2323_v10, %v1000_v41  ;;  %v1002_v49 = vmul.f32 %v2325_v11, %v1000_v41  ;;  %v1014_v50 = vmul.f32 %v2323_v10, %v1013_v42 }
  0xa8   :  { %v979_v47 = vadd.f32 %v974_v37, %v966_v39  ;;  %v978_v51 = vadd.f32 %v975_v44, %v965_v43  ;;  %v992_v52 = vrot.slane %v988_v45, 1  ;;  %v993_v53 = vrot.slane %v989_v46, 1 }
  0xa9   :  { %v1015_v54 = vmul.f32 %v2325_v11, %v1013_v42  ;;  %v1005_v56 = vrot.slane %v1001_v48, 2  ;;  %v1006_v57 = vrot.slane %v1002_v49, 2  ;;  %v1018_v58 = vrot.slane %v1014_v50, 3 }
  0xaa   :  { %v985_v55 = vadd.f32 %v983_v38, %v979_v47  ;;  %v984_v59 = vadd.f32 %v982_v34, %v978_v51  ;;  %v994_v60 = vsel %vm67_vm0, %v992_v52, %v993_v53  ;;  %v1026_v62 = vstv %s2779_s2  ;;  %s2941_s2 = sld [smem:[#allocation2 + $0x69]] }
  0xab   :  { %v1019_v61 = vrot.slane %v1015_v54, 3  ;;  %v1007_v0 = vsel %vm81_vm1, %v1005_v56, %v1006_v57  ;;  %v1027_v1 = vmul.f32 %v2323_v10, %v1026_v62  ;;  %v1028_v2 = vmul.f32 %v2325_v11, %v1026_v62 }
  0xac   :  { %v998_v63 = vadd.f32 %v993_v53, %v985_v55  ;;  %v997_v3 = vadd.f32 %v994_v60, %v984_v59  ;;  %v1039_v13 = vstv %s2784_s25  ;;  %v1055_v14 = vstv %s2787_s26  ;;  %s2952_s25 = sld [smem:[#allocation2 + $0x6a]] }
  0xad   :  { %v1020_v12 = vsel %vm95_vm2, %v1018_v58, %v1019_v61  ;;  %v1031_v16 = vrot.slane %v1027_v1, 4  ;;  %v1032_v17 = vrot.slane %v1028_v2, 4  ;;  %v1056_v18 = vmul.f32 %v2307_v4, %v1055_v14  ;;  %s2955_s26 = sld [smem:[#allocation2 + $0x6b]] }
  0xae   :  { %v1011_v15 = vadd.f32 %v1006_v57, %v998_v63  ;;  %v1010_v19 = vadd.f32 %v1007_v0, %v997_v3  ;;  %v1057_v20 = vmul.f32 %v2309_v5, %v1055_v14  ;;  %v1061_v21 = vstv %s2792_s27  ;;  %s2959_s27 = sld [smem:[#allocation2 + $0x6c]] }
  0xaf   :  { %v1074_v22 = vstv %s2797_s28  ;;  %v1033_v24 = vsel %vm109_vm3, %v1031_v16, %v1032_v17  ;;  %v1062_v25 = vmul.f32 %v2307_v4, %v1061_v21  ;;  %v1063_v26 = vmul.f32 %v2309_v5, %v1061_v21  ;;  %s2966_s28 = sld [smem:[#allocation2 + $0x6d]] }
  0xb0   :  { %v1024_v23 = vadd.f32 %v1019_v61, %v1011_v15  ;;  %v1023_v27 = vadd.f32 %v1020_v12, %v1010_v19  ;;  %v1075_v28 = vmul.f32 %v2307_v4, %v1074_v22  ;;  %v1076_v29 = vmul.f32 %v2309_v5, %v1074_v22 }
  0xb1   :  { %v1087_v30 = vstv %s2803_s29  ;;  %v1066_v32 = vrot.slane %v1062_v25, 1  ;;  %v1067_v33 = vrot.slane %v1063_v26, 1  ;;  %v1100_v49 = vstv %s2813_s30  ;;  %s2973_s29 = sld [smem:[#allocation2 + $0x6e]] }
  0xb2   :  { %v1037_v31 = vadd.f32 %v1032_v17, %v1024_v23  ;;  %v1088_v34 = vmul.f32 %v2307_v4, %v1087_v30  ;;  %v1036_v35 = vadd.f32 %v1033_v24, %v1023_v27  ;;  %v1079_v36 = vrot.slane %v1075_v28, 2  ;;  %s2977_s30 = sld [smem:[#allocation2 + $0x6f]] }
  0xb3   :  { %v1080_v37 = vrot.slane %v1076_v29, 2  ;;  %v1089_v38 = vmul.f32 %v2309_v5, %v1087_v30  ;;  %v1068_v40 = vsel %vm67_vm0, %v1066_v32, %v1067_v33  ;;  %v1072_v41 = vadd.f32 %v1067_v33, %v1057_v20 }
  0xb4   :  { %v1041_v39 = vadd.f32 %v1039_v13, %v1037_v31  ;;  %v1092_v42 = vrot.slane %v1088_v34, 3  ;;  %v1040_v43 = vadd.f32 %v1039_v13, %v1036_v35  ;;  %v1071_v44 = vadd.f32 %v1068_v40, %v1056_v18 }
  0xb5   :  { %v1081_v45 = vsel %vm81_vm1, %v1079_v36, %v1080_v37  ;;  %v1093_v46 = vrot.slane %v1089_v38, 3  ;;  %v1085_v48 = vadd.f32 %v1080_v37, %v1072_v41  ;;  %v1113_v50 = vstv %s2816_s4  ;;  %s2985_s4 = sld [smem:[#allocation2 + $0x70]] }
  0xb6   :  { %v1043_v47 = vmax.f32 %v1041_v39, 0.0  ;;  %v1042_v51 = vmax.f32 %v1040_v43, 0.0  ;;  %v1084_v52 = vadd.f32 %v1081_v45, %v1071_v44  ;;  %v1101_v54 = vmul.f32 %v2307_v4, %v1100_v49 }
  0xb7   :  { %v1094_v53 = vsel %vm95_vm2, %v1092_v42, %v1093_v46  ;;  %v1098_v56 = vadd.f32 %v1093_v46, %v1085_v48  ;;  %v1102_v57 = vmul.f32 %v2309_v5, %v1100_v49  ;;  %v1114_v58 = vmul.f32 %v2313_v6, %v1113_v50 }
  0xb8   :  { %v1045_v55 = vsel %vm299_vm4, %v1043_v47, -inf  ;;  %v1044_v59 = vsel %vm297_vm5, %v1042_v51, -inf  ;;  %v1097_v60 = vadd.f32 %v1094_v53, %v1084_v52  ;;  %v1105_v61 = vrot.slane %v1101_v54, 4 }
  0xb9   :  { %v1115_v62 = vmul.f32 %v2315_v7, %v1113_v50  ;;  %v1046_v63 = vmax.f32 %v1044_v59, %v1045_v55  ;;  %v1106_v0 = vrot.slane %v1102_v57, 4  ;;  %v1119_v1 = vstv %s2827_s0  ;;  %s2988_s0 = sld [smem:[#allocation2 + $0x71]] }
  0xba   :  { %v1132_v2 = vstv %s2830_s5  ;;  %v1120_v3 = vmul.f32 %v2313_v6, %v1119_v1  ;;  %v1121_v12 = vmul.f32 %v2315_v7, %v1119_v1  ;;  %v1145_v18 = vstv %s2834_s6  ;;  %s2996_s5 = sld [smem:[#allocation2 + $0x72]] }
  0xbb   :  { %v1133_v13 = vmul.f32 %v2313_v6, %v1132_v2  ;;  %v1134_v14 = vmul.f32 %v2315_v7, %v1132_v2  ;;  %v1047_v15 = vrot.slane %v1046_v63, 4  ;;  %v1107_v16 = vsel %vm109_vm3, %v1105_v61, %v1106_v0  ;;  %s3001_s6 = sld [smem:[#allocation2 + $0x73]] }
  0xbc   :  { %v1111_v17 = vadd.f32 %v1106_v0, %v1098_v56  ;;  %v1110_v19 = vadd.f32 %v1107_v16, %v1097_v60  ;;  %v1124_v20 = vrot.slane %v1120_v3, 1  ;;  %v1125_v21 = vrot.slane %v1121_v12, 1 }
  0xbd   :  { %v1137_v22 = vrot.slane %v1133_v13, 2  ;;  %v1048_v23 = vmax.f32 %v1046_v63, %v1047_v15  ;;  %v1138_v25 = vrot.slane %v1134_v14, 2  ;;  %v1146_v26 = vmul.f32 %v2313_v6, %v1145_v18 }
  0xbe   :  { %v1117_v24 = vadd.f32 %v1115_v62, %v1111_v17  ;;  %v1116_v27 = vadd.f32 %v1114_v58, %v1110_v19  ;;  %v1126_v28 = vsel %vm67_vm0, %v1124_v20, %v1125_v21  ;;  %v1147_v29 = vmul.f32 %v2315_v7, %v1145_v18 }
  0xbf   :  { %v1158_v30 = vstv %s2841_s7  ;;  %v1049_v31 = vrot.slane %v1048_v23, 2  ;;  %v1139_v33 = vsel %vm81_vm1, %v1137_v22, %v1138_v25  ;;  %v1150_v34 = vrot.slane %v1146_v26, 3  ;;  %s3005_s7 = sld [smem:[#allocation2 + $0x74]] }
  0xc0   :  { %v1130_v32 = vadd.f32 %v1125_v21, %v1117_v24  ;;  %v1129_v35 = vadd.f32 %v1126_v28, %v1116_v27  ;;  %v1151_v36 = vrot.slane %v1147_v29, 3  ;;  %v1159_v37 = vmul.f32 %v2313_v6, %v1158_v30 }
  0xc1   :  { %v1160_v38 = vmul.f32 %v2315_v7, %v1158_v30  ;;  %v1050_v39 = vmax.f32 %v1048_v23, %v1049_v31  ;;  %v1171_v41 = vstv %s2848_s8  ;;  %v1177_v42 = vstv %s2852_s9  ;;  %s3010_s8 = sld [smem:[#allocation2 + $0x75]] }
  0xc2   :  { %v1143_v40 = vadd.f32 %v1138_v25, %v1130_v32  ;;  %v1142_v43 = vadd.f32 %v1139_v33, %v1129_v35  ;;  %v1152_v44 = vsel %vm95_vm2, %v1150_v34, %v1151_v36  ;;  %v1163_v45 = vrot.slane %v1159_v37, 4  ;;  %s3014_s9 = sld [smem:[#allocation2 + $0x76]] }
  0xc3   :  { %v1164_v46 = vrot.slane %v1160_v38, 4  ;;  %v1051_v47 = vrot.slane %v1050_v39, 1  ;;  %v1172_v49 = vmul.f32 %v2317_v8, %v1171_v41  ;;  %v1173_v50 = vmul.f32 %v2321_v9, %v1171_v41 }
  0xc4   :  { %v1156_v48 = vadd.f32 %v1151_v36, %v1143_v40  ;;  %v1155_v51 = vadd.f32 %v1152_v44, %v1142_v43  ;;  %v1178_v53 = vmul.f32 %v2317_v8, %v1177_v42  ;;  %v1179_v54 = vmul.f32 %v2321_v9, %v1177_v42 }
  0xc5   :  { %v1165_v52 = vsel %vm109_vm3, %v1163_v45, %v1164_v46  ;;  %v1052_v55 = vmax.f32 %v1050_v39, %v1051_v47  ;;  %v1190_v57 = vstv %s2860_s10  ;;  %v1203_v58 = vstv %s2863_s11  ;;  %s3178_s10 = sld [smem:[#allocation2 + $0x8f]] }
  0xc6   :  { %v1169_v56 = vadd.f32 %v1164_v46, %v1156_v48  ;;  %v1168_v59 = vadd.f32 %v1165_v52, %v1155_v51  ;;  %v1182_v60 = vrot.slane %v1178_v53, 1  ;;  %v1183_v61 = vrot.slane %v1179_v54, 1  ;;  %s3188_s11 = sld [smem:[#allocation2 + $0x90]] }
  0xc7   :  { %v1191_v62 = vmul.f32 %v2317_v8, %v1190_v57  ;;  %1053 = vst.msk [vmem:[%s3311_s3 + $0x3] sm:$0x1] %vm308_vm6, %v1052_v55  ;;  %v1192_v0 = vmul.f32 %v2321_v9, %v1190_v57  ;;  %v1204_v1 = vmul.f32 %v2317_v8, %v1203_v58  ;;  %v1205_v2 = vmul.f32 %v2321_v9, %v1203_v58 }
  0xc8   :  { %v1175_v63 = vadd.f32 %v1173_v50, %v1169_v56  ;;  %v1174_v3 = vadd.f32 %v1172_v49, %v1168_v59  ;;  %v1184_v12 = vsel %vm67_vm0, %v1182_v60, %v1183_v61  ;;  %v1216_v14 = vstv %s2871_s12  ;;  %s3029_s12 = sld [smem:[#allocation2 + $0x77]] }
  0xc9   :  { %v1195_v13 = vrot.slane %v1191_v62, 2  ;;  %v1196_v16 = vrot.slane %v1192_v0, 2  ;;  %v1208_v17 = vrot.slane %v1204_v1, 3  ;;  %v1209_v18 = vrot.slane %v1205_v2, 3 }
  0xca   :  { %v1188_v15 = vadd.f32 %v1183_v61, %v1175_v63  ;;  %v1187_v19 = vadd.f32 %v1184_v12, %v1174_v3  ;;  %v1217_v20 = vmul.f32 %v2317_v8, %v1216_v14  ;;  %v1218_v21 = vmul.f32 %v2321_v9, %v1216_v14 }
  0xcb   :  { %v1229_v22 = vstv %s2876_s13  ;;  %v1197_v23 = vsel %vm81_vm1, %v1195_v13, %v1196_v16  ;;  %v1210_v25 = vsel %vm95_vm2, %v1208_v17, %v1209_v18  ;;  %v1235_v32 = vstv %s2880_s14  ;;  %s3034_s13 = sld [smem:[#allocation4 + $0x5]] }
  0xcc   :  { %v1201_v24 = vadd.f32 %v1196_v16, %v1188_v15  ;;  %v1230_v26 = vmul.f32 %v2323_v10, %v1229_v22  ;;  %v1200_v27 = vadd.f32 %v1197_v23, %v1187_v19  ;;  %v1221_v28 = vrot.slane %v1217_v20, 4  ;;  %s3037_s14 = sld [smem:[#allocation2 + $0x78]] }
  0xcd   :  { %v1222_v29 = vrot.slane %v1218_v21, 4  ;;  %v1231_v30 = vmul.f32 %v2325_v11, %v1229_v22  ;;  %v1248_v33 = vstv %s2885_s15  ;;  %v1261_v34 = vstv %s2889_s16  ;;  %s3042_s15 = sld [smem:[#allocation2 + $0x79]] }
  0xce   :  { %v1214_v31 = vadd.f32 %v1209_v18, %v1201_v24  ;;  %v1213_v35 = vadd.f32 %v1210_v25, %v1200_v27  ;;  %v1236_v37 = vmul.f32 %v2323_v10, %v1235_v32  ;;  %v1237_v38 = vmul.f32 %v2325_v11, %v1235_v32  ;;  %s3047_s16 = sld [smem:[#allocation2 + $0x7a]] }
  0xcf   :  { %v1223_v36 = vsel %vm109_vm3, %v1221_v28, %v1222_v29  ;;  %v1249_v40 = vmul.f32 %v2323_v10, %v1248_v33  ;;  %v1250_v41 = vmul.f32 %v2325_v11, %v1248_v33  ;;  %v1262_v42 = vmul.f32 %v2323_v10, %v1261_v34 }
  0xd0   :  { %v1227_v39 = vadd.f32 %v1222_v29, %v1214_v31  ;;  %v1226_v43 = vadd.f32 %v1223_v36, %v1213_v35  ;;  %v1240_v44 = vrot.slane %v1236_v37, 1  ;;  %v1241_v45 = vrot.slane %v1237_v38, 1 }
  0xd1   :  { %v1263_v46 = vmul.f32 %v2325_v11, %v1261_v34  ;;  %v1253_v48 = vrot.slane %v1249_v40, 2  ;;  %v1254_v49 = vrot.slane %v1250_v41, 2  ;;  %v1266_v50 = vrot.slane %v1262_v42, 3 }
  0xd2   :  { %v1233_v47 = vadd.f32 %v1231_v30, %v1227_v39  ;;  %v1232_v51 = vadd.f32 %v1230_v26, %v1226_v43  ;;  %v1242_v52 = vsel %vm67_vm0, %v1240_v44, %v1241_v45  ;;  %v1274_v54 = vstv %s2904_s19  ;;  %s3066_s19 = sld [smem:[#allocation2 + $0x7d]] }
  0xd3   :  { %v1267_v53 = vrot.slane %v1263_v46, 3  ;;  %v1255_v56 = vsel %vm81_vm1, %v1253_v48, %v1254_v49  ;;  %v1275_v57 = vmul.f32 %v2323_v10, %v1274_v54  ;;  %v1276_v58 = vmul.f32 %v2325_v11, %v1274_v54 }
  0xd4   :  { %v1246_v55 = vadd.f32 %v1241_v45, %v1233_v47  ;;  %v1245_v59 = vadd.f32 %v1242_v52, %v1232_v51  ;;  %v1287_v61 = vstv %s2909_s20  ;;  %v1303_v62 = vstv %s2912_s21  ;;  %s3077_s20 = sld [smem:[#allocation2 + $0x7e]] }
  0xd5   :  { %v1268_v60 = vsel %vm95_vm2, %v1266_v50, %v1267_v53  ;;  %v1279_v0 = vrot.slane %v1275_v57, 4  ;;  %v1280_v1 = vrot.slane %v1276_v58, 4  ;;  %v1304_v2 = vmul.f32 %v2307_v4, %v1303_v62  ;;  %s3080_s21 = sld [smem:[#allocation2 + $0x7f]] }
  0xd6   :  { %v1259_v63 = vadd.f32 %v1254_v49, %v1246_v55  ;;  %v1258_v3 = vadd.f32 %v1255_v56, %v1245_v59  ;;  %v1305_v12 = vmul.f32 %v2309_v5, %v1303_v62  ;;  %v1309_v13 = vstv %s2917_s22  ;;  %s3084_s22 = sld [smem:[#allocation2 + $0x80]] }
  0xd7   :  { %v1322_v14 = vstv %s2922_s1  ;;  %v1281_v16 = vsel %vm109_vm3, %v1279_v0, %v1280_v1  ;;  %v1310_v17 = vmul.f32 %v2307_v4, %v1309_v13  ;;  %v1311_v18 = vmul.f32 %v2309_v5, %v1309_v13  ;;  %s3091_s1 = sld [smem:[#allocation2 + $0x81]] }
  0xd8   :  { %v1272_v15 = vadd.f32 %v1267_v53, %v1259_v63  ;;  %v1271_v19 = vadd.f32 %v1268_v60, %v1258_v3  ;;  %v1323_v20 = vmul.f32 %v2307_v4, %v1322_v14  ;;  %v1324_v21 = vmul.f32 %v2309_v5, %v1322_v14 }
  0xd9   :  { %v1335_v22 = vstv %s2928_s23  ;;  %v1314_v24 = vrot.slane %v1310_v17, 1  ;;  %v1315_v25 = vrot.slane %v1311_v18, 1  ;;  %v1348_v41 = vstv %s2938_s24  ;;  %s3098_s23 = sld [smem:[#allocation2 + $0x82]] }
  0xda   :  { %v1285_v23 = vadd.f32 %v1280_v1, %v1272_v15  ;;  %v1336_v26 = vmul.f32 %v2307_v4, %v1335_v22  ;;  %v1284_v27 = vadd.f32 %v1281_v16, %v1271_v19  ;;  %v1327_v28 = vrot.slane %v1323_v20, 2  ;;  %s3102_s24 = sld [smem:[#allocation2 + $0x83]] }
  0xdb   :  { %v1328_v29 = vrot.slane %v1324_v21, 2  ;;  %v1337_v30 = vmul.f32 %v2309_v5, %v1335_v22  ;;  %v1316_v32 = vsel %vm67_vm0, %v1314_v24, %v1315_v25  ;;  %v1320_v33 = vadd.f32 %v1315_v25, %v1305_v12 }
  0xdc   :  { %v1289_v31 = vadd.f32 %v1287_v61, %v1285_v23  ;;  %v1340_v34 = vrot.slane %v1336_v26, 3  ;;  %v1288_v35 = vadd.f32 %v1287_v61, %v1284_v27  ;;  %v1319_v36 = vadd.f32 %v1316_v32, %v1304_v2 }
  0xdd   :  { %v1329_v37 = vsel %vm81_vm1, %v1327_v28, %v1328_v29  ;;  %v1341_v38 = vrot.slane %v1337_v30, 3  ;;  %v1333_v40 = vadd.f32 %v1328_v29, %v1320_v33  ;;  %v1361_v42 = vstv %s2941_s2  ;;  %s3110_s2 = sld [smem:[#allocation2 + $0x84]] }
  0xde   :  { %v1291_v39 = vmax.f32 %v1289_v31, 0.0  ;;  %v1290_v43 = vmax.f32 %v1288_v35, 0.0  ;;  %v1332_v44 = vadd.f32 %v1329_v37, %v1319_v36  ;;  %v1349_v46 = vmul.f32 %v2307_v4, %v1348_v41 }
  0xdf   :  { %v1342_v45 = vsel %vm95_vm2, %v1340_v34, %v1341_v38  ;;  %v1346_v48 = vadd.f32 %v1341_v38, %v1333_v40  ;;  %v1350_v49 = vmul.f32 %v2309_v5, %v1348_v41  ;;  %v1362_v50 = vmul.f32 %v2313_v6, %v1361_v42 }
  0xe0   :  { %v1293_v47 = vsel %vm299_vm4, %v1291_v39, -inf  ;;  %v1292_v51 = vsel %vm297_vm5, %v1290_v43, -inf  ;;  %v1345_v52 = vadd.f32 %v1342_v45, %v1332_v44  ;;  %v1353_v53 = vrot.slane %v1349_v46, 4 }
  0xe1   :  { %v1363_v54 = vmul.f32 %v2315_v7, %v1361_v42  ;;  %v1294_v55 = vmax.f32 %v1292_v51, %v1293_v47  ;;  %v1354_v56 = vrot.slane %v1350_v49, 4  ;;  %v1367_v57 = vstv %s2952_s25  ;;  %s3113_s25 = sld [smem:[#allocation2 + $0x85]] }
  0xe2   :  { %v1380_v58 = vstv %s2955_s26  ;;  %v1368_v59 = vmul.f32 %v2313_v6, %v1367_v57  ;;  %v1369_v60 = vmul.f32 %v2315_v7, %v1367_v57  ;;  %v1393_v2 = vstv %s2959_s27  ;;  %s3121_s26 = sld [smem:[#allocation2 + $0x86]] }
  0xe3   :  { %v1381_v61 = vmul.f32 %v2313_v6, %v1380_v58  ;;  %v1382_v62 = vmul.f32 %v2315_v7, %v1380_v58  ;;  %v1295_v63 = vrot.slane %v1294_v55, 4  ;;  %v1355_v0 = vsel %vm109_vm3, %v1353_v53, %v1354_v56  ;;  %s3126_s27 = sld [smem:[#allocation2 + $0x87]] }
  0xe4   :  { %v1359_v1 = vadd.f32 %v1354_v56, %v1346_v48  ;;  %v1358_v3 = vadd.f32 %v1355_v0, %v1345_v52  ;;  %v1372_v12 = vrot.slane %v1368_v59, 1  ;;  %v1373_v13 = vrot.slane %v1369_v60, 1 }
  0xe5   :  { %v1385_v14 = vrot.slane %v1381_v61, 2  ;;  %v1296_v15 = vmax.f32 %v1294_v55, %v1295_v63  ;;  %v1386_v17 = vrot.slane %v1382_v62, 2  ;;  %v1394_v18 = vmul.f32 %v2313_v6, %v1393_v2 }
  0xe6   :  { %v1365_v16 = vadd.f32 %v1363_v54, %v1359_v1  ;;  %v1364_v19 = vadd.f32 %v1362_v50, %v1358_v3  ;;  %v1374_v20 = vsel %vm67_vm0, %v1372_v12, %v1373_v13  ;;  %v1395_v21 = vmul.f32 %v2315_v7, %v1393_v2 }
  0xe7   :  { %v1406_v22 = vstv %s2966_s28  ;;  %v1297_v23 = vrot.slane %v1296_v15, 2  ;;  %v1387_v25 = vsel %vm81_vm1, %v1385_v14, %v1386_v17  ;;  %v1398_v26 = vrot.slane %v1394_v18, 3  ;;  %s3130_s28 = sld [smem:[#allocation2 + $0x88]] }
  0xe8   :  { %v1378_v24 = vadd.f32 %v1373_v13, %v1365_v16  ;;  %v1377_v27 = vadd.f32 %v1374_v20, %v1364_v19  ;;  %v1399_v28 = vrot.slane %v1395_v21, 3  ;;  %v1407_v29 = vmul.f32 %v2313_v6, %v1406_v22 }
  0xe9   :  { %v1408_v30 = vmul.f32 %v2315_v7, %v1406_v22  ;;  %v1298_v31 = vmax.f32 %v1296_v15, %v1297_v23  ;;  %v1419_v33 = vstv %s2973_s29  ;;  %v1425_v34 = vstv %s2977_s30  ;;  %s3135_s29 = sld [smem:[#allocation2 + $0x89]] }
  0xea   :  { %v1391_v32 = vadd.f32 %v1386_v17, %v1378_v24  ;;  %v1390_v35 = vadd.f32 %v1387_v25, %v1377_v27  ;;  %v1400_v36 = vsel %vm95_vm2, %v1398_v26, %v1399_v28  ;;  %v1411_v37 = vrot.slane %v1407_v29, 4  ;;  %s3139_s30 = sld [smem:[#allocation2 + $0x8a]] }
  0xeb   :  { %v1412_v38 = vrot.slane %v1408_v30, 4  ;;  %v1299_v39 = vrot.slane %v1298_v31, 1  ;;  %v1420_v41 = vmul.f32 %v2317_v8, %v1419_v33  ;;  %v1421_v42 = vmul.f32 %v2321_v9, %v1419_v33 }
  0xec   :  { %v1404_v40 = vadd.f32 %v1399_v28, %v1391_v32  ;;  %v1403_v43 = vadd.f32 %v1400_v36, %v1390_v35  ;;  %v1426_v45 = vmul.f32 %v2317_v8, %v1425_v34  ;;  %v1427_v46 = vmul.f32 %v2321_v9, %v1425_v34 }
  0xed   :  { %v1413_v44 = vsel %vm109_vm3, %v1411_v37, %v1412_v38  ;;  %v1300_v47 = vmax.f32 %v1298_v31, %v1299_v39  ;;  %v1438_v49 = vstv %s2985_s4  ;;  %v1451_v50 = vstv %s2988_s0 }
  0xee   :  { %v1417_v48 = vadd.f32 %v1412_v38, %v1404_v40  ;;  %v1416_v51 = vadd.f32 %v1413_v44, %v1403_v43  ;;  %v1430_v52 = vrot.slane %v1426_v45, 1  ;;  %v1431_v53 = vrot.slane %v1427_v46, 1 }
  0xef   :  { %v1439_v54 = vmul.f32 %v2317_v8, %v1438_v49  ;;  %1301 = vst.msk [vmem:[%s3311_s3 + $0x4] sm:$0x1] %vm308_vm6, %v1300_v47  ;;  %v1440_v56 = vmul.f32 %v2321_v9, %v1438_v49  ;;  %v1452_v57 = vmul.f32 %v2317_v8, %v1451_v50  ;;  %v1453_v58 = vmul.f32 %v2321_v9, %v1451_v50 }
  0xf0   :  { %v1423_v55 = vadd.f32 %v1421_v42, %v1417_v48  ;;  %v1422_v59 = vadd.f32 %v1420_v41, %v1416_v51  ;;  %v1432_v60 = vsel %vm67_vm0, %v1430_v52, %v1431_v53  ;;  %v1464_v62 = vstv %s2996_s5  ;;  %s3154_s5 = sld [smem:[#allocation2 + $0x8b]] }
  0xf1   :  { %v1443_v61 = vrot.slane %v1439_v54, 2  ;;  %v1444_v0 = vrot.slane %v1440_v56, 2  ;;  %v1456_v1 = vrot.slane %v1452_v57, 3  ;;  %v1457_v2 = vrot.slane %v1453_v58, 3 }
  0xf2   :  { %v1436_v63 = vadd.f32 %v1431_v53, %v1423_v55  ;;  %v1435_v3 = vadd.f32 %v1432_v60, %v1422_v59  ;;  %v1465_v12 = vmul.f32 %v2317_v8, %v1464_v62  ;;  %v1466_v13 = vmul.f32 %v2321_v9, %v1464_v62 }
  0xf3   :  { %v1477_v14 = vstv %s3001_s6  ;;  %v1445_v15 = vsel %vm81_vm1, %v1443_v61, %v1444_v0  ;;  %v1458_v17 = vsel %vm95_vm2, %v1456_v1, %v1457_v2  ;;  %v1483_v24 = vstv %s3005_s7  ;;  %s3159_s6 = sld [smem:[#allocation2 + $0x8c]] }
  0xf4   :  { %v1449_v16 = vadd.f32 %v1444_v0, %v1436_v63  ;;  %v1478_v18 = vmul.f32 %v2323_v10, %v1477_v14  ;;  %v1448_v19 = vadd.f32 %v1445_v15, %v1435_v3  ;;  %v1469_v20 = vrot.slane %v1465_v12, 4  ;;  %s3162_s7 = sld [smem:[#allocation4 + $0x6]] }
  0xf5   :  { %v1470_v21 = vrot.slane %v1466_v13, 4  ;;  %v1479_v22 = vmul.f32 %v2325_v11, %v1477_v14  ;;  %v1496_v25 = vstv %s3010_s8  ;;  %v1509_v26 = vstv %s3014_s9  ;;  %s3167_s8 = sld [smem:[#allocation2 + $0x8d]] }
  0xf6   :  { %v1462_v23 = vadd.f32 %v1457_v2, %v1449_v16  ;;  %v1461_v27 = vadd.f32 %v1458_v17, %v1448_v19  ;;  %v1484_v29 = vmul.f32 %v2323_v10, %v1483_v24  ;;  %v1485_v30 = vmul.f32 %v2325_v11, %v1483_v24  ;;  %s3172_s9 = sld [smem:[#allocation2 + $0x8e]] }
  0xf7   :  { %v1471_v28 = vsel %vm109_vm3, %v1469_v20, %v1470_v21  ;;  %v1497_v32 = vmul.f32 %v2323_v10, %v1496_v25  ;;  %v1498_v33 = vmul.f32 %v2325_v11, %v1496_v25  ;;  %v1510_v34 = vmul.f32 %v2323_v10, %v1509_v26 }
  0xf8   :  { %v1475_v31 = vadd.f32 %v1470_v21, %v1462_v23  ;;  %v1474_v35 = vadd.f32 %v1471_v28, %v1461_v27  ;;  %v1488_v36 = vrot.slane %v1484_v29, 1  ;;  %v1489_v37 = vrot.slane %v1485_v30, 1 }
  0xf9   :  { %v1511_v38 = vmul.f32 %v2325_v11, %v1509_v26  ;;  %v1501_v40 = vrot.slane %v1497_v32, 2  ;;  %v1502_v41 = vrot.slane %v1498_v33, 2  ;;  %v1514_v42 = vrot.slane %v1510_v34, 3 }
  0xfa   :  { %v1481_v39 = vadd.f32 %v1479_v22, %v1475_v31  ;;  %v1480_v43 = vadd.f32 %v1478_v18, %v1474_v35  ;;  %v1490_v44 = vsel %vm67_vm0, %v1488_v36, %v1489_v37  ;;  %v1522_v46 = vstv %s3029_s12  ;;  %s3191_s12 = sld [smem:[#allocation2 + $0x91]] }
  0xfb   :  { %v1515_v45 = vrot.slane %v1511_v38, 3  ;;  %v1503_v48 = vsel %vm81_vm1, %v1501_v40, %v1502_v41  ;;  %v1523_v49 = vmul.f32 %v2323_v10, %v1522_v46  ;;  %v1524_v50 = vmul.f32 %v2325_v11, %v1522_v46 }
  0xfc   :  { %v1494_v47 = vadd.f32 %v1489_v37, %v1481_v39  ;;  %v1493_v51 = vadd.f32 %v1490_v44, %v1480_v43  ;;  %v1535_v53 = vstv %s3034_s13  ;;  %v1551_v54 = vstv %s3037_s14  ;;  %s3202_s13 = sld [smem:[#allocation2 + $0x92]] }
  0xfd   :  { %v1516_v52 = vsel %vm95_vm2, %v1514_v42, %v1515_v45  ;;  %v1527_v56 = vrot.slane %v1523_v49, 4  ;;  %v1528_v57 = vrot.slane %v1524_v50, 4  ;;  %v1552_v58 = vmul.f32 %v2307_v4, %v1551_v54  ;;  %s3205_s14 = sld [smem:[#allocation2 + $0x93]] }
  0xfe   :  { %v1507_v55 = vadd.f32 %v1502_v41, %v1494_v47  ;;  %v1506_v59 = vadd.f32 %v1503_v48, %v1493_v51  ;;  %v1553_v60 = vmul.f32 %v2309_v5, %v1551_v54  ;;  %v1557_v61 = vstv %s3042_s15  ;;  %s3209_s15 = sld [smem:[#allocation2 + $0x94]] }
  0xff   :  { %v1570_v62 = vstv %s3047_s16  ;;  %v1529_v0 = vsel %vm109_vm3, %v1527_v56, %v1528_v57  ;;  %v1558_v1 = vmul.f32 %v2307_v4, %v1557_v61  ;;  %v1559_v2 = vmul.f32 %v2309_v5, %v1557_v61  ;;  %s3216_s16 = sld [smem:[#allocation2 + $0x95]] }
 0x100   :  { %v1520_v63 = vadd.f32 %v1515_v45, %v1507_v55  ;;  %v1519_v3 = vadd.f32 %v1516_v52, %v1506_v59  ;;  %v1571_v12 = vmul.f32 %v2307_v4, %v1570_v62  ;;  %v1572_v13 = vmul.f32 %v2309_v5, %v1570_v62 }
 0x101   :  { %v1583_v14 = vstv %s3053_s17  ;;  %v1562_v16 = vrot.slane %v1558_v1, 1  ;;  %v1563_v17 = vrot.slane %v1559_v2, 1  ;;  %v1596_v33 = vstv %s3063_s18  ;;  %s3223_s17 = sld [smem:[#allocation2 + $0x97]] }
 0x102   :  { %v1533_v15 = vadd.f32 %v1528_v57, %v1520_v63  ;;  %v1584_v18 = vmul.f32 %v2307_v4, %v1583_v14  ;;  %v1532_v19 = vadd.f32 %v1529_v0, %v1519_v3  ;;  %v1575_v20 = vrot.slane %v1571_v12, 2  ;;  %s3227_s18 = sld [smem:[#allocation2 + $0x96]] }
 0x103   :  { %v1576_v21 = vrot.slane %v1572_v13, 2  ;;  %v1585_v22 = vmul.f32 %v2309_v5, %v1583_v14  ;;  %v1564_v24 = vsel %vm67_vm0, %v1562_v16, %v1563_v17  ;;  %v1568_v25 = vadd.f32 %v1563_v17, %v1553_v60 }
 0x104   :  { %v1537_v23 = vadd.f32 %v1535_v53, %v1533_v15  ;;  %v1588_v26 = vrot.slane %v1584_v18, 3  ;;  %v1536_v27 = vadd.f32 %v1535_v53, %v1532_v19  ;;  %v1567_v28 = vadd.f32 %v1564_v24, %v1552_v58 }
 0x105   :  { %v1577_v29 = vsel %vm81_vm1, %v1575_v20, %v1576_v21  ;;  %v1589_v30 = vrot.slane %v1585_v22, 3  ;;  %v1581_v32 = vadd.f32 %v1576_v21, %v1568_v25  ;;  %v1609_v34 = vstv %s3066_s19  ;;  %s3235_s19 = sld [smem:[#allocation2 + $0x98]] }
 0x106   :  { %v1539_v31 = vmax.f32 %v1537_v23, 0.0  ;;  %v1538_v35 = vmax.f32 %v1536_v27, 0.0  ;;  %v1580_v36 = vadd.f32 %v1577_v29, %v1567_v28  ;;  %v1597_v38 = vmul.f32 %v2307_v4, %v1596_v33 }
 0x107   :  { %v1590_v37 = vsel %vm95_vm2, %v1588_v26, %v1589_v30  ;;  %v1594_v40 = vadd.f32 %v1589_v30, %v1581_v32  ;;  %v1598_v41 = vmul.f32 %v2309_v5, %v1596_v33  ;;  %v1610_v42 = vmul.f32 %v2313_v6, %v1609_v34 }
 0x108   :  { %v1541_v39 = vsel %vm299_vm4, %v1539_v31, -inf  ;;  %v1540_v43 = vsel %vm297_vm5, %v1538_v35, -inf  ;;  %v1593_v44 = vadd.f32 %v1590_v37, %v1580_v36  ;;  %v1601_v45 = vrot.slane %v1597_v38, 4 }
 0x109   :  { %v1611_v46 = vmul.f32 %v2315_v7, %v1609_v34  ;;  %v1542_v47 = vmax.f32 %v1540_v43, %v1541_v39  ;;  %v1602_v48 = vrot.slane %v1598_v41, 4  ;;  %v1615_v49 = vstv %s3077_s20  ;;  %s3238_s20 = sld [smem:[#allocation2 + $0x99]] }
 0x10a   :  { %v1628_v50 = vstv %s3080_s21  ;;  %v1616_v51 = vmul.f32 %v2313_v6, %v1615_v49  ;;  %v1617_v52 = vmul.f32 %v2315_v7, %v1615_v49  ;;  %v1641_v58 = vstv %s3084_s22  ;;  %s3246_s21 = sld [smem:[#allocation2 + $0x9a]] }
 0x10b   :  { %v1629_v53 = vmul.f32 %v2313_v6, %v1628_v50  ;;  %v1630_v54 = vmul.f32 %v2315_v7, %v1628_v50  ;;  %v1543_v55 = vrot.slane %v1542_v47, 4  ;;  %v1603_v56 = vsel %vm109_vm3, %v1601_v45, %v1602_v48  ;;  %s3251_s22 = sld [smem:[#allocation2 + $0x9b]] }
 0x10c   :  { %v1607_v57 = vadd.f32 %v1602_v48, %v1594_v40  ;;  %v1606_v59 = vadd.f32 %v1603_v56, %v1593_v44  ;;  %v1620_v60 = vrot.slane %v1616_v51, 1  ;;  %v1621_v61 = vrot.slane %v1617_v52, 1 }
 0x10d   :  { %v1633_v62 = vrot.slane %v1629_v53, 2  ;;  %v1544_v63 = vmax.f32 %v1542_v47, %v1543_v55  ;;  %v1634_v1 = vrot.slane %v1630_v54, 2  ;;  %v1642_v2 = vmul.f32 %v2313_v6, %v1641_v58 }
 0x10e   :  { %v1613_v0 = vadd.f32 %v1611_v46, %v1607_v57  ;;  %v1612_v3 = vadd.f32 %v1610_v42, %v1606_v59  ;;  %v1622_v12 = vsel %vm67_vm0, %v1620_v60, %v1621_v61  ;;  %v1643_v13 = vmul.f32 %v2315_v7, %v1641_v58 }
 0x10f   :  { %v1654_v14 = vstv %s3091_s1  ;;  %v1545_v15 = vrot.slane %v1544_v63, 2  ;;  %v1635_v17 = vsel %vm81_vm1, %v1633_v62, %v1634_v1  ;;  %v1646_v18 = vrot.slane %v1642_v2, 3  ;;  %s3255_s1 = sld [smem:[#allocation2 + $0x9c]] }
 0x110   :  { %v1626_v16 = vadd.f32 %v1621_v61, %v1613_v0  ;;  %v1625_v19 = vadd.f32 %v1622_v12, %v1612_v3  ;;  %v1647_v20 = vrot.slane %v1643_v13, 3  ;;  %v1655_v21 = vmul.f32 %v2313_v6, %v1654_v14 }
 0x111   :  { %v1656_v22 = vmul.f32 %v2315_v7, %v1654_v14  ;;  %v1546_v23 = vmax.f32 %v1544_v63, %v1545_v15  ;;  %v1667_v25 = vstv %s3098_s23  ;;  %v1673_v26 = vstv %s3102_s24  ;;  %s3260_s23 = sld [smem:[#allocation2 + $0x9d]] }
 0x112   :  { %v1639_v24 = vadd.f32 %v1634_v1, %v1626_v16  ;;  %v1638_v27 = vadd.f32 %v1635_v17, %v1625_v19  ;;  %v1648_v28 = vsel %vm95_vm2, %v1646_v18, %v1647_v20  ;;  %v1659_v29 = vrot.slane %v1655_v21, 4  ;;  %s3264_s24 = sld [smem:[#allocation2 + $0x9e]] }
 0x113   :  { %v1660_v30 = vrot.slane %v1656_v22, 4  ;;  %v1547_v31 = vrot.slane %v1546_v23, 1  ;;  %v1668_v33 = vmul.f32 %v2317_v8, %v1667_v25  ;;  %v1669_v34 = vmul.f32 %v2321_v9, %v1667_v25 }
 0x114   :  { %v1652_v32 = vadd.f32 %v1647_v20, %v1639_v24  ;;  %v1651_v35 = vadd.f32 %v1648_v28, %v1638_v27  ;;  %v1674_v37 = vmul.f32 %v2317_v8, %v1673_v26  ;;  %v1675_v38 = vmul.f32 %v2321_v9, %v1673_v26 }
 0x115   :  { %v1661_v36 = vsel %vm109_vm3, %v1659_v29, %v1660_v30  ;;  %v1548_v39 = vmax.f32 %v1546_v23, %v1547_v31  ;;  %v1686_v41 = vstv %s3110_s2  ;;  %v1699_v42 = vstv %s3113_s25 }
 0x116   :  { %v1665_v40 = vadd.f32 %v1660_v30, %v1652_v32  ;;  %v1664_v43 = vadd.f32 %v1661_v36, %v1651_v35  ;;  %v1678_v44 = vrot.slane %v1674_v37, 1  ;;  %v1679_v45 = vrot.slane %v1675_v38, 1 }
 0x117   :  { %v1687_v46 = vmul.f32 %v2317_v8, %v1686_v41  ;;  %1549 = vst.msk [vmem:[%s3311_s3 + $0x5] sm:$0x1] %vm308_vm6, %v1548_v39  ;;  %v1688_v48 = vmul.f32 %v2321_v9, %v1686_v41  ;;  %v1700_v49 = vmul.f32 %v2317_v8, %v1699_v42  ;;  %v1701_v50 = vmul.f32 %v2321_v9, %v1699_v42 }
 0x118   :  { %v1671_v47 = vadd.f32 %v1669_v34, %v1665_v40  ;;  %v1670_v51 = vadd.f32 %v1668_v33, %v1664_v43  ;;  %v1680_v52 = vsel %vm67_vm0, %v1678_v44, %v1679_v45  ;;  %v1712_v54 = vstv %s3121_s26  ;;  %s3279_s26 = sld [smem:[#allocation2 + $0x9f]] }
 0x119   :  { %v1691_v53 = vrot.slane %v1687_v46, 2  ;;  %v1692_v56 = vrot.slane %v1688_v48, 2  ;;  %v1704_v57 = vrot.slane %v1700_v49, 3  ;;  %v1705_v58 = vrot.slane %v1701_v50, 3 }
 0x11a   :  { %v1684_v55 = vadd.f32 %v1679_v45, %v1671_v47  ;;  %v1683_v59 = vadd.f32 %v1680_v52, %v1670_v51  ;;  %v1713_v60 = vmul.f32 %v2317_v8, %v1712_v54  ;;  %v1714_v61 = vmul.f32 %v2321_v9, %v1712_v54 }
 0x11b   :  { %v1725_v62 = vstv %s3126_s27  ;;  %v1693_v63 = vsel %vm81_vm1, %v1691_v53, %v1692_v56  ;;  %v1706_v1 = vsel %vm95_vm2, %v1704_v57, %v1705_v58  ;;  %v1731_v16 = vstv %s3130_s28  ;;  %s2217_s27 = sld [smem:[#allocation4 + $0x7]] }
 0x11c   :  { %v1697_v0 = vadd.f32 %v1692_v56, %v1684_v55  ;;  %v1726_v2 = vmul.f32 %v2323_v10, %v1725_v62  ;;  %v1696_v3 = vadd.f32 %v1693_v63, %v1683_v59  ;;  %v1717_v12 = vrot.slane %v1713_v60, 4 }
 0x11d   :  { %v1718_v13 = vrot.slane %v1714_v61, 4  ;;  %v1727_v14 = vmul.f32 %v2325_v11, %v1725_v62  ;;  %v1744_v17 = vstv %s3135_s29  ;;  %v1757_v18 = vstv %s3139_s30 }
 0x11e   :  { %v1710_v15 = vadd.f32 %v1705_v58, %v1697_v0  ;;  %v1709_v19 = vadd.f32 %v1706_v1, %v1696_v3  ;;  %v1732_v21 = vmul.f32 %v2323_v10, %v1731_v16  ;;  %v1733_v22 = vmul.f32 %v2325_v11, %v1731_v16 }
 0x11f   :  { %v1719_v20 = vsel %vm109_vm3, %v1717_v12, %v1718_v13  ;;  %v1745_v24 = vmul.f32 %v2323_v10, %v1744_v17  ;;  %v1746_v25 = vmul.f32 %v2325_v11, %v1744_v17  ;;  %v1758_v26 = vmul.f32 %v2323_v10, %v1757_v18 }
 0x120   :  { %v1723_v23 = vadd.f32 %v1718_v13, %v1710_v15  ;;  %v1722_v27 = vadd.f32 %v1719_v20, %v1709_v19  ;;  %v1736_v28 = vrot.slane %v1732_v21, 1  ;;  %v1737_v29 = vrot.slane %v1733_v22, 1 }
 0x121   :  { %v1759_v30 = vmul.f32 %v2325_v11, %v1757_v18  ;;  %v1749_v32 = vrot.slane %v1745_v24, 2  ;;  %v1750_v33 = vrot.slane %v1746_v25, 2  ;;  %v1762_v34 = vrot.slane %v1758_v26, 3 }
 0x122   :  { %v1729_v31 = vadd.f32 %v1727_v14, %v1723_v23  ;;  %v1728_v35 = vadd.f32 %v1726_v2, %v1722_v27  ;;  %v1738_v36 = vsel %vm67_vm0, %v1736_v28, %v1737_v29  ;;  %v1770_v38 = vstv %s3154_s5 }
 0x123   :  { %v1763_v37 = vrot.slane %v1759_v30, 3  ;;  %v1751_v40 = vsel %vm81_vm1, %v1749_v32, %v1750_v33  ;;  %v1771_v41 = vmul.f32 %v2323_v10, %v1770_v38  ;;  %v1772_v42 = vmul.f32 %v2325_v11, %v1770_v38 }
 0x124   :  { %v1742_v39 = vadd.f32 %v1737_v29, %v1729_v31  ;;  %v1741_v43 = vadd.f32 %v1738_v36, %v1728_v35  ;;  %v1783_v45 = vstv %s3162_s7  ;;  %v1799_v46 = vstv %s3159_s6 }
 0x125   :  { %v1764_v44 = vsel %vm95_vm2, %v1762_v34, %v1763_v37  ;;  %v1775_v48 = vrot.slane %v1771_v41, 4  ;;  %v1776_v49 = vrot.slane %v1772_v42, 4  ;;  %v1800_v50 = vmul.f32 %v2307_v4, %v1799_v46 }
 0x126   :  { %v1755_v47 = vadd.f32 %v1750_v33, %v1742_v39  ;;  %v1754_v51 = vadd.f32 %v1751_v40, %v1741_v43  ;;  %v1801_v52 = vmul.f32 %v2309_v5, %v1799_v46  ;;  %v1805_v53 = vstv %s3167_s8 }
 0x127   :  { %v1818_v54 = vstv %s3172_s9  ;;  %v1777_v56 = vsel %vm109_vm3, %v1775_v48, %v1776_v49  ;;  %v1806_v57 = vmul.f32 %v2307_v4, %v1805_v53  ;;  %v1807_v58 = vmul.f32 %v2309_v5, %v1805_v53 }
 0x128   :  { %v1768_v55 = vadd.f32 %v1763_v37, %v1755_v47  ;;  %v1767_v59 = vadd.f32 %v1764_v44, %v1754_v51  ;;  %v1819_v60 = vmul.f32 %v2307_v4, %v1818_v54  ;;  %v1820_v61 = vmul.f32 %v2309_v5, %v1818_v54 }
 0x129   :  { %v1831_v62 = vstv %s3178_s10  ;;  %v1810_v0 = vrot.slane %v1806_v57, 1  ;;  %v1811_v1 = vrot.slane %v1807_v58, 1  ;;  %v1844_v25 = vstv %s3188_s11 }
 0x12a   :  { %v1781_v63 = vadd.f32 %v1776_v49, %v1768_v55  ;;  %v1832_v2 = vmul.f32 %v2307_v4, %v1831_v62  ;;  %v1780_v3 = vadd.f32 %v1777_v56, %v1767_v59  ;;  %v1823_v12 = vrot.slane %v1819_v60, 2 }
 0x12b   :  { %v1824_v13 = vrot.slane %v1820_v61, 2  ;;  %v1833_v14 = vmul.f32 %v2309_v5, %v1831_v62  ;;  %v1812_v16 = vsel %vm67_vm0, %v1810_v0, %v1811_v1  ;;  %v1816_v17 = vadd.f32 %v1811_v1, %v1801_v52 }
 0x12c   :  { %v1785_v15 = vadd.f32 %v1783_v45, %v1781_v63  ;;  %v1836_v18 = vrot.slane %v1832_v2, 3  ;;  %v1784_v19 = vadd.f32 %v1783_v45, %v1780_v3  ;;  %v1815_v20 = vadd.f32 %v1812_v16, %v1800_v50 }
 0x12d   :  { %v1825_v21 = vsel %vm81_vm1, %v1823_v12, %v1824_v13  ;;  %v1837_v22 = vrot.slane %v1833_v14, 3  ;;  %v1829_v24 = vadd.f32 %v1824_v13, %v1816_v17  ;;  %v1857_v26 = vstv %s3191_s12 }
 0x12e   :  { %v1787_v23 = vmax.f32 %v1785_v15, 0.0  ;;  %v1786_v27 = vmax.f32 %v1784_v19, 0.0  ;;  %v1828_v28 = vadd.f32 %v1825_v21, %v1815_v20  ;;  %v1845_v30 = vmul.f32 %v2307_v4, %v1844_v25 }
 0x12f   :  { %v1838_v29 = vsel %vm95_vm2, %v1836_v18, %v1837_v22  ;;  %v1842_v32 = vadd.f32 %v1837_v22, %v1829_v24  ;;  %v1846_v33 = vmul.f32 %v2309_v5, %v1844_v25  ;;  %v1858_v34 = vmul.f32 %v2313_v6, %v1857_v26 }
 0x130   :  { %v1789_v31 = vsel %vm299_vm4, %v1787_v23, -inf  ;;  %v1788_v35 = vsel %vm297_vm5, %v1786_v27, -inf  ;;  %v1841_v36 = vadd.f32 %v1838_v29, %v1828_v28  ;;  %v1849_v37 = vrot.slane %v1845_v30, 4 }
 0x131   :  { %v1859_v38 = vmul.f32 %v2315_v7, %v1857_v26  ;;  %v1790_v39 = vmax.f32 %v1788_v35, %v1789_v31  ;;  %v1850_v4 = vrot.slane %v1846_v33, 4  ;;  %v1863_v40 = vstv %s3202_s13 }
 0x132   :  { %v1876_v41 = vstv %s3205_s14  ;;  %v1864_v42 = vmul.f32 %v2313_v6, %v1863_v40  ;;  %v1865_v5 = vmul.f32 %v2315_v7, %v1863_v40  ;;  %v1889_v48 = vstv %s3209_s15 }
 0x133   :  { %v1877_v43 = vmul.f32 %v2313_v6, %v1876_v41  ;;  %v1878_v44 = vmul.f32 %v2315_v7, %v1876_v41  ;;  %v1791_v45 = vrot.slane %v1790_v39, 4  ;;  %v1851_v46 = vsel %vm109_vm3, %v1849_v37, %v1850_v4 }
 0x134   :  { %v1855_v47 = vadd.f32 %v1850_v4, %v1842_v32  ;;  %v1854_v49 = vadd.f32 %v1851_v46, %v1841_v36  ;;  %v1868_v50 = vrot.slane %v1864_v42, 1  ;;  %v1869_v51 = vrot.slane %v1865_v5, 1 }
 0x135   :  { %v1881_v52 = vrot.slane %v1877_v43, 2  ;;  %v1792_v53 = vmax.f32 %v1790_v39, %v1791_v45  ;;  %v1882_v55 = vrot.slane %v1878_v44, 2  ;;  %v1890_v56 = vmul.f32 %v2313_v6, %v1889_v48 }
 0x136   :  { %v1861_v54 = vadd.f32 %v1859_v38, %v1855_v47  ;;  %v1860_v57 = vadd.f32 %v1858_v34, %v1854_v49  ;;  %v1870_v58 = vsel %vm67_vm0, %v1868_v50, %v1869_v51  ;;  %v1891_v59 = vmul.f32 %v2315_v7, %v1889_v48 }
 0x137   :  { %v1902_v60 = vstv %s3216_s16  ;;  %v1793_v61 = vrot.slane %v1792_v53, 2  ;;  %v1883_v63 = vsel %vm81_vm1, %v1881_v52, %v1882_v55  ;;  %v1894_v0 = vrot.slane %v1890_v56, 3 }
 0x138   :  { %v1874_v62 = vadd.f32 %v1869_v51, %v1861_v54  ;;  %v1873_v1 = vadd.f32 %v1870_v58, %v1860_v57  ;;  %v1895_v2 = vrot.slane %v1891_v59, 3  ;;  %v1903_v3 = vmul.f32 %v2313_v6, %v1902_v60 }
 0x139   :  { %v1904_v12 = vmul.f32 %v2315_v7, %v1902_v60  ;;  %v1794_v13 = vmax.f32 %v1792_v53, %v1793_v61  ;;  %v1915_v15 = vstv %s3227_s18  ;;  %v1921_v16 = vstv %s3223_s17 }
 0x13a   :  { %v1887_v14 = vadd.f32 %v1882_v55, %v1874_v62  ;;  %v1886_v17 = vadd.f32 %v1883_v63, %v1873_v1  ;;  %v1896_v18 = vsel %vm95_vm2, %v1894_v0, %v1895_v2  ;;  %v1907_v19 = vrot.slane %v1903_v3, 4 }
 0x13b   :  { %v1908_v20 = vrot.slane %v1904_v12, 4  ;;  %v1795_v21 = vrot.slane %v1794_v13, 1  ;;  %v1916_v6 = vmul.f32 %v2317_v8, %v1915_v15  ;;  %v1917_v7 = vmul.f32 %v2321_v9, %v1915_v15 }
 0x13c   :  { %v1900_v22 = vadd.f32 %v1895_v2, %v1887_v14  ;;  %v1899_v23 = vadd.f32 %v1896_v18, %v1886_v17  ;;  %v1922_v25 = vmul.f32 %v2317_v8, %v1921_v16  ;;  %v1923_v26 = vmul.f32 %v2321_v9, %v1921_v16 }
 0x13d   :  { %v1909_v24 = vsel %vm109_vm3, %v1907_v19, %v1908_v20  ;;  %v1796_v27 = vmax.f32 %v1794_v13, %v1795_v21  ;;  %v1934_v29 = vstv %s3235_s19  ;;  %v1947_v30 = vstv %s3238_s20 }
 0x13e   :  { %v1913_v28 = vadd.f32 %v1908_v20, %v1900_v22  ;;  %v1912_v31 = vadd.f32 %v1909_v24, %v1899_v23  ;;  %v1926_v32 = vrot.slane %v1922_v25, 1  ;;  %v1927_v33 = vrot.slane %v1923_v26, 1 }
 0x13f   :  { %v1935_v34 = vmul.f32 %v2317_v8, %v1934_v29  ;;  %1797 = vst.msk [vmem:[%s3311_s3 + $0x6] sm:$0x1] %vm308_vm6, %v1796_v27  ;;  %v1936_v36 = vmul.f32 %v2321_v9, %v1934_v29  ;;  %v1948_v37 = vmul.f32 %v2317_v8, %v1947_v30  ;;  %v1949_v38 = vmul.f32 %v2321_v9, %v1947_v30 }
 0x140   :  { %v1919_v35 = vadd.f32 %v1917_v7, %v1913_v28  ;;  %v1918_v39 = vadd.f32 %v1916_v6, %v1912_v31  ;;  %v1928_v4 = vsel %vm67_vm0, %v1926_v32, %v1927_v33  ;;  %v1960_v41 = vstv %s3246_s21 }
 0x141   :  { %v1939_v40 = vrot.slane %v1935_v34, 2  ;;  %v1940_v5 = vrot.slane %v1936_v36, 2  ;;  %v1952_v43 = vrot.slane %v1948_v37, 3  ;;  %v1953_v44 = vrot.slane %v1949_v38, 3 }
 0x142   :  { %v1932_v42 = vadd.f32 %v1927_v33, %v1919_v35  ;;  %v1931_v45 = vadd.f32 %v1928_v4, %v1918_v39  ;;  %v1961_v46 = vmul.f32 %v2317_v8, %v1960_v41  ;;  %v1962_v47 = vmul.f32 %v2321_v9, %v1960_v41 }
 0x143   :  { %v1973_v48 = vstv %s3251_s22  ;;  %v1941_v49 = vsel %vm81_vm1, %v1939_v40, %v1940_v5  ;;  %v1954_v51 = vsel %vm95_vm2, %v1952_v43, %v1953_v44  ;;  %v1979_v58 = vstv %s3255_s1 }
 0x144   :  { %v1945_v50 = vadd.f32 %v1940_v5, %v1932_v42  ;;  %v1974_v52 = vmul.f32 %v2323_v10, %v1973_v48  ;;  %v1944_v53 = vadd.f32 %v1941_v49, %v1931_v45  ;;  %v1965_v54 = vrot.slane %v1961_v46, 4 }
 0x145   :  { %v1966_v55 = vrot.slane %v1962_v47, 4  ;;  %v1975_v56 = vmul.f32 %v2325_v11, %v1973_v48  ;;  %v1992_v8 = vstv %s3260_s23  ;;  %v2005_v59 = vstv %s3264_s24 }
 0x146   :  { %v1958_v57 = vadd.f32 %v1953_v44, %v1945_v50  ;;  %v1957_v9 = vadd.f32 %v1954_v51, %v1944_v53  ;;  %v1980_v61 = vmul.f32 %v2323_v10, %v1979_v58  ;;  %v1981_v62 = vmul.f32 %v2325_v11, %v1979_v58 }
 0x147   :  { %v1967_v60 = vsel %vm109_vm3, %v1965_v54, %v1966_v55  ;;  %v1993_v0 = vmul.f32 %v2323_v10, %v1992_v8  ;;  %v1994_v1 = vmul.f32 %v2325_v11, %v1992_v8  ;;  %v2006_v2 = vmul.f32 %v2323_v10, %v2005_v59 }
 0x148   :  { %v1971_v63 = vadd.f32 %v1966_v55, %v1958_v57  ;;  %v1970_v3 = vadd.f32 %v1967_v60, %v1957_v9  ;;  %v1984_v12 = vrot.slane %v1980_v61, 1  ;;  %v1985_v13 = vrot.slane %v1981_v62, 1 }
 0x149   :  { %v2007_v14 = vmul.f32 %v2325_v11, %v2005_v59  ;;  %v1997_v16 = vrot.slane %v1993_v0, 2  ;;  %v1998_v17 = vrot.slane %v1994_v1, 2  ;;  %v2010_v18 = vrot.slane %v2006_v2, 3 }
 0x14a   :  { %v1977_v15 = vadd.f32 %v1975_v56, %v1971_v63  ;;  %v1976_v19 = vadd.f32 %v1974_v52, %v1970_v3  ;;  %v1986_v20 = vsel %vm67_vm0, %v1984_v12, %v1985_v13  ;;  %v2018_v22 = vstv %s3279_s26 }
 0x14b   :  { %v2011_v21 = vrot.slane %v2007_v14, 3  ;;  %v1999_v7 = vsel %vm81_vm1, %v1997_v16, %v1998_v17  ;;  %v2019_v23 = vmul.f32 %v2323_v10, %v2018_v22  ;;  %v2020_v24 = vmul.f32 %v2325_v11, %v2018_v22 }
 0x14c   :  { %v1990_v6 = vadd.f32 %v1985_v13, %v1977_v15  ;;  %v1989_v25 = vadd.f32 %v1986_v20, %v1976_v19  ;;  %v2031_v34 = vstv %s2217_s27 }
 0x14d   :  { %v2012_v27 = vsel %vm95_vm2, %v2010_v18, %v2011_v21  ;;  %v2023_v28 = vrot.slane %v2019_v23, 4  ;;  %v2024_v29 = vrot.slane %v2020_v24, 4 }
 0x14e   :  { %v2003_v26 = vadd.f32 %v1998_v17, %v1990_v6  ;;  %v2002_v30 = vadd.f32 %v1999_v7, %v1989_v25 }
 0x14f   :  { %v2025_v32 = vsel %vm109_vm3, %v2023_v28, %v2024_v29 }
 0x150   :  { %v2016_v31 = vadd.f32 %v2011_v21, %v2003_v26  ;;  %v2015_v33 = vadd.f32 %v2012_v27, %v2002_v30 }
 0x152   :  { %v2029_v35 = vadd.f32 %v2024_v29, %v2016_v31  ;;  %v2028_v36 = vadd.f32 %v2025_v32, %v2015_v33 }
 0x154   :  { %v2033_v37 = vadd.f32 %v2031_v34, %v2029_v35  ;;  %v2032_v38 = vadd.f32 %v2031_v34, %v2028_v36 }
 0x156   :  { %v2035_v39 = vmax.f32 %v2033_v37, 0.0  ;;  %v2034_v10 = vmax.f32 %v2032_v38, 0.0 }
 0x158   :  { %v2037_v11 = vsel %vm299_vm4, %v2035_v39, -inf  ;;  %v2036_v4 = vsel %vm297_vm5, %v2034_v10, -inf }
 0x159   :  { %v2038_v40 = vmax.f32 %v2036_v4, %v2037_v11 }
 0x15b   :  { %v2039_v41 = vrot.slane %v2038_v40, 4 }
 0x15d   :  { %v2040_v42 = vmax.f32 %v2038_v40, %v2039_v41 }
 0x15f   :  { %v2041_v5 = vrot.slane %v2040_v42, 2 }
 0x161   :  { %v2042_v43 = vmax.f32 %v2040_v42, %v2041_v5 }
 0x163   :  { %v2043_v44 = vrot.slane %v2042_v43, 1 }
 0x165   :  { %v2044_v45 = vmax.f32 %v2042_v43, %v2043_v44 }
 0x167   :  { %2045 = vst.msk [vmem:[%s3311_s3 + $0x7] sm:$0x1] %vm308_vm6, %v2044_v45 }
 0x168   :  { %2050 = vsyncpa [#allocation3], 1 }
 0x169   :  { %2051 = vsyncpa [#allocation5], 1 }

</bundles_post_ra>
